<compile_context>
chip_gen: v7x
topology: tpu7x:2x2x1
jax: 0.10.0
libtpu: 0.0.40
codegen_flags: <defaults>
</compile_context>

<pallas_src>
import functools
import math

import jax
import jax.numpy as jnp
from jax.experimental import pallas as pl
from jax.experimental.pallas import tpu as pltpu


def _round_up(x, m):
    return ((x + m - 1) // m) * m


# ----------------------------------------------------------------------------
# Pallas kernel 1: fused  out = act(x @ w + b)   (bf16 inputs, f32 accumulate)
# ----------------------------------------------------------------------------
def _matmul_bias_kernel(x_ref, w_ref, b_ref, o_ref, *, activation):
    acc = jnp.dot(x_ref[...], w_ref[...], preferred_element_type=jnp.float32)
    acc = acc + b_ref[...]                      # bias kept in f32
    if activation == "tanh":
        acc = jnp.tanh(acc)
    o_ref[...] = acc.astype(o_ref.dtype)


def matmul_bias(x, w, b, activation=None, out_dtype=jnp.bfloat16):
    """x: (M, K), w: (K, N), b: (N,)  ->  (M, N) in out_dtype."""
    M, K = x.shape
    K2, N = w.shape
    assert K == K2, (K, K2)
    x = x.astype(jnp.bfloat16)
    w = w.astype(jnp.bfloat16)
    b = b.astype(jnp.float32).reshape(1, N)

    # Shape-adaptive M tile: multiple of 8, capped at 512.  Small early layers
    # are no longer padded up to 128, large layers get big tiles (roofline)
    # while still producing >=2 grid steps for megacore.
    tm = min(_round_up(M, 8), 512)
    M_pad = _round_up(M, tm)
    if M_pad != M:
        x = jnp.pad(x, ((0, M_pad - M), (0, 0)))

    out = pl.pallas_call(
        functools.partial(_matmul_bias_kernel, activation=activation),
        out_shape=jax.ShapeDtypeStruct((M_pad, N), out_dtype),
        grid=(M_pad // tm,),
        in_specs=[
            pl.BlockSpec((tm, K), lambda i: (i, 0)),    # activation tile
            pl.BlockSpec((K, N), lambda i: (0, 0)),     # weight, VMEM resident
            pl.BlockSpec((1, N), lambda i: (0, 0)),     # bias row (f32)
        ],
        out_specs=pl.BlockSpec((tm, N), lambda i: (i, 0)),
        compiler_params=pltpu.CompilerParams(
            dimension_semantics=("parallel",)),
    )(x, w, b)
    return out[:M]


# ----------------------------------------------------------------------------
# Pallas kernel 2: fused  concat(up, stage) -> im2col -> Conv2d(k=3, pad=1)
# ----------------------------------------------------------------------------
def _conv3x3_fused_kernel(xu_ref, s_ref, wx_ref, ws_ref, b_ref, o_ref,
                          *, H, W, Cout):
    # xu_ref: (H+2, W+2, Cu)  zero-padded upsampled activation (bf16)
    # s_ref : (H+2, W+2, Cs)  zero-padded stage tensor          (bf16)
    # wx_ref: (9, Cu, Cout), ws_ref: (9, Cs, Cout)  per-tap weights (bf16)
    # b_ref : (1, Cout) f32,  o_ref: (H, W, Cout)
    bias = b_ref[...]                                       # (1, Cout) f32

    def row_body(h, carry):
        acc = jnp.zeros((W, Cout), jnp.float32)
        for dh in range(3):
            xu_row = xu_ref[h + dh, :, :]                   # (W+2, Cu)
            s_row = s_ref[h + dh, :, :]                     # (W+2, Cs)
            for dw in range(3):
                k = dh * 3 + dw
                acc = acc + jnp.dot(xu_row[dw:dw + W, :], wx_ref[k, :, :],
                                    preferred_element_type=jnp.float32)
                acc = acc + jnp.dot(s_row[dw:dw + W, :], ws_ref[k, :, :],
                                    preferred_element_type=jnp.float32)
        o_ref[h, :, :] = (acc + bias).astype(o_ref.dtype)
        return carry

    jax.lax.fori_loop(0, H, row_body, 0)


def conv3x3_fused(xu, s, w, b):
    """Conv2d(k=3, pad=1) applied to the channel-concat [xu, s] without
    materializing the concat or the im2col patches in HBM (split-K fusion).

    xu: (B, H, W, Cu), s: (B, H, W, Cs) NHWC;
    w: (Cout, Cu + Cs, 3, 3) [torch layout], b: (Cout,).
    """
    B, H, W, Cu = xu.shape
    Cs = s.shape[-1]
    Cout = w.shape[0]
    assert s.shape[:3] == (B, H, W), (xu.shape, s.shape)
    assert w.shape[1] == Cu + Cs, (w.shape, Cu, Cs)

    # Split the weight along the input-channel (K) axis -> concat fusion.
    wx = jnp.transpose(w[:, :Cu], (2, 3, 1, 0)).reshape(9, Cu, Cout)
    ws = jnp.transpose(w[:, Cu:], (2, 3, 1, 0)).reshape(9, Cs, Cout)
    wx = wx.astype(jnp.bfloat16)
    ws = ws.astype(jnp.bfloat16)
    b2 = b.astype(jnp.float32).reshape(1, Cout)

    # 1-pixel zero halo so all 9 taps are plain in-VMEM slices inside the kernel.
    xu_p = jnp.pad(xu.astype(jnp.bfloat16), ((0, 0), (1, 1), (1, 1), (0, 0)))
    s_p = jnp.pad(s.astype(jnp.bfloat16), ((0, 0), (1, 1), (1, 1), (0, 0)))

    return pl.pallas_call(
        functools.partial(_conv3x3_fused_kernel, H=H, W=W, Cout=Cout),
        out_shape=jax.ShapeDtypeStruct((B, H, W, Cout), jnp.bfloat16),
        grid=(B,),
        in_specs=[
            pl.BlockSpec((None, H + 2, W + 2, Cu), lambda bi: (bi, 0, 0, 0)),
            pl.BlockSpec((None, H + 2, W + 2, Cs), lambda bi: (bi, 0, 0, 0)),
            pl.BlockSpec((9, Cu, Cout), lambda bi: (0, 0, 0)),
            pl.BlockSpec((9, Cs, Cout), lambda bi: (0, 0, 0)),
            pl.BlockSpec((1, Cout), lambda bi: (0, 0)),
        ],
        out_specs=pl.BlockSpec((None, H, W, Cout), lambda bi: (bi, 0, 0, 0)),
        compiler_params=pltpu.CompilerParams(
            dimension_semantics=("parallel",)),
    )(xu_p, s_p, wx, ws, b2)


# ----------------------------------------------------------------------------
# Layer wrappers
# ----------------------------------------------------------------------------
def conv_transpose2x2(x, w, b, activation=None, out_dtype=jnp.bfloat16):
    """ConvTranspose2d(kernel=2, stride=2) in NHWC via one fused Pallas matmul.

    x: (B, H, W, Cin), w: (Cin, Cout, 2, 2) [torch layout], b: (Cout,).
    """
    B, H, W, Cin = x.shape
    Cout = w.shape[1]
    # columns ordered (kh, kw, co)
    w2 = jnp.transpose(w, (0, 2, 3, 1)).reshape(Cin, 4 * Cout)
    b2 = jnp.tile(b, 4)
    y = matmul_bias(x.reshape(B * H * W, Cin), w2, b2,
                    activation=activation, out_dtype=out_dtype)
    y = y.reshape(B, H, W, 2, 2, Cout)
    # Sub-pixel interleave (stride == kernel -> non-overlapping).
    y = jnp.transpose(y, (0, 1, 3, 2, 4, 5)).reshape(B, 2 * H, 2 * W, Cout)
    return y


def compose_transpose_chain(layers):
    """Compose consecutive ConvTranspose2d(k=2, s=2) layers into one equivalent
    ConvTranspose2d(k=P, s=P) with a per-subpixel bias.  Exact: stride==kernel,
    so outputs never overlap and there is no boundary coupling.

    layers: list of (w, b) with w: (Cin_i, Cout_i, 2, 2).
    Returns W_eff: (Cin0, CoutN, P, P), b_eff: (CoutN, P, P).
    """
    w0, b0 = layers[0]
    W_eff = w0.astype(jnp.float32)
    b_eff = jnp.broadcast_to(b0.astype(jnp.float32)[:, None, None],
                             (b0.shape[0], 2, 2))
    for w, b in layers[1:]:
        w = w.astype(jnp.float32)
        cin, _, K, _ = W_eff.shape
        c2 = w.shape[1]
        W_eff = jnp.einsum('icpq,cjab->ijpaqb', W_eff, w,
                           precision="highest").reshape(cin, c2, 2 * K, 2 * K)
        b_eff = (jnp.einsum('cpq,cjab->jpaqb', b_eff, w,
                            precision="highest").reshape(c2, 2 * K, 2 * K)
                 + b.astype(jnp.float32)[:, None, None])
    return W_eff, b_eff


def conv_transpose_composed(x, W_eff, b_eff, activation="tanh"):
    """Apply the composed ConvTranspose2d(k=P, s=P) with fused activation."""
    B, H, W, Cin = x.shape
    _, Cout, P, _ = W_eff.shape
    w2 = jnp.transpose(W_eff, (0, 2, 3, 1)).reshape(Cin, P * P * Cout)
    b2 = jnp.transpose(b_eff, (1, 2, 0)).reshape(P * P * Cout)
    y = matmul_bias(x.reshape(B * H * W, Cin), w2, b2,
                    activation=activation, out_dtype=jnp.float32)
    y = y.reshape(B, H, W, P, P, Cout)
    y = jnp.transpose(y, (0, 1, 3, 2, 4, 5)).reshape(B, H * P, W * P, Cout)
    return y


# ----------------------------------------------------------------------------
# Deterministic parameter initialization (mirrors the torch layer shapes)
# ----------------------------------------------------------------------------
def _init_conv_t(key, cin, cout):
    k1, k2 = jax.random.split(key)
    fan_in = cin * 4
    bound = 1.0 / math.sqrt(fan_in)
    w = jax.random.uniform(k1, (cin, cout, 2, 2), jnp.float32, -bound, bound)
    b = jax.random.uniform(k2, (cout,), jnp.float32, -bound, bound)
    return w, b


def _init_conv(key, cin, cout):
    k1, k2 = jax.random.split(key)
    fan_in = cin * 9
    bound = 1.0 / math.sqrt(fan_in)
    w = jax.random.uniform(k1, (cout, cin, 3, 3), jnp.float32, -bound, bound)
    b = jax.random.uniform(k2, (cout,), jnp.float32, -bound, bound)
    return w, b


def init_decoder_params(key, in_channs, output_channels, patch_size):
    up_factor = int(math.log(patch_size, 2))
    keys = jax.random.split(key, 6 + up_factor)
    params = {
        "upsample1": _init_conv_t(keys[0], in_channs, in_channs // 2),
        "conv1": _init_conv(keys[1], in_channs, in_channs // 2),
        "upsample2": _init_conv_t(keys[2], in_channs // 2, in_channs // 4),
        "conv2": _init_conv(keys[3], in_channs // 2, in_channs // 4),
        "upsample3": _init_conv_t(keys[4], in_channs // 4, in_channs // 8),
        "conv3": _init_conv(keys[5], in_channs // 4, in_channs // 8),
    }
    final = []
    for i in range(up_factor):
        cout = output_channels if i == up_factor - 1 else in_channs // 8
        final.append(_init_conv_t(keys[6 + i], in_channs // 8, cout))
    params["final"] = final
    return params


# ----------------------------------------------------------------------------
# Decoder forward (matches the PyTorch reference semantics)
# ----------------------------------------------------------------------------
def decoder_forward(params, x_nchw, stage_outputs):
    x = jnp.transpose(x_nchw, (0, 2, 3, 1)).astype(jnp.bfloat16)  # NCHW -> NHWC

    def stage(x, s_tokens, up_wb, conv_wb):
        u = conv_transpose2x2(x, *up_wb)                 # (B, 2H, 2W, Cup)
        B, L, Cs = s_tokens.shape
        hw = math.isqrt(L)
        assert hw * hw == L and hw == u.shape[1], (L, u.shape)
        s = s_tokens.reshape(B, hw, hw, Cs)              # tokens -> NHWC
        return conv3x3_fused(u, s, *conv_wb)             # fused concat + conv

    x = stage(x, stage_outputs[-1], params["upsample1"], params["conv1"])
    x = stage(x, stage_outputs[-2], params["upsample2"], params["conv2"])
    x = stage(x, stage_outputs[-3], params["upsample3"], params["conv3"])

    # Final upsample chain composed into ONE transposed conv + fused tanh.
    W_eff, b_eff = compose_transpose_chain(params["final"])
    y = conv_transpose_composed(x, W_eff, b_eff, activation="tanh")
    return jnp.transpose(y, (0, 3, 1, 2))                # NHWC -> NCHW


# ----------------------------------------------------------------------------
# Plain-JAX f32 reference (independent formulation) for self-checking
# ----------------------------------------------------------------------------
def _ref_conv_transpose2x2(x, w, b):
    B, H, W, Ci = x.shape
    Co = w.shape[1]
    y = jnp.einsum('bhwi,iojk->bhjwko', x, w,
                   precision="highest").reshape(B, 2 * H, 2 * W, Co)
    return y + b


def _ref_conv3x3(x, w, b):
    B, H, W, Ci = x.shape
    Co = w.shape[0]
    xp = jnp.pad(x, ((0, 0), (1, 1), (1, 1), (0, 0)))
    out = jnp.zeros((B, H, W, Co), jnp.float32)
    for i in range(3):
        for j in range(3):
            out = out + jnp.einsum('bhwc,oc->bhwo',
                                   xp[:, i:i + H, j:j + W, :], w[:, :, i, j],
                                   precision="highest")
    return out + b


def ref_decoder_forward(params, x_nchw, stage_outputs):
    x = jnp.transpose(x_nchw, (0, 2, 3, 1)).astype(jnp.float32)

    def cat(x, s):
        hw = math.isqrt(s.shape[1])
        return jnp.concatenate(
            [x, s.reshape(s.shape[0], hw, hw, s.shape[2])], axis=-1)

    x = _ref_conv_transpose2x2(x, *params["upsample1"])
    x = _ref_conv3x3(cat(x, stage_outputs[-1]), *params["conv1"])
    x = _ref_conv_transpose2x2(x, *params["upsample2"])
    x = _ref_conv3x3(cat(x, stage_outputs[-2]), *params["conv2"])
    x = _ref_conv_transpose2x2(x, *params["upsample3"])
    x = _ref_conv3x3(cat(x, stage_outputs[-3]), *params["conv3"])
    for w, b in params["final"]:
        x = _ref_conv_transpose2x2(x, w, b)
    return jnp.transpose(jnp.tanh(x), (0, 3, 1, 2))


# ----------------------------------------------------------------------------
if __name__ == "__main__":
    key = jax.random.PRNGKey(0)
    keys = jax.random.split(key, 5)

    B = 2
    in_channs = 32
    output_channels = 3
    patch_size = 4
    H = W = 2

    x = jax.random.normal(keys[0], (B, in_channs, H, W), jnp.float32)
    # stage_outputs[-1]: tokens at 2x spatial, channels = in_channs // 2, etc.
    s_m1 = jax.random.normal(keys[1], (B, (2 * H) * (2 * W), in_channs // 2),
                             jnp.float32)
    s_m2 = jax.random.normal(keys[2], (B, (4 * H) * (4 * W), in_channs // 4),
                             jnp.float32)
    s_m3 = jax.random.normal(keys[3], (B, (8 * H) * (8 * W), in_channs // 8),
                             jnp.float32)
    stage_outputs = [s_m3, s_m2, s_m1]

    params = init_decoder_params(keys[4], in_channs, output_channels, patch_size)

    fwd = jax.jit(decoder_forward)
    out = jax.block_until_ready(fwd(params, x, stage_outputs))

    expected = (B, output_channels, 8 * H * patch_size, 8 * W * patch_size)
    assert out.shape == expected, (out.shape, expected)
    assert bool(jnp.all(jnp.abs(out) <= 1.0)), "tanh output out of range"

    # Cross-check against an independent plain-JAX f32 reference (kernel path
    # uses bf16 inputs, so a loose tolerance).
    ref = ref_decoder_forward(params, x, stage_outputs)
    max_err = float(jnp.max(jnp.abs(out.astype(jnp.float32) - ref)))
    assert max_err < 0.2, f"mismatch vs reference: max_err={max_err}"

    print("KERNEL_OK")
</pallas_src>

<mosaic_0001>
module attributes {stable_mosaic.version = 11 : i64} {
  func.func @_matmul_bias_kernel(%arg0: i32, %arg1: memref<8x32xbf16, #tpu.memory_space<vmem>>, %arg2: memref<32x64xbf16, #tpu.memory_space<vmem>>, %arg3: memref<1x64xf32, #tpu.memory_space<vmem>>, %arg4: memref<8x64xbf16, #tpu.memory_space<vmem>>) attributes {dimension_semantics = [#tpu.dimension_semantics<parallel>], iteration_bounds = array<i64: 1>, scalar_prefetch = 0 : i64, scratch_operands = 0 : i64, tpu.core_type = #tpu.core_type<tc>, window_params = [{transform_indices = @transform_0, window_bounds = array<i64: 8, 32>}, {pipeline_mode = #tpu.pipeline_mode<synchronous>, transform_indices = @transform_1, window_bounds = array<i64: 32, 64>}, {pipeline_mode = #tpu.pipeline_mode<synchronous>, transform_indices = @transform_2, window_bounds = array<i64: 1, 64>}, {transform_indices = @transform_3, window_bounds = array<i64: 8, 64>}]} {
    %c0 = arith.constant 0 : index
    %c0_0 = arith.constant 0 : index
    %0 = vector.load %arg1[%c0, %c0_0] : memref<8x32xbf16, #tpu.memory_space<vmem>>, vector<8x32xbf16>
    %c0_1 = arith.constant 0 : index
    %c0_2 = arith.constant 0 : index
    %1 = vector.load %arg2[%c0_1, %c0_2] : memref<32x64xbf16, #tpu.memory_space<vmem>>, vector<32x64xbf16>
    %cst = arith.constant dense<0.000000e+00> : vector<8x64xf32>
    %2 = tpu.matmul %0, %1, %cst {dimension_numbers = #tpu.dot_dimension_numbers<[1], [0], [0], [1], [0, 0, 1, 1], [], []>} : vector<8x32xbf16>, vector<32x64xbf16>, vector<8x64xf32> -> vector<8x64xf32>
    %c0_3 = arith.constant 0 : index
    %c0_4 = arith.constant 0 : index
    %3 = vector.load %arg3[%c0_3, %c0_4] : memref<1x64xf32, #tpu.memory_space<vmem>>, vector<1x64xf32>
    %4 = vector.broadcast %3 : vector<1x64xf32> to vector<8x64xf32>
    %5 = arith.addf %2, %4 : vector<8x64xf32>
    %6 = arith.truncf %5 : vector<8x64xf32> to vector<8x64xbf16>
    %c0_5 = arith.constant 0 : index
    %c0_6 = arith.constant 0 : index
    %7 = vector.load %arg4[%c0_5, %c0_6] : memref<8x64xbf16, #tpu.memory_space<vmem>>, vector<8x64xbf16>
    tpu.vector_store %arg4[%c0_5, %c0_6], %6 {strides = array<i32>} : memref<8x64xbf16, #tpu.memory_space<vmem>>, vector<8x64xbf16>,
    return
  }
  func.func @transform_0(%arg0: i32) -> (i32, i32) {
    %c0_i32 = arith.constant 0 : i32
    %c0_i32_0 = arith.constant 0 : i32
    return %arg0, %c0_i32 : i32, i32
  }
  func.func @transform_1(%arg0: i32) -> (i32, i32) {
    %c0_i32 = arith.constant 0 : i32
    %c0_i32_0 = arith.constant 0 : i32
    %c0_i32_1 = arith.constant 0 : i32
    return %c0_i32, %c0_i32_0 : i32, i32
  }
  func.func @transform_2(%arg0: i32) -> (i32, i32) {
    %c0_i32 = arith.constant 0 : i32
    %c0_i32_0 = arith.constant 0 : i32
    %c0_i32_1 = arith.constant 0 : i32
    return %c0_i32, %c0_i32_0 : i32, i32
  }
  func.func @transform_3(%arg0: i32) -> (i32, i32) {
    %c0_i32 = arith.constant 0 : i32
    %c0_i32_0 = arith.constant 0 : i32
    return %arg0, %c0_i32 : i32, i32
  }
}

module attributes {stable_mosaic.version = 11 : i64} {
  func.func @_matmul_bias_kernel(%arg0: i32, %arg1: memref<32x16xbf16, #tpu.memory_space<vmem>>, %arg2: memref<16x32xbf16, #tpu.memory_space<vmem>>, %arg3: memref<1x32xf32, #tpu.memory_space<vmem>>, %arg4: memref<32x32xbf16, #tpu.memory_space<vmem>>) attributes {dimension_semantics = [#tpu.dimension_semantics<parallel>], iteration_bounds = array<i64: 1>, scalar_prefetch = 0 : i64, scratch_operands = 0 : i64, tpu.core_type = #tpu.core_type<tc>, window_params = [{transform_indices = @transform_0, window_bounds = array<i64: 32, 16>}, {pipeline_mode = #tpu.pipeline_mode<synchronous>, transform_indices = @transform_1, window_bounds = array<i64: 16, 32>}, {pipeline_mode = #tpu.pipeline_mode<synchronous>, transform_indices = @transform_2, window_bounds = array<i64: 1, 32>}, {transform_indices = @transform_3, window_bounds = array<i64: 32, 32>}]} {
    %c0 = arith.constant 0 : index
    %c0_0 = arith.constant 0 : index
    %0 = vector.load %arg1[%c0, %c0_0] : memref<32x16xbf16, #tpu.memory_space<vmem>>, vector<32x16xbf16>
    %c0_1 = arith.constant 0 : index
    %c0_2 = arith.constant 0 : index
    %1 = vector.load %arg2[%c0_1, %c0_2] : memref<16x32xbf16, #tpu.memory_space<vmem>>, vector<16x32xbf16>
    %cst = arith.constant dense<0.000000e+00> : vector<32x32xf32>
    %2 = tpu.matmul %0, %1, %cst {dimension_numbers = #tpu.dot_dimension_numbers<[1], [0], [0], [1], [0, 0, 1, 1], [], []>} : vector<32x16xbf16>, vector<16x32xbf16>, vector<32x32xf32> -> vector<32x32xf32>
    %c0_3 = arith.constant 0 : index
    %c0_4 = arith.constant 0 : index
    %3 = vector.load %arg3[%c0_3, %c0_4] : memref<1x32xf32, #tpu.memory_space<vmem>>, vector<1x32xf32>
    %4 = vector.broadcast %3 : vector<1x32xf32> to vector<32x32xf32>
    %5 = arith.addf %2, %4 : vector<32x32xf32>
    %6 = arith.truncf %5 : vector<32x32xf32> to vector<32x32xbf16>
    %c0_5 = arith.constant 0 : index
    %c0_6 = arith.constant 0 : index
    %7 = vector.load %arg4[%c0_5, %c0_6] : memref<32x32xbf16, #tpu.memory_space<vmem>>, vector<32x32xbf16>
    tpu.vector_store %arg4[%c0_5, %c0_6], %6 {strides = array<i32>} : memref<32x32xbf16, #tpu.memory_space<vmem>>, vector<32x32xbf16>,
    return
  }
  func.func @transform_0(%arg0: i32) -> (i32, i32) {
    %c0_i32 = arith.constant 0 : i32
    %c0_i32_0 = arith.constant 0 : i32
    return %arg0, %c0_i32 : i32, i32
  }
  func.func @transform_1(%arg0: i32) -> (i32, i32) {
    %c0_i32 = arith.constant 0 : i32
    %c0_i32_0 = arith.constant 0 : i32
    %c0_i32_1 = arith.constant 0 : i32
    return %c0_i32, %c0_i32_0 : i32, i32
  }
  func.func @transform_2(%arg0: i32) -> (i32, i32) {
    %c0_i32 = arith.constant 0 : i32
    %c0_i32_0 = arith.constant 0 : i32
    %c0_i32_1 = arith.constant 0 : i32
    return %c0_i32, %c0_i32_0 : i32, i32
  }
  func.func @transform_3(%arg0: i32) -> (i32, i32) {
    %c0_i32 = arith.constant 0 : i32
    %c0_i32_0 = arith.constant 0 : i32
    return %arg0, %c0_i32 : i32, i32
  }
}

module attributes {stable_mosaic.version = 11 : i64} {
  func.func @_conv3x3_fused_kernel(%arg0: i32, %arg1: memref<1x6x6x16xbf16, #tpu.memory_space<vmem>>, %arg2: memref<1x6x6x16xbf16, #tpu.memory_space<vmem>>, %arg3: memref<9x16x16xbf16, #tpu.memory_space<vmem>>, %arg4: memref<9x16x16xbf16, #tpu.memory_space<vmem>>, %arg5: memref<1x16xf32, #tpu.memory_space<vmem>>, %arg6: memref<1x4x4x16xbf16, #tpu.memory_space<vmem>>) attributes {dimension_semantics = [#tpu.dimension_semantics<parallel>], iteration_bounds = array<i64: 2>, scalar_prefetch = 0 : i64, scratch_operands = 0 : i64, tpu.core_type = #tpu.core_type<tc>, window_params = [{transform_indices = @transform_0, window_bounds = array<i64: 1, 6, 6, 16>}, {transform_indices = @transform_1, window_bounds = array<i64: 1, 6, 6, 16>}, {pipeline_mode = #tpu.pipeline_mode<synchronous>, transform_indices = @transform_2, window_bounds = array<i64: 9, 16, 16>}, {pipeline_mode = #tpu.pipeline_mode<synchronous>, transform_indices = @transform_3, window_bounds = array<i64: 9, 16, 16>}, {pipeline_mode = #tpu.pipeline_mode<synchronous>, transform_indices = @transform_4, window_bounds = array<i64: 1, 16>}, {transform_indices = @transform_5, window_bounds = array<i64: 1, 4, 4, 16>}]} {
    %c0 = arith.constant 0 : index
    %c0_0 = arith.constant 0 : index
    %0 = vector.load %arg5[%c0, %c0_0] : memref<1x16xf32, #tpu.memory_space<vmem>>, vector<1x16xf32>
    %c0_i32 = arith.constant 0 : i32
    %c4_i32 = arith.constant 4 : i32
    %1 = arith.addi %c0_i32, %c4_i32 : i32
    %c1_i32 = arith.constant 1 : i32
    scf.for %arg7 = %c0_i32 to %1 step %c1_i32  : i32 {
      %cst = arith.constant 0.000000e+00 : f32
      %2 = vector.broadcast %cst : f32 to vector<4x16xf32>
      %c0_i32_2 = arith.constant 0 : i32
      %3 = arith.addi %arg7, %c0_i32_2 : i32
      %c0_3 = arith.constant 0 : index
      %4 = arith.index_cast %3 : i32 to index
      %c0_4 = arith.constant 0 : index
      %c0_5 = arith.constant 0 : index
      %5 = vector.load %arg1[%c0_3, %4, %c0_4, %c0_5] : memref<1x6x6x16xbf16, #tpu.memory_space<vmem>>, vector<1x1x6x16xbf16>
      %6 = vector.shape_cast %5 : vector<1x1x6x16xbf16> to vector<6x16xbf16>
      %c0_i32_6 = arith.constant 0 : i32
      %7 = arith.addi %arg7, %c0_i32_6 : i32
      %c0_7 = arith.constant 0 : index
      %8 = arith.index_cast %7 : i32 to index
      %c0_8 = arith.constant 0 : index
      %c0_9 = arith.constant 0 : index
      %9 = vector.load %arg2[%c0_7, %8, %c0_8, %c0_9] : memref<1x6x6x16xbf16, #tpu.memory_space<vmem>>, vector<1x1x6x16xbf16>
      %10 = vector.shape_cast %9 : vector<1x1x6x16xbf16> to vector<6x16xbf16>
      %11 = vector.extract_strided_slice %6 {offsets = [0, 0], sizes = [4, 16], strides = [1, 1]} : vector<6x16xbf16> to vector<4x16xbf16>
      %c0_10 = arith.constant 0 : index
      %c0_11 = arith.constant 0 : index
      %c0_12 = arith.constant 0 : index
      %12 = vector.load %arg3[%c0_10, %c0_11, %c0_12] : memref<9x16x16xbf16, #tpu.memory_space<vmem>>, vector<1x16x16xbf16>
      %13 = vector.shape_cast %12 : vector<1x16x16xbf16> to vector<16x16xbf16>
      %cst_13 = arith.constant dense<0.000000e+00> : vector<4x16xf32>
      %14 = tpu.matmul %11, %13, %cst_13 {dimension_numbers = #tpu.dot_dimension_numbers<[1], [0], [0], [1], [0, 0, 1, 1], [], []>} : vector<4x16xbf16>, vector<16x16xbf16>, vector<4x16xf32> -> vector<4x16xf32>
      %15 = arith.addf %2, %14 : vector<4x16xf32>
      %16 = vector.extract_strided_slice %10 {offsets = [0, 0], sizes = [4, 16], strides = [1, 1]} : vector<6x16xbf16> to vector<4x16xbf16>
      %c0_14 = arith.constant 0 : index
      %c0_15 = arith.constant 0 : index
      %c0_16 = arith.constant 0 : index
      %17 = vector.load %arg4[%c0_14, %c0_15, %c0_16] : memref<9x16x16xbf16, #tpu.memory_space<vmem>>, vector<1x16x16xbf16>
      %18 = vector.shape_cast %17 : vector<1x16x16xbf16> to vector<16x16xbf16>
      %cst_17 = arith.constant dense<0.000000e+00> : vector<4x16xf32>
      %19 = tpu.matmul %16, %18, %cst_17 {dimension_numbers = #tpu.dot_dimension_numbers<[1], [0], [0], [1], [0, 0, 1, 1], [], []>} : vector<4x16xbf16>, vector<16x16xbf16>, vector<4x16xf32> -> vector<4x16xf32>
      %20 = arith.addf %15, %19 : vector<4x16xf32>
      %21 = vector.extract_strided_slice %6 {offsets = [1, 0], sizes = [4, 16], strides = [1, 1]} : vector<6x16xbf16> to vector<4x16xbf16>
      %c1 = arith.constant 1 : index
      %c0_18 = arith.constant 0 : index
      %c0_19 = arith.constant 0 : index
      %22 = vector.load %arg3[%c1, %c0_18, %c0_19] : memref<9x16x16xbf16, #tpu.memory_space<vmem>>, vector<1x16x16xbf16>
      %23 = vector.shape_cast %22 : vector<1x16x16xbf16> to vector<16x16xbf16>
      %cst_20 = arith.constant dense<0.000000e+00> : vector<4x16xf32>
      %24 = tpu.matmul %21, %23, %cst_20 {dimension_numbers = #tpu.dot_dimension_numbers<[1], [0], [0], [1], [0, 0, 1, 1], [], []>} : vector<4x16xbf16>, vector<16x16xbf16>, vector<4x16xf32> -> vector<4x16xf32>
      %25 = arith.addf %20, %24 : vector<4x16xf32>
      %26 = vector.extract_strided_slice %10 {offsets = [1, 0], sizes = [4, 16], strides = [1, 1]} : vector<6x16xbf16> to vector<4x16xbf16>
      %c1_21 = arith.constant 1 : index
      %c0_22 = arith.constant 0 : index
      %c0_23 = arith.constant 0 : index
      %27 = vector.load %arg4[%c1_21, %c0_22, %c0_23] : memref<9x16x16xbf16, #tpu.memory_space<vmem>>, vector<1x16x16xbf16>
      %28 = vector.shape_cast %27 : vector<1x16x16xbf16> to vector<16x16xbf16>
      %cst_24 = arith.constant dense<0.000000e+00> : vector<4x16xf32>
      %29 = tpu.matmul %26, %28, %cst_24 {dimension_numbers = #tpu.dot_dimension_numbers<[1], [0], [0], [1], [0, 0, 1, 1], [], []>} : vector<4x16xbf16>, vector<16x16xbf16>, vector<4x16xf32> -> vector<4x16xf32>
      %30 = arith.addf %25, %29 : vector<4x16xf32>
      %31 = vector.extract_strided_slice %6 {offsets = [2, 0], sizes = [4, 16], strides = [1, 1]} : vector<6x16xbf16> to vector<4x16xbf16>
      %c2 = arith.constant 2 : index
      %c0_25 = arith.constant 0 : index
      %c0_26 = arith.constant 0 : index
      %32 = vector.load %arg3[%c2, %c0_25, %c0_26] : memref<9x16x16xbf16, #tpu.memory_space<vmem>>, vector<1x16x16xbf16>
      %33 = vector.shape_cast %32 : vector<1x16x16xbf16> to vector<16x16xbf16>
      %cst_27 = arith.constant dense<0.000000e+00> : vector<4x16xf32>
      %34 = tpu.matmul %31, %33, %cst_27 {dimension_numbers = #tpu.dot_dimension_numbers<[1], [0], [0], [1], [0, 0, 1, 1], [], []>} : vector<4x16xbf16>, vector<16x16xbf16>, vector<4x16xf32> -> vector<4x16xf32>
      %35 = arith.addf %30, %34 : vector<4x16xf32>
      %36 = vector.extract_strided_slice %10 {offsets = [2, 0], sizes = [4, 16], strides = [1, 1]} : vector<6x16xbf16> to vector<4x16xbf16>
      %c2_28 = arith.constant 2 : index
      %c0_29 = arith.constant 0 : index
      %c0_30 = arith.constant 0 : index
      %37 = vector.load %arg4[%c2_28, %c0_29, %c0_30] : memref<9x16x16xbf16, #tpu.memory_space<vmem>>, vector<1x16x16xbf16>
      %38 = vector.shape_cast %37 : vector<1x16x16xbf16> to vector<16x16xbf16>
      %cst_31 = arith.constant dense<0.000000e+00> : vector<4x16xf32>
      %39 = tpu.matmul %36, %38, %cst_31 {dimension_numbers = #tpu.dot_dimension_numbers<[1], [0], [0], [1], [0, 0, 1, 1], [], []>} : vector<4x16xbf16>, vector<16x16xbf16>, vector<4x16xf32> -> vector<4x16xf32>
      %40 = arith.addf %35, %39 : vector<4x16xf32>
      %c1_i32_32 = arith.constant 1 : i32
      %41 = arith.addi %arg7, %c1_i32_32 : i32
      %c0_33 = arith.constant 0 : index
      %42 = arith.index_cast %41 : i32 to index
      %c0_34 = arith.constant 0 : index
      %c0_35 = arith.constant 0 : index
      %43 = vector.load %arg1[%c0_33, %42, %c0_34, %c0_35] : memref<1x6x6x16xbf16, #tpu.memory_space<vmem>>, vector<1x1x6x16xbf16>
      %44 = vector.shape_cast %43 : vector<1x1x6x16xbf16> to vector<6x16xbf16>
      %c1_i32_36 = arith.constant 1 : i32
      %45 = arith.addi %arg7, %c1_i32_36 : i32
      %c0_37 = arith.constant 0 : index
      %46 = arith.index_cast %45 : i32 to index
      %c0_38 = arith.constant 0 : index
      %c0_39 = arith.constant 0 : index
      %47 = vector.load %arg2[%c0_37, %46, %c0_38, %c0_39] : memref<1x6x6x16xbf16, #tpu.memory_space<vmem>>, vector<1x1x6x16xbf16>
      %48 = vector.shape_cast %47 : vector<1x1x6x16xbf16> to vector<6x16xbf16>
      %49 = vector.extract_strided_slice %44 {offsets = [0, 0], sizes = [4, 16], strides = [1, 1]} : vector<6x16xbf16> to vector<4x16xbf16>
      %c3 = arith.constant 3 : index
      %c0_40 = arith.constant 0 : index
      %c0_41 = arith.constant 0 : index
      %50 = vector.load %arg3[%c3, %c0_40, %c0_41] : memref<9x16x16xbf16, #tpu.memory_space<vmem>>, vector<1x16x16xbf16>
      %51 = vector.shape_cast %50 : vector<1x16x16xbf16> to vector<16x16xbf16>
      %cst_42 = arith.constant dense<0.000000e+00> : vector<4x16xf32>
      %52 = tpu.matmul %49, %51, %cst_42 {dimension_numbers = #tpu.dot_dimension_numbers<[1], [0], [0], [1], [0, 0, 1, 1], [], []>} : vector<4x16xbf16>, vector<16x16xbf16>, vector<4x16xf32> -> vector<4x16xf32>
      %53 = arith.addf %40, %52 : vector<4x16xf32>
      %54 = vector.extract_strided_slice %48 {offsets = [0, 0], sizes = [4, 16], strides = [1, 1]} : vector<6x16xbf16> to vector<4x16xbf16>
      %c3_43 = arith.constant 3 : index
      %c0_44 = arith.constant 0 : index
      %c0_45 = arith.constant 0 : index
      %55 = vector.load %arg4[%c3_43, %c0_44, %c0_45] : memref<9x16x16xbf16, #tpu.memory_space<vmem>>, vector<1x16x16xbf16>
      %56 = vector.shape_cast %55 : vector<1x16x16xbf16> to vector<16x16xbf16>
      %cst_46 = arith.constant dense<0.000000e+00> : vector<4x16xf32>
      %57 = tpu.matmul %54, %56, %cst_46 {dimension_numbers = #tpu.dot_dimension_numbers<[1], [0], [0], [1], [0, 0, 1, 1], [], []>} : vector<4x16xbf16>, vector<16x16xbf16>, vector<4x16xf32> -> vector<4x16xf32>
      %58 = arith.addf %53, %57 : vector<4x16xf32>
      %59 = vector.extract_strided_slice %44 {offsets = [1, 0], sizes = [4, 16], strides = [1, 1]} : vector<6x16xbf16> to vector<4x16xbf16>
      %c4 = arith.constant 4 : index
      %c0_47 = arith.constant 0 : index
      %c0_48 = arith.constant 0 : index
      %60 = vector.load %arg3[%c4, %c0_47, %c0_48] : memref<9x16x16xbf16, #tpu.memory_space<vmem>>, vector<1x16x16xbf16>
      %61 = vector.shape_cast %60 : vector<1x16x16xbf16> to vector<16x16xbf16>
      %cst_49 = arith.constant dense<0.000000e+00> : vector<4x16xf32>
      %62 = tpu.matmul %59, %61, %cst_49 {dimension_numbers = #tpu.dot_dimension_numbers<[1], [0], [0], [1], [0, 0, 1, 1], [], []>} : vector<4x16xbf16>, vector<16x16xbf16>, vector<4x16xf32> -> vector<4x16xf32>
      %63 = arith.addf %58, %62 : vector<4x16xf32>
      %64 = vector.extract_strided_slice %48 {offsets = [1, 0], sizes = [4, 16], strides = [1, 1]} : vector<6x16xbf16> to vector<4x16xbf16>
      %c4_50 = arith.constant 4 : index
      %c0_51 = arith.constant 0 : index
      %c0_52 = arith.constant 0 : index
      %65 = vector.load %arg4[%c4_50, %c0_51, %c0_52] : memref<9x16x16xbf16, #tpu.memory_space<vmem>>, vector<1x16x16xbf16>
      %66 = vector.shape_cast %65 : vector<1x16x16xbf16> to vector<16x16xbf16>
      %cst_53 = arith.constant dense<0.000000e+00> : vector<4x16xf32>
      %67 = tpu.matmul %64, %66, %cst_53 {dimension_numbers = #tpu.dot_dimension_numbers<[1], [0], [0], [1], [0, 0, 1, 1], [], []>} : vector<4x16xbf16>, vector<16x16xbf16>, vector<4x16xf32> -> vector<4x16xf32>
      %68 = arith.addf %63, %67 : vector<4x16xf32>
      %69 = vector.extract_strided_slice %44 {offsets = [2, 0], sizes = [4, 16], strides = [1, 1]} : vector<6x16xbf16> to vector<4x16xbf16>
      %c5 = arith.constant 5 : index
      %c0_54 = arith.constant 0 : index
      %c0_55 = arith.constant 0 : index
      %70 = vector.load %arg3[%c5, %c0_54, %c0_55] : memref<9x16x16xbf16, #tpu.memory_space<vmem>>, vector<1x16x16xbf16>
      %71 = vector.shape_cast %70 : vector<1x16x16xbf16> to vector<16x16xbf16>
      %cst_56 = arith.constant dense<0.000000e+00> : vector<4x16xf32>
      %72 = tpu.matmul %69, %71, %cst_56 {dimension_numbers = #tpu.dot_dimension_numbers<[1], [0], [0], [1], [0, 0, 1, 1], [], []>} : vector<4x16xbf16>, vector<16x16xbf16>, vector<4x16xf32> -> vector<4x16xf32>
      %73 = arith.addf %68, %72 : vector<4x16xf32>
      %74 = vector.extract_strided_slice %48 {offsets = [2, 0], sizes = [4, 16], strides = [1, 1]} : vector<6x16xbf16> to vector<4x16xbf16>
      %c5_57 = arith.constant 5 : index
      %c0_58 = arith.constant 0 : index
      %c0_59 = arith.constant 0 : index
      %75 = vector.load %arg4[%c5_57, %c0_58, %c0_59] : memref<9x16x16xbf16, #tpu.memory_space<vmem>>, vector<1x16x16xbf16>
      %76 = vector.shape_cast %75 : vector<1x16x16xbf16> to vector<16x16xbf16>
      %cst_60 = arith.constant dense<0.000000e+00> : vector<4x16xf32>
      %77 = tpu.matmul %74, %76, %cst_60 {dimension_numbers = #tpu.dot_dimension_numbers<[1], [0], [0], [1], [0, 0, 1, 1], [], []>} : vector<4x16xbf16>, vector<16x16xbf16>, vector<4x16xf32> -> vector<4x16xf32>
      %78 = arith.addf %73, %77 : vector<4x16xf32>
      %c2_i32 = arith.constant 2 : i32
      %79 = arith.addi %arg7, %c2_i32 : i32
      %c0_61 = arith.constant 0 : index
      %80 = arith.index_cast %79 : i32 to index
      %c0_62 = arith.constant 0 : index
      %c0_63 = arith.constant 0 : index
      %81 = vector.load %arg1[%c0_61, %80, %c0_62, %c0_63] : memref<1x6x6x16xbf16, #tpu.memory_space<vmem>>, vector<1x1x6x16xbf16>
      %82 = vector.shape_cast %81 : vector<1x1x6x16xbf16> to vector<6x16xbf16>
      %c2_i32_64 = arith.constant 2 : i32
      %83 = arith.addi %arg7, %c2_i32_64 : i32
      %c0_65 = arith.constant 0 : index
      %84 = arith.index_cast %83 : i32 to index
      %c0_66 = arith.constant 0 : index
      %c0_67 = arith.constant 0 : index
      %85 = vector.load %arg2[%c0_65, %84, %c0_66, %c0_67] : memref<1x6x6x16xbf16, #tpu.memory_space<vmem>>, vector<1x1x6x16xbf16>
      %86 = vector.shape_cast %85 : vector<1x1x6x16xbf16> to vector<6x16xbf16>
      %87 = vector.extract_strided_slice %82 {offsets = [0, 0], sizes = [4, 16], strides = [1, 1]} : vector<6x16xbf16> to vector<4x16xbf16>
      %c6 = arith.constant 6 : index
      %c0_68 = arith.constant 0 : index
      %c0_69 = arith.constant 0 : index
      %88 = vector.load %arg3[%c6, %c0_68, %c0_69] : memref<9x16x16xbf16, #tpu.memory_space<vmem>>, vector<1x16x16xbf16>
      %89 = vector.shape_cast %88 : vector<1x16x16xbf16> to vector<16x16xbf16>
      %cst_70 = arith.constant dense<0.000000e+00> : vector<4x16xf32>
      %90 = tpu.matmul %87, %89, %cst_70 {dimension_numbers = #tpu.dot_dimension_numbers<[1], [0], [0], [1], [0, 0, 1, 1], [], []>} : vector<4x16xbf16>, vector<16x16xbf16>, vector<4x16xf32> -> vector<4x16xf32>
      %91 = arith.addf %78, %90 : vector<4x16xf32>
      %92 = vector.extract_strided_slice %86 {offsets = [0, 0], sizes = [4, 16], strides = [1, 1]} : vector<6x16xbf16> to vector<4x16xbf16>
      %c6_71 = arith.constant 6 : index
      %c0_72 = arith.constant 0 : index
      %c0_73 = arith.constant 0 : index
      %93 = vector.load %arg4[%c6_71, %c0_72, %c0_73] : memref<9x16x16xbf16, #tpu.memory_space<vmem>>, vector<1x16x16xbf16>
      %94 = vector.shape_cast %93 : vector<1x16x16xbf16> to vector<16x16xbf16>
      %cst_74 = arith.constant dense<0.000000e+00> : vector<4x16xf32>
      %95 = tpu.matmul %92, %94, %cst_74 {dimension_numbers = #tpu.dot_dimension_numbers<[1], [0], [0], [1], [0, 0, 1, 1], [], []>} : vector<4x16xbf16>, vector<16x16xbf16>, vector<4x16xf32> -> vector<4x16xf32>
      %96 = arith.addf %91, %95 : vector<4x16xf32>
      %97 = vector.extract_strided_slice %82 {offsets = [1, 0], sizes = [4, 16], strides = [1, 1]} : vector<6x16xbf16> to vector<4x16xbf16>
      %c7 = arith.constant 7 : index
      %c0_75 = arith.constant 0 : index
      %c0_76 = arith.constant 0 : index
      %98 = vector.load %arg3[%c7, %c0_75, %c0_76] : memref<9x16x16xbf16, #tpu.memory_space<vmem>>, vector<1x16x16xbf16>
      %99 = vector.shape_cast %98 : vector<1x16x16xbf16> to vector<16x16xbf16>
      %cst_77 = arith.constant dense<0.000000e+00> : vector<4x16xf32>
      %100 = tpu.matmul %97, %99, %cst_77 {dimension_numbers = #tpu.dot_dimension_numbers<[1], [0], [0], [1], [0, 0, 1, 1], [], []>} : vector<4x16xbf16>, vector<16x16xbf16>, vector<4x16xf32> -> vector<4x16xf32>
      %101 = arith.addf %96, %100 : vector<4x16xf32>
      %102 = vector.extract_strided_slice %86 {offsets = [1, 0], sizes = [4, 16], strides = [1, 1]} : vector<6x16xbf16> to vector<4x16xbf16>
      %c7_78 = arith.constant 7 : index
      %c0_79 = arith.constant 0 : index
      %c0_80 = arith.constant 0 : index
      %103 = vector.load %arg4[%c7_78, %c0_79, %c0_80] : memref<9x16x16xbf16, #tpu.memory_space<vmem>>, vector<1x16x16xbf16>
      %104 = vector.shape_cast %103 : vector<1x16x16xbf16> to vector<16x16xbf16>
      %cst_81 = arith.constant dense<0.000000e+00> : vector<4x16xf32>
      %105 = tpu.matmul %102, %104, %cst_81 {dimension_numbers = #tpu.dot_dimension_numbers<[1], [0], [0], [1], [0, 0, 1, 1], [], []>} : vector<4x16xbf16>, vector<16x16xbf16>, vector<4x16xf32> -> vector<4x16xf32>
      %106 = arith.addf %101, %105 : vector<4x16xf32>
      %107 = vector.extract_strided_slice %82 {offsets = [2, 0], sizes = [4, 16], strides = [1, 1]} : vector<6x16xbf16> to vector<4x16xbf16>
      %c8 = arith.constant 8 : index
      %c0_82 = arith.constant 0 : index
      %c0_83 = arith.constant 0 : index
      %108 = vector.load %arg3[%c8, %c0_82, %c0_83] : memref<9x16x16xbf16, #tpu.memory_space<vmem>>, vector<1x16x16xbf16>
      %109 = vector.shape_cast %108 : vector<1x16x16xbf16> to vector<16x16xbf16>
      %cst_84 = arith.constant dense<0.000000e+00> : vector<4x16xf32>
      %110 = tpu.matmul %107, %109, %cst_84 {dimension_numbers = #tpu.dot_dimension_numbers<[1], [0], [0], [1], [0, 0, 1, 1], [], []>} : vector<4x16xbf16>, vector<16x16xbf16>, vector<4x16xf32> -> vector<4x16xf32>
      %111 = arith.addf %106, %110 : vector<4x16xf32>
      %112 = vector.extract_strided_slice %86 {offsets = [2, 0], sizes = [4, 16], strides = [1, 1]} : vector<6x16xbf16> to vector<4x16xbf16>
      %c8_85 = arith.constant 8 : index
      %c0_86 = arith.constant 0 : index
      %c0_87 = arith.constant 0 : index
      %113 = vector.load %arg4[%c8_85, %c0_86, %c0_87] : memref<9x16x16xbf16, #tpu.memory_space<vmem>>, vector<1x16x16xbf16>
      %114 = vector.shape_cast %113 : vector<1x16x16xbf16> to vector<16x16xbf16>
      %cst_88 = arith.constant dense<0.000000e+00> : vector<4x16xf32>
      %115 = tpu.matmul %112, %114, %cst_88 {dimension_numbers = #tpu.dot_dimension_numbers<[1], [0], [0], [1], [0, 0, 1, 1], [], []>} : vector<4x16xbf16>, vector<16x16xbf16>, vector<4x16xf32> -> vector<4x16xf32>
      %116 = arith.addf %111, %115 : vector<4x16xf32>
      %117 = vector.broadcast %0 : vector<1x16xf32> to vector<4x16xf32>
      %118 = arith.addf %116, %117 : vector<4x16xf32>
      %119 = arith.truncf %118 : vector<4x16xf32> to vector<4x16xbf16>
      %c0_89 = arith.constant 0 : index
      %120 = arith.index_cast %arg7 : i32 to index
      %c0_90 = arith.constant 0 : index
      %c0_91 = arith.constant 0 : index
      %121 = vector.load %arg6[%c0_89, %120, %c0_90, %c0_91] : memref<1x4x4x16xbf16, #tpu.memory_space<vmem>>, vector<1x1x4x16xbf16>
      %122 = vector.shape_cast %121 : vector<1x1x4x16xbf16> to vector<4x16xbf16>
      %123 = vector.shape_cast %119 : vector<4x16xbf16> to vector<1x1x4x16xbf16>
      tpu.vector_store %arg6[%c0_89, %120, %c0_90, %c0_91], %123 {strides = array<i32>} : memref<1x4x4x16xbf16, #tpu.memory_space<vmem>>, vector<1x1x4x16xbf16>,
    }
    %c4_i32_1 = arith.constant 4 : i32
    return
  }
  func.func @transform_0(%arg0: i32) -> (i32, i32, i32, i32) {
    %c0_i32 = arith.constant 0 : i32
    %c0_i32_0 = arith.constant 0 : i32
    %c0_i32_1 = arith.constant 0 : i32
    %c0_i32_2 = arith.constant 0 : i32
    return %arg0, %c0_i32, %c0_i32_0, %c0_i32_1 : i32, i32, i32, i32
  }
  func.func @transform_1(%arg0: i32) -> (i32, i32, i32, i32) {
    %c0_i32 = arith.constant 0 : i32
    %c0_i32_0 = arith.constant 0 : i32
    %c0_i32_1 = arith.constant 0 : i32
    %c0_i32_2 = arith.constant 0 : i32
    return %arg0, %c0_i32, %c0_i32_0, %c0_i32_1 : i32, i32, i32, i32
  }
  func.func @transform_2(%arg0: i32) -> (i32, i32, i32) {
    %c0_i32 = arith.constant 0 : i32
    %c0_i32_0 = arith.constant 0 : i32
    %c0_i32_1 = arith.constant 0 : i32
    %c0_i32_2 = arith.constant 0 : i32
    return %c0_i32, %c0_i32_0, %c0_i32_1 : i32, i32, i32
  }
  func.func @transform_3(%arg0: i32) -> (i32, i32, i32) {
    %c0_i32 = arith.constant 0 : i32
    %c0_i32_0 = arith.constant 0 : i32
    %c0_i32_1 = arith.constant 0 : i32
    %c0_i32_2 = arith.constant 0 : i32
    return %c0_i32, %c0_i32_0, %c0_i32_1 : i32, i32, i32
  }
  func.func @transform_4(%arg0: i32) -> (i32, i32) {
    %c0_i32 = arith.constant 0 : i32
    %c0_i32_0 = arith.constant 0 : i32
    %c0_i32_1 = arith.constant 0 : i32
    return %c0_i32, %c0_i32_0 : i32, i32
  }
  func.func @transform_5(%arg0: i32) -> (i32, i32, i32, i32) {
    %c0_i32 = arith.constant 0 : i32
    %c0_i32_0 = arith.constant 0 : i32
    %c0_i32_1 = arith.constant 0 : i32
    %c0_i32_2 = arith.constant 0 : i32
    return %arg0, %c0_i32, %c0_i32_0, %c0_i32_1 : i32, i32, i32, i32
  }
}

module attributes {stable_mosaic.version = 11 : i64} {
  func.func @_conv3x3_fused_kernel(%arg0: i32, %arg1: memref<1x10x10x8xbf16, #tpu.memory_space<vmem>>, %arg2: memref<1x10x10x8xbf16, #tpu.memory_space<vmem>>, %arg3: memref<9x8x8xbf16, #tpu.memory_space<vmem>>, %arg4: memref<9x8x8xbf16, #tpu.memory_space<vmem>>, %arg5: memref<1x8xf32, #tpu.memory_space<vmem>>, %arg6: memref<1x8x8x8xbf16, #tpu.memory_space<vmem>>) attributes {dimension_semantics = [#tpu.dimension_semantics<parallel>], iteration_bounds = array<i64: 2>, scalar_prefetch = 0 : i64, scratch_operands = 0 : i64, tpu.core_type = #tpu.core_type<tc>, window_params = [{transform_indices = @transform_0, window_bounds = array<i64: 1, 10, 10, 8>}, {transform_indices = @transform_1, window_bounds = array<i64: 1, 10, 10, 8>}, {pipeline_mode = #tpu.pipeline_mode<synchronous>, transform_indices = @transform_2, window_bounds = array<i64: 9, 8, 8>}, {pipeline_mode = #tpu.pipeline_mode<synchronous>, transform_indices = @transform_3, window_bounds = array<i64: 9, 8, 8>}, {pipeline_mode = #tpu.pipeline_mode<synchronous>, transform_indices = @transform_4, window_bounds = array<i64: 1, 8>}, {transform_indices = @transform_5, window_bounds = array<i64: 1, 8, 8, 8>}]} {
    %c0 = arith.constant 0 : index
    %c0_0 = arith.constant 0 : index
    %0 = vector.load %arg5[%c0, %c0_0] : memref<1x8xf32, #tpu.memory_space<vmem>>, vector<1x8xf32>
    %c0_i32 = arith.constant 0 : i32
    %c8_i32 = arith.constant 8 : i32
    %1 = arith.addi %c0_i32, %c8_i32 : i32
    %c1_i32 = arith.constant 1 : i32
    scf.for %arg7 = %c0_i32 to %1 step %c1_i32  : i32 {
      %cst = arith.constant 0.000000e+00 : f32
      %2 = vector.broadcast %cst : f32 to vector<8x8xf32>
      %c0_i32_2 = arith.constant 0 : i32
      %3 = arith.addi %arg7, %c0_i32_2 : i32
      %c0_3 = arith.constant 0 : index
      %4 = arith.index_cast %3 : i32 to index
      %c0_4 = arith.constant 0 : index
      %c0_5 = arith.constant 0 : index
      %5 = vector.load %arg1[%c0_3, %4, %c0_4, %c0_5] : memref<1x10x10x8xbf16, #tpu.memory_space<vmem>>, vector<1x1x10x8xbf16>
      %6 = vector.shape_cast %5 : vector<1x1x10x8xbf16> to vector<10x8xbf16>
      %c0_i32_6 = arith.constant 0 : i32
      %7 = arith.addi %arg7, %c0_i32_6 : i32
      %c0_7 = arith.constant 0 : index
      %8 = arith.index_cast %7 : i32 to index
      %c0_8 = arith.constant 0 : index
      %c0_9 = arith.constant 0 : index
      %9 = vector.load %arg2[%c0_7, %8, %c0_8, %c0_9] : memref<1x10x10x8xbf16, #tpu.memory_space<vmem>>, vector<1x1x10x8xbf16>
      %10 = vector.shape_cast %9 : vector<1x1x10x8xbf16> to vector<10x8xbf16>
      %11 = vector.extract_strided_slice %6 {offsets = [0, 0], sizes = [8, 8], strides = [1, 1]} : vector<10x8xbf16> to vector<8x8xbf16>
      %c0_10 = arith.constant 0 : index
      %c0_11 = arith.constant 0 : index
      %c0_12 = arith.constant 0 : index
      %12 = vector.load %arg3[%c0_10, %c0_11, %c0_12] : memref<9x8x8xbf16, #tpu.memory_space<vmem>>, vector<1x8x8xbf16>
      %13 = vector.shape_cast %12 : vector<1x8x8xbf16> to vector<8x8xbf16>
      %cst_13 = arith.constant dense<0.000000e+00> : vector<8x8xf32>
      %14 = tpu.matmul %11, %13, %cst_13 {dimension_numbers = #tpu.dot_dimension_numbers<[1], [0], [0], [1], [0, 0, 1, 1], [], []>} : vector<8x8xbf16>, vector<8x8xbf16>, vector<8x8xf32> -> vector<8x8xf32>
      %15 = arith.addf %2, %14 : vector<8x8xf32>
      %16 = vector.extract_strided_slice %10 {offsets = [0, 0], sizes = [8, 8], strides = [1, 1]} : vector<10x8xbf16> to vector<8x8xbf16>
      %c0_14 = arith.constant 0 : index
      %c0_15 = arith.constant 0 : index
      %c0_16 = arith.constant 0 : index
      %17 = vector.load %arg4[%c0_14, %c0_15, %c0_16] : memref<9x8x8xbf16, #tpu.memory_space<vmem>>, vector<1x8x8xbf16>
      %18 = vector.shape_cast %17 : vector<1x8x8xbf16> to vector<8x8xbf16>
      %cst_17 = arith.constant dense<0.000000e+00> : vector<8x8xf32>
      %19 = tpu.matmul %16, %18, %cst_17 {dimension_numbers = #tpu.dot_dimension_numbers<[1], [0], [0], [1], [0, 0, 1, 1], [], []>} : vector<8x8xbf16>, vector<8x8xbf16>, vector<8x8xf32> -> vector<8x8xf32>
      %20 = arith.addf %15, %19 : vector<8x8xf32>
      %21 = vector.extract_strided_slice %6 {offsets = [1, 0], sizes = [8, 8], strides = [1, 1]} : vector<10x8xbf16> to vector<8x8xbf16>
      %c1 = arith.constant 1 : index
      %c0_18 = arith.constant 0 : index
      %c0_19 = arith.constant 0 : index
      %22 = vector.load %arg3[%c1, %c0_18, %c0_19] : memref<9x8x8xbf16, #tpu.memory_space<vmem>>, vector<1x8x8xbf16>
      %23 = vector.shape_cast %22 : vector<1x8x8xbf16> to vector<8x8xbf16>
      %cst_20 = arith.constant dense<0.000000e+00> : vector<8x8xf32>
      %24 = tpu.matmul %21, %23, %cst_20 {dimension_numbers = #tpu.dot_dimension_numbers<[1], [0], [0], [1], [0, 0, 1, 1], [], []>} : vector<8x8xbf16>, vector<8x8xbf16>, vector<8x8xf32> -> vector<8x8xf32>
      %25 = arith.addf %20, %24 : vector<8x8xf32>
      %26 = vector.extract_strided_slice %10 {offsets = [1, 0], sizes = [8, 8], strides = [1, 1]} : vector<10x8xbf16> to vector<8x8xbf16>
      %c1_21 = arith.constant 1 : index
      %c0_22 = arith.constant 0 : index
      %c0_23 = arith.constant 0 : index
      %27 = vector.load %arg4[%c1_21, %c0_22, %c0_23] : memref<9x8x8xbf16, #tpu.memory_space<vmem>>, vector<1x8x8xbf16>
      %28 = vector.shape_cast %27 : vector<1x8x8xbf16> to vector<8x8xbf16>
      %cst_24 = arith.constant dense<0.000000e+00> : vector<8x8xf32>
      %29 = tpu.matmul %26, %28, %cst_24 {dimension_numbers = #tpu.dot_dimension_numbers<[1], [0], [0], [1], [0, 0, 1, 1], [], []>} : vector<8x8xbf16>, vector<8x8xbf16>, vector<8x8xf32> -> vector<8x8xf32>
      %30 = arith.addf %25, %29 : vector<8x8xf32>
      %31 = vector.extract_strided_slice %6 {offsets = [2, 0], sizes = [8, 8], strides = [1, 1]} : vector<10x8xbf16> to vector<8x8xbf16>
      %c2 = arith.constant 2 : index
      %c0_25 = arith.constant 0 : index
      %c0_26 = arith.constant 0 : index
      %32 = vector.load %arg3[%c2, %c0_25, %c0_26] : memref<9x8x8xbf16, #tpu.memory_space<vmem>>, vector<1x8x8xbf16>
      %33 = vector.shape_cast %32 : vector<1x8x8xbf16> to vector<8x8xbf16>
      %cst_27 = arith.constant dense<0.000000e+00> : vector<8x8xf32>
      %34 = tpu.matmul %31, %33, %cst_27 {dimension_numbers = #tpu.dot_dimension_numbers<[1], [0], [0], [1], [0, 0, 1, 1], [], []>} : vector<8x8xbf16>, vector<8x8xbf16>, vector<8x8xf32> -> vector<8x8xf32>
      %35 = arith.addf %30, %34 : vector<8x8xf32>
      %36 = vector.extract_strided_slice %10 {offsets = [2, 0], sizes = [8, 8], strides = [1, 1]} : vector<10x8xbf16> to vector<8x8xbf16>
      %c2_28 = arith.constant 2 : index
      %c0_29 = arith.constant 0 : index
      %c0_30 = arith.constant 0 : index
      %37 = vector.load %arg4[%c2_28, %c0_29, %c0_30] : memref<9x8x8xbf16, #tpu.memory_space<vmem>>, vector<1x8x8xbf16>
      %38 = vector.shape_cast %37 : vector<1x8x8xbf16> to vector<8x8xbf16>
      %cst_31 = arith.constant dense<0.000000e+00> : vector<8x8xf32>
      %39 = tpu.matmul %36, %38, %cst_31 {dimension_numbers = #tpu.dot_dimension_numbers<[1], [0], [0], [1], [0, 0, 1, 1], [], []>} : vector<8x8xbf16>, vector<8x8xbf16>, vector<8x8xf32> -> vector<8x8xf32>
      %40 = arith.addf %35, %39 : vector<8x8xf32>
      %c1_i32_32 = arith.constant 1 : i32
      %41 = arith.addi %arg7, %c1_i32_32 : i32
      %c0_33 = arith.constant 0 : index
      %42 = arith.index_cast %41 : i32 to index
      %c0_34 = arith.constant 0 : index
      %c0_35 = arith.constant 0 : index
      %43 = vector.load %arg1[%c0_33, %42, %c0_34, %c0_35] : memref<1x10x10x8xbf16, #tpu.memory_space<vmem>>, vector<1x1x10x8xbf16>
      %44 = vector.shape_cast %43 : vector<1x1x10x8xbf16> to vector<10x8xbf16>
      %c1_i32_36 = arith.constant 1 : i32
      %45 = arith.addi %arg7, %c1_i32_36 : i32
      %c0_37 = arith.constant 0 : index
      %46 = arith.index_cast %45 : i32 to index
      %c0_38 = arith.constant 0 : index
      %c0_39 = arith.constant 0 : index
      %47 = vector.load %arg2[%c0_37, %46, %c0_38, %c0_39] : memref<1x10x10x8xbf16, #tpu.memory_space<vmem>>, vector<1x1x10x8xbf16>
      %48 = vector.shape_cast %47 : vector<1x1x10x8xbf16> to vector<10x8xbf16>
      %49 = vector.extract_strided_slice %44 {offsets = [0, 0], sizes = [8, 8], strides = [1, 1]} : vector<10x8xbf16> to vector<8x8xbf16>
      %c3 = arith.constant 3 : index
      %c0_40 = arith.constant 0 : index
      %c0_41 = arith.constant 0 : index
      %50 = vector.load %arg3[%c3, %c0_40, %c0_41] : memref<9x8x8xbf16, #tpu.memory_space<vmem>>, vector<1x8x8xbf16>
      %51 = vector.shape_cast %50 : vector<1x8x8xbf16> to vector<8x8xbf16>
      %cst_42 = arith.constant dense<0.000000e+00> : vector<8x8xf32>
      %52 = tpu.matmul %49, %51, %cst_42 {dimension_numbers = #tpu.dot_dimension_numbers<[1], [0], [0], [1], [0, 0, 1, 1], [], []>} : vector<8x8xbf16>, vector<8x8xbf16>, vector<8x8xf32> -> vector<8x8xf32>
      %53 = arith.addf %40, %52 : vector<8x8xf32>
      %54 = vector.extract_strided_slice %48 {offsets = [0, 0], sizes = [8, 8], strides = [1, 1]} : vector<10x8xbf16> to vector<8x8xbf16>
      %c3_43 = arith.constant 3 : index
      %c0_44 = arith.constant 0 : index
      %c0_45 = arith.constant 0 : index
      %55 = vector.load %arg4[%c3_43, %c0_44, %c0_45] : memref<9x8x8xbf16, #tpu.memory_space<vmem>>, vector<1x8x8xbf16>
      %56 = vector.shape_cast %55 : vector<1x8x8xbf16> to vector<8x8xbf16>
      %cst_46 = arith.constant dense<0.000000e+00> : vector<8x8xf32>
      %57 = tpu.matmul %54, %56, %cst_46 {dimension_numbers = #tpu.dot_dimension_numbers<[1], [0], [0], [1], [0, 0, 1, 1], [], []>} : vector<8x8xbf16>, vector<8x8xbf16>, vector<8x8xf32> -> vector<8x8xf32>
      %58 = arith.addf %53, %57 : vector<8x8xf32>
      %59 = vector.extract_strided_slice %44 {offsets = [1, 0], sizes = [8, 8], strides = [1, 1]} : vector<10x8xbf16> to vector<8x8xbf16>
      %c4 = arith.constant 4 : index
      %c0_47 = arith.constant 0 : index
      %c0_48 = arith.constant 0 : index
      %60 = vector.load %arg3[%c4, %c0_47, %c0_48] : memref<9x8x8xbf16, #tpu.memory_space<vmem>>, vector<1x8x8xbf16>
      %61 = vector.shape_cast %60 : vector<1x8x8xbf16> to vector<8x8xbf16>
      %cst_49 = arith.constant dense<0.000000e+00> : vector<8x8xf32>
      %62 = tpu.matmul %59, %61, %cst_49 {dimension_numbers = #tpu.dot_dimension_numbers<[1], [0], [0], [1], [0, 0, 1, 1], [], []>} : vector<8x8xbf16>, vector<8x8xbf16>, vector<8x8xf32> -> vector<8x8xf32>
      %63 = arith.addf %58, %62 : vector<8x8xf32>
      %64 = vector.extract_strided_slice %48 {offsets = [1, 0], sizes = [8, 8], strides = [1, 1]} : vector<10x8xbf16> to vector<8x8xbf16>
      %c4_50 = arith.constant 4 : index
      %c0_51 = arith.constant 0 : index
      %c0_52 = arith.constant 0 : index
      %65 = vector.load %arg4[%c4_50, %c0_51, %c0_52] : memref<9x8x8xbf16, #tpu.memory_space<vmem>>, vector<1x8x8xbf16>
      %66 = vector.shape_cast %65 : vector<1x8x8xbf16> to vector<8x8xbf16>
      %cst_53 = arith.constant dense<0.000000e+00> : vector<8x8xf32>
      %67 = tpu.matmul %64, %66, %cst_53 {dimension_numbers = #tpu.dot_dimension_numbers<[1], [0], [0], [1], [0, 0, 1, 1], [], []>} : vector<8x8xbf16>, vector<8x8xbf16>, vector<8x8xf32> -> vector<8x8xf32>
      %68 = arith.addf %63, %67 : vector<8x8xf32>
      %69 = vector.extract_strided_slice %44 {offsets = [2, 0], sizes = [8, 8], strides = [1, 1]} : vector<10x8xbf16> to vector<8x8xbf16>
      %c5 = arith.constant 5 : index
      %c0_54 = arith.constant 0 : index
      %c0_55 = arith.constant 0 : index
      %70 = vector.load %arg3[%c5, %c0_54, %c0_55] : memref<9x8x8xbf16, #tpu.memory_space<vmem>>, vector<1x8x8xbf16>
      %71 = vector.shape_cast %70 : vector<1x8x8xbf16> to vector<8x8xbf16>
      %cst_56 = arith.constant dense<0.000000e+00> : vector<8x8xf32>
      %72 = tpu.matmul %69, %71, %cst_56 {dimension_numbers = #tpu.dot_dimension_numbers<[1], [0], [0], [1], [0, 0, 1, 1], [], []>} : vector<8x8xbf16>, vector<8x8xbf16>, vector<8x8xf32> -> vector<8x8xf32>
      %73 = arith.addf %68, %72 : vector<8x8xf32>
      %74 = vector.extract_strided_slice %48 {offsets = [2, 0], sizes = [8, 8], strides = [1, 1]} : vector<10x8xbf16> to vector<8x8xbf16>
      %c5_57 = arith.constant 5 : index
      %c0_58 = arith.constant 0 : index
      %c0_59 = arith.constant 0 : index
      %75 = vector.load %arg4[%c5_57, %c0_58, %c0_59] : memref<9x8x8xbf16, #tpu.memory_space<vmem>>, vector<1x8x8xbf16>
      %76 = vector.shape_cast %75 : vector<1x8x8xbf16> to vector<8x8xbf16>
      %cst_60 = arith.constant dense<0.000000e+00> : vector<8x8xf32>
      %77 = tpu.matmul %74, %76, %cst_60 {dimension_numbers = #tpu.dot_dimension_numbers<[1], [0], [0], [1], [0, 0, 1, 1], [], []>} : vector<8x8xbf16>, vector<8x8xbf16>, vector<8x8xf32> -> vector<8x8xf32>
      %78 = arith.addf %73, %77 : vector<8x8xf32>
      %c2_i32 = arith.constant 2 : i32
      %79 = arith.addi %arg7, %c2_i32 : i32
      %c0_61 = arith.constant 0 : index
      %80 = arith.index_cast %79 : i32 to index
      %c0_62 = arith.constant 0 : index
      %c0_63 = arith.constant 0 : index
      %81 = vector.load %arg1[%c0_61, %80, %c0_62, %c0_63] : memref<1x10x10x8xbf16, #tpu.memory_space<vmem>>, vector<1x1x10x8xbf16>
      %82 = vector.shape_cast %81 : vector<1x1x10x8xbf16> to vector<10x8xbf16>
      %c2_i32_64 = arith.constant 2 : i32
      %83 = arith.addi %arg7, %c2_i32_64 : i32
      %c0_65 = arith.constant 0 : index
      %84 = arith.index_cast %83 : i32 to index
      %c0_66 = arith.constant 0 : index
      %c0_67 = arith.constant 0 : index
      %85 = vector.load %arg2[%c0_65, %84, %c0_66, %c0_67] : memref<1x10x10x8xbf16, #tpu.memory_space<vmem>>, vector<1x1x10x8xbf16>
      %86 = vector.shape_cast %85 : vector<1x1x10x8xbf16> to vector<10x8xbf16>
      %87 = vector.extract_strided_slice %82 {offsets = [0, 0], sizes = [8, 8], strides = [1, 1]} : vector<10x8xbf16> to vector<8x8xbf16>
      %c6 = arith.constant 6 : index
      %c0_68 = arith.constant 0 : index
      %c0_69 = arith.constant 0 : index
      %88 = vector.load %arg3[%c6, %c0_68, %c0_69] : memref<9x8x8xbf16, #tpu.memory_space<vmem>>, vector<1x8x8xbf16>
      %89 = vector.shape_cast %88 : vector<1x8x8xbf16> to vector<8x8xbf16>
      %cst_70 = arith.constant dense<0.000000e+00> : vector<8x8xf32>
      %90 = tpu.matmul %87, %89, %cst_70 {dimension_numbers = #tpu.dot_dimension_numbers<[1], [0], [0], [1], [0, 0, 1, 1], [], []>} : vector<8x8xbf16>, vector<8x8xbf16>, vector<8x8xf32> -> vector<8x8xf32>
      %91 = arith.addf %78, %90 : vector<8x8xf32>
      %92 = vector.extract_strided_slice %86 {offsets = [0, 0], sizes = [8, 8], strides = [1, 1]} : vector<10x8xbf16> to vector<8x8xbf16>
      %c6_71 = arith.constant 6 : index
      %c0_72 = arith.constant 0 : index
      %c0_73 = arith.constant 0 : index
      %93 = vector.load %arg4[%c6_71, %c0_72, %c0_73] : memref<9x8x8xbf16, #tpu.memory_space<vmem>>, vector<1x8x8xbf16>
      %94 = vector.shape_cast %93 : vector<1x8x8xbf16> to vector<8x8xbf16>
      %cst_74 = arith.constant dense<0.000000e+00> : vector<8x8xf32>
      %95 = tpu.matmul %92, %94, %cst_74 {dimension_numbers = #tpu.dot_dimension_numbers<[1], [0], [0], [1], [0, 0, 1, 1], [], []>} : vector<8x8xbf16>, vector<8x8xbf16>, vector<8x8xf32> -> vector<8x8xf32>
      %96 = arith.addf %91, %95 : vector<8x8xf32>
      %97 = vector.extract_strided_slice %82 {offsets = [1, 0], sizes = [8, 8], strides = [1, 1]} : vector<10x8xbf16> to vector<8x8xbf16>
      %c7 = arith.constant 7 : index
      %c0_75 = arith.constant 0 : index
      %c0_76 = arith.constant 0 : index
      %98 = vector.load %arg3[%c7, %c0_75, %c0_76] : memref<9x8x8xbf16, #tpu.memory_space<vmem>>, vector<1x8x8xbf16>
      %99 = vector.shape_cast %98 : vector<1x8x8xbf16> to vector<8x8xbf16>
      %cst_77 = arith.constant dense<0.000000e+00> : vector<8x8xf32>
      %100 = tpu.matmul %97, %99, %cst_77 {dimension_numbers = #tpu.dot_dimension_numbers<[1], [0], [0], [1], [0, 0, 1, 1], [], []>} : vector<8x8xbf16>, vector<8x8xbf16>, vector<8x8xf32> -> vector<8x8xf32>
      %101 = arith.addf %96, %100 : vector<8x8xf32>
      %102 = vector.extract_strided_slice %86 {offsets = [1, 0], sizes = [8, 8], strides = [1, 1]} : vector<10x8xbf16> to vector<8x8xbf16>
      %c7_78 = arith.constant 7 : index
      %c0_79 = arith.constant 0 : index
      %c0_80 = arith.constant 0 : index
      %103 = vector.load %arg4[%c7_78, %c0_79, %c0_80] : memref<9x8x8xbf16, #tpu.memory_space<vmem>>, vector<1x8x8xbf16>
      %104 = vector.shape_cast %103 : vector<1x8x8xbf16> to vector<8x8xbf16>
      %cst_81 = arith.constant dense<0.000000e+00> : vector<8x8xf32>
      %105 = tpu.matmul %102, %104, %cst_81 {dimension_numbers = #tpu.dot_dimension_numbers<[1], [0], [0], [1], [0, 0, 1, 1], [], []>} : vector<8x8xbf16>, vector<8x8xbf16>, vector<8x8xf32> -> vector<8x8xf32>
      %106 = arith.addf %101, %105 : vector<8x8xf32>
      %107 = vector.extract_strided_slice %82 {offsets = [2, 0], sizes = [8, 8], strides = [1, 1]} : vector<10x8xbf16> to vector<8x8xbf16>
      %c8 = arith.constant 8 : index
      %c0_82 = arith.constant 0 : index
      %c0_83 = arith.constant 0 : index
      %108 = vector.load %arg3[%c8, %c0_82, %c0_83] : memref<9x8x8xbf16, #tpu.memory_space<vmem>>, vector<1x8x8xbf16>
      %109 = vector.shape_cast %108 : vector<1x8x8xbf16> to vector<8x8xbf16>
      %cst_84 = arith.constant dense<0.000000e+00> : vector<8x8xf32>
      %110 = tpu.matmul %107, %109, %cst_84 {dimension_numbers = #tpu.dot_dimension_numbers<[1], [0], [0], [1], [0, 0, 1, 1], [], []>} : vector<8x8xbf16>, vector<8x8xbf16>, vector<8x8xf32> -> vector<8x8xf32>
      %111 = arith.addf %106, %110 : vector<8x8xf32>
      %112 = vector.extract_strided_slice %86 {offsets = [2, 0], sizes = [8, 8], strides = [1, 1]} : vector<10x8xbf16> to vector<8x8xbf16>
      %c8_85 = arith.constant 8 : index
      %c0_86 = arith.constant 0 : index
      %c0_87 = arith.constant 0 : index
      %113 = vector.load %arg4[%c8_85, %c0_86, %c0_87] : memref<9x8x8xbf16, #tpu.memory_space<vmem>>, vector<1x8x8xbf16>
      %114 = vector.shape_cast %113 : vector<1x8x8xbf16> to vector<8x8xbf16>
      %cst_88 = arith.constant dense<0.000000e+00> : vector<8x8xf32>
      %115 = tpu.matmul %112, %114, %cst_88 {dimension_numbers = #tpu.dot_dimension_numbers<[1], [0], [0], [1], [0, 0, 1, 1], [], []>} : vector<8x8xbf16>, vector<8x8xbf16>, vector<8x8xf32> -> vector<8x8xf32>
      %116 = arith.addf %111, %115 : vector<8x8xf32>
      %117 = vector.broadcast %0 : vector<1x8xf32> to vector<8x8xf32>
      %118 = arith.addf %116, %117 : vector<8x8xf32>
      %119 = arith.truncf %118 : vector<8x8xf32> to vector<8x8xbf16>
      %c0_89 = arith.constant 0 : index
      %120 = arith.index_cast %arg7 : i32 to index
      %c0_90 = arith.constant 0 : index
      %c0_91 = arith.constant 0 : index
      %121 = vector.load %arg6[%c0_89, %120, %c0_90, %c0_91] : memref<1x8x8x8xbf16, #tpu.memory_space<vmem>>, vector<1x1x8x8xbf16>
      %122 = vector.shape_cast %121 : vector<1x1x8x8xbf16> to vector<8x8xbf16>
      %123 = vector.shape_cast %119 : vector<8x8xbf16> to vector<1x1x8x8xbf16>
      tpu.vector_store %arg6[%c0_89, %120, %c0_90, %c0_91], %123 {strides = array<i32>} : memref<1x8x8x8xbf16, #tpu.memory_space<vmem>>, vector<1x1x8x8xbf16>,
    }
    %c8_i32_1 = arith.constant 8 : i32
    return
  }
  func.func @transform_0(%arg0: i32) -> (i32, i32, i32, i32) {
    %c0_i32 = arith.constant 0 : i32
    %c0_i32_0 = arith.constant 0 : i32
    %c0_i32_1 = arith.constant 0 : i32
    %c0_i32_2 = arith.constant 0 : i32
    return %arg0, %c0_i32, %c0_i32_0, %c0_i32_1 : i32, i32, i32, i32
  }
  func.func @transform_1(%arg0: i32) -> (i32, i32, i32, i32) {
    %c0_i32 = arith.constant 0 : i32
    %c0_i32_0 = arith.constant 0 : i32
    %c0_i32_1 = arith.constant 0 : i32
    %c0_i32_2 = arith.constant 0 : i32
    return %arg0, %c0_i32, %c0_i32_0, %c0_i32_1 : i32, i32, i32, i32
  }
  func.func @transform_2(%arg0: i32) -> (i32, i32, i32) {
    %c0_i32 = arith.constant 0 : i32
    %c0_i32_0 = arith.constant 0 : i32
    %c0_i32_1 = arith.constant 0 : i32
    %c0_i32_2 = arith.constant 0 : i32
    return %c0_i32, %c0_i32_0, %c0_i32_1 : i32, i32, i32
  }
  func.func @transform_3(%arg0: i32) -> (i32, i32, i32) {
    %c0_i32 = arith.constant 0 : i32
    %c0_i32_0 = arith.constant 0 : i32
    %c0_i32_1 = arith.constant 0 : i32
    %c0_i32_2 = arith.constant 0 : i32
    return %c0_i32, %c0_i32_0, %c0_i32_1 : i32, i32, i32
  }
  func.func @transform_4(%arg0: i32) -> (i32, i32) {
    %c0_i32 = arith.constant 0 : i32
    %c0_i32_0 = arith.constant 0 : i32
    %c0_i32_1 = arith.constant 0 : i32
    return %c0_i32, %c0_i32_0 : i32, i32
  }
  func.func @transform_5(%arg0: i32) -> (i32, i32, i32, i32) {
    %c0_i32 = arith.constant 0 : i32
    %c0_i32_0 = arith.constant 0 : i32
    %c0_i32_1 = arith.constant 0 : i32
    %c0_i32_2 = arith.constant 0 : i32
    return %arg0, %c0_i32, %c0_i32_0, %c0_i32_1 : i32, i32, i32, i32
  }
}

module attributes {stable_mosaic.version = 11 : i64} {
  func.func @_matmul_bias_kernel(%arg0: i32, %arg1: memref<128x8xbf16, #tpu.memory_space<vmem>>, %arg2: memref<8x16xbf16, #tpu.memory_space<vmem>>, %arg3: memref<1x16xf32, #tpu.memory_space<vmem>>, %arg4: memref<128x16xbf16, #tpu.memory_space<vmem>>) attributes {dimension_semantics = [#tpu.dimension_semantics<parallel>], iteration_bounds = array<i64: 1>, scalar_prefetch = 0 : i64, scratch_operands = 0 : i64, tpu.core_type = #tpu.core_type<tc>, window_params = [{transform_indices = @transform_0, window_bounds = array<i64: 128, 8>}, {pipeline_mode = #tpu.pipeline_mode<synchronous>, transform_indices = @transform_1, window_bounds = array<i64: 8, 16>}, {pipeline_mode = #tpu.pipeline_mode<synchronous>, transform_indices = @transform_2, window_bounds = array<i64: 1, 16>}, {transform_indices = @transform_3, window_bounds = array<i64: 128, 16>}]} {
    %c0 = arith.constant 0 : index
    %c0_0 = arith.constant 0 : index
    %0 = vector.load %arg1[%c0, %c0_0] : memref<128x8xbf16, #tpu.memory_space<vmem>>, vector<128x8xbf16>
    %c0_1 = arith.constant 0 : index
    %c0_2 = arith.constant 0 : index
    %1 = vector.load %arg2[%c0_1, %c0_2] : memref<8x16xbf16, #tpu.memory_space<vmem>>, vector<8x16xbf16>
    %cst = arith.constant dense<0.000000e+00> : vector<128x16xf32>
    %2 = tpu.matmul %0, %1, %cst {dimension_numbers = #tpu.dot_dimension_numbers<[1], [0], [0], [1], [0, 0, 1, 1], [], []>} : vector<128x8xbf16>, vector<8x16xbf16>, vector<128x16xf32> -> vector<128x16xf32>
    %c0_3 = arith.constant 0 : index
    %c0_4 = arith.constant 0 : index
    %3 = vector.load %arg3[%c0_3, %c0_4] : memref<1x16xf32, #tpu.memory_space<vmem>>, vector<1x16xf32>
    %4 = vector.broadcast %3 : vector<1x16xf32> to vector<128x16xf32>
    %5 = arith.addf %2, %4 : vector<128x16xf32>
    %6 = arith.truncf %5 : vector<128x16xf32> to vector<128x16xbf16>
    %c0_5 = arith.constant 0 : index
    %c0_6 = arith.constant 0 : index
    %7 = vector.load %arg4[%c0_5, %c0_6] : memref<128x16xbf16, #tpu.memory_space<vmem>>, vector<128x16xbf16>
    tpu.vector_store %arg4[%c0_5, %c0_6], %6 {strides = array<i32>} : memref<128x16xbf16, #tpu.memory_space<vmem>>, vector<128x16xbf16>,
    return
  }
  func.func @transform_0(%arg0: i32) -> (i32, i32) {
    %c0_i32 = arith.constant 0 : i32
    %c0_i32_0 = arith.constant 0 : i32
    return %arg0, %c0_i32 : i32, i32
  }
  func.func @transform_1(%arg0: i32) -> (i32, i32) {
    %c0_i32 = arith.constant 0 : i32
    %c0_i32_0 = arith.constant 0 : i32
    %c0_i32_1 = arith.constant 0 : i32
    return %c0_i32, %c0_i32_0 : i32, i32
  }
  func.func @transform_2(%arg0: i32) -> (i32, i32) {
    %c0_i32 = arith.constant 0 : i32
    %c0_i32_0 = arith.constant 0 : i32
    %c0_i32_1 = arith.constant 0 : i32
    return %c0_i32, %c0_i32_0 : i32, i32
  }
  func.func @transform_3(%arg0: i32) -> (i32, i32) {
    %c0_i32 = arith.constant 0 : i32
    %c0_i32_0 = arith.constant 0 : i32
    return %arg0, %c0_i32 : i32, i32
  }
}

module attributes {stable_mosaic.version = 11 : i64} {
  func.func @_conv3x3_fused_kernel(%arg0: i32, %arg1: memref<1x18x18x4xbf16, #tpu.memory_space<vmem>>, %arg2: memref<1x18x18x4xbf16, #tpu.memory_space<vmem>>, %arg3: memref<9x4x4xbf16, #tpu.memory_space<vmem>>, %arg4: memref<9x4x4xbf16, #tpu.memory_space<vmem>>, %arg5: memref<1x4xf32, #tpu.memory_space<vmem>>, %arg6: memref<1x16x16x4xbf16, #tpu.memory_space<vmem>>) attributes {dimension_semantics = [#tpu.dimension_semantics<parallel>], iteration_bounds = array<i64: 2>, scalar_prefetch = 0 : i64, scratch_operands = 0 : i64, tpu.core_type = #tpu.core_type<tc>, window_params = [{transform_indices = @transform_0, window_bounds = array<i64: 1, 18, 18, 4>}, {transform_indices = @transform_1, window_bounds = array<i64: 1, 18, 18, 4>}, {pipeline_mode = #tpu.pipeline_mode<synchronous>, transform_indices = @transform_2, window_bounds = array<i64: 9, 4, 4>}, {pipeline_mode = #tpu.pipeline_mode<synchronous>, transform_indices = @transform_3, window_bounds = array<i64: 9, 4, 4>}, {pipeline_mode = #tpu.pipeline_mode<synchronous>, transform_indices = @transform_4, window_bounds = array<i64: 1, 4>}, {transform_indices = @transform_5, window_bounds = array<i64: 1, 16, 16, 4>}]} {
    %c0 = arith.constant 0 : index
    %c0_0 = arith.constant 0 : index
    %0 = vector.load %arg5[%c0, %c0_0] : memref<1x4xf32, #tpu.memory_space<vmem>>, vector<1x4xf32>
    %c0_i32 = arith.constant 0 : i32
    %c16_i32 = arith.constant 16 : i32
    %1 = arith.addi %c0_i32, %c16_i32 : i32
    %c1_i32 = arith.constant 1 : i32
    scf.for %arg7 = %c0_i32 to %1 step %c1_i32  : i32 {
      %cst = arith.constant 0.000000e+00 : f32
      %2 = vector.broadcast %cst : f32 to vector<16x4xf32>
      %c0_i32_2 = arith.constant 0 : i32
      %3 = arith.addi %arg7, %c0_i32_2 : i32
      %c0_3 = arith.constant 0 : index
      %4 = arith.index_cast %3 : i32 to index
      %c0_4 = arith.constant 0 : index
      %c0_5 = arith.constant 0 : index
      %5 = vector.load %arg1[%c0_3, %4, %c0_4, %c0_5] : memref<1x18x18x4xbf16, #tpu.memory_space<vmem>>, vector<1x1x18x4xbf16>
      %6 = vector.shape_cast %5 : vector<1x1x18x4xbf16> to vector<18x4xbf16>
      %c0_i32_6 = arith.constant 0 : i32
      %7 = arith.addi %arg7, %c0_i32_6 : i32
      %c0_7 = arith.constant 0 : index
      %8 = arith.index_cast %7 : i32 to index
      %c0_8 = arith.constant 0 : index
      %c0_9 = arith.constant 0 : index
      %9 = vector.load %arg2[%c0_7, %8, %c0_8, %c0_9] : memref<1x18x18x4xbf16, #tpu.memory_space<vmem>>, vector<1x1x18x4xbf16>
      %10 = vector.shape_cast %9 : vector<1x1x18x4xbf16> to vector<18x4xbf16>
      %11 = vector.extract_strided_slice %6 {offsets = [0, 0], sizes = [16, 4], strides = [1, 1]} : vector<18x4xbf16> to vector<16x4xbf16>
      %c0_10 = arith.constant 0 : index
      %c0_11 = arith.constant 0 : index
      %c0_12 = arith.constant 0 : index
      %12 = vector.load %arg3[%c0_10, %c0_11, %c0_12] : memref<9x4x4xbf16, #tpu.memory_space<vmem>>, vector<1x4x4xbf16>
      %13 = vector.shape_cast %12 : vector<1x4x4xbf16> to vector<4x4xbf16>
      %cst_13 = arith.constant dense<0.000000e+00> : vector<16x4xf32>
      %14 = tpu.matmul %11, %13, %cst_13 {dimension_numbers = #tpu.dot_dimension_numbers<[1], [0], [0], [1], [0, 0, 1, 1], [], []>} : vector<16x4xbf16>, vector<4x4xbf16>, vector<16x4xf32> -> vector<16x4xf32>
      %15 = arith.addf %2, %14 : vector<16x4xf32>
      %16 = vector.extract_strided_slice %10 {offsets = [0, 0], sizes = [16, 4], strides = [1, 1]} : vector<18x4xbf16> to vector<16x4xbf16>
      %c0_14 = arith.constant 0 : index
      %c0_15 = arith.constant 0 : index
      %c0_16 = arith.constant 0 : index
      %17 = vector.load %arg4[%c0_14, %c0_15, %c0_16] : memref<9x4x4xbf16, #tpu.memory_space<vmem>>, vector<1x4x4xbf16>
      %18 = vector.shape_cast %17 : vector<1x4x4xbf16> to vector<4x4xbf16>
      %cst_17 = arith.constant dense<0.000000e+00> : vector<16x4xf32>
      %19 = tpu.matmul %16, %18, %cst_17 {dimension_numbers = #tpu.dot_dimension_numbers<[1], [0], [0], [1], [0, 0, 1, 1], [], []>} : vector<16x4xbf16>, vector<4x4xbf16>, vector<16x4xf32> -> vector<16x4xf32>
      %20 = arith.addf %15, %19 : vector<16x4xf32>
      %21 = vector.extract_strided_slice %6 {offsets = [1, 0], sizes = [16, 4], strides = [1, 1]} : vector<18x4xbf16> to vector<16x4xbf16>
      %c1 = arith.constant 1 : index
      %c0_18 = arith.constant 0 : index
      %c0_19 = arith.constant 0 : index
      %22 = vector.load %arg3[%c1, %c0_18, %c0_19] : memref<9x4x4xbf16, #tpu.memory_space<vmem>>, vector<1x4x4xbf16>
      %23 = vector.shape_cast %22 : vector<1x4x4xbf16> to vector<4x4xbf16>
      %cst_20 = arith.constant dense<0.000000e+00> : vector<16x4xf32>
      %24 = tpu.matmul %21, %23, %cst_20 {dimension_numbers = #tpu.dot_dimension_numbers<[1], [0], [0], [1], [0, 0, 1, 1], [], []>} : vector<16x4xbf16>, vector<4x4xbf16>, vector<16x4xf32> -> vector<16x4xf32>
      %25 = arith.addf %20, %24 : vector<16x4xf32>
      %26 = vector.extract_strided_slice %10 {offsets = [1, 0], sizes = [16, 4], strides = [1, 1]} : vector<18x4xbf16> to vector<16x4xbf16>
      %c1_21 = arith.constant 1 : index
      %c0_22 = arith.constant 0 : index
      %c0_23 = arith.constant 0 : index
      %27 = vector.load %arg4[%c1_21, %c0_22, %c0_23] : memref<9x4x4xbf16, #tpu.memory_space<vmem>>, vector<1x4x4xbf16>
      %28 = vector.shape_cast %27 : vector<1x4x4xbf16> to vector<4x4xbf16>
      %cst_24 = arith.constant dense<0.000000e+00> : vector<16x4xf32>
      %29 = tpu.matmul %26, %28, %cst_24 {dimension_numbers = #tpu.dot_dimension_numbers<[1], [0], [0], [1], [0, 0, 1, 1], [], []>} : vector<16x4xbf16>, vector<4x4xbf16>, vector<16x4xf32> -> vector<16x4xf32>
      %30 = arith.addf %25, %29 : vector<16x4xf32>
      %31 = vector.extract_strided_slice %6 {offsets = [2, 0], sizes = [16, 4], strides = [1, 1]} : vector<18x4xbf16> to vector<16x4xbf16>
      %c2 = arith.constant 2 : index
      %c0_25 = arith.constant 0 : index
      %c0_26 = arith.constant 0 : index
      %32 = vector.load %arg3[%c2, %c0_25, %c0_26] : memref<9x4x4xbf16, #tpu.memory_space<vmem>>, vector<1x4x4xbf16>
      %33 = vector.shape_cast %32 : vector<1x4x4xbf16> to vector<4x4xbf16>
      %cst_27 = arith.constant dense<0.000000e+00> : vector<16x4xf32>
      %34 = tpu.matmul %31, %33, %cst_27 {dimension_numbers = #tpu.dot_dimension_numbers<[1], [0], [0], [1], [0, 0, 1, 1], [], []>} : vector<16x4xbf16>, vector<4x4xbf16>, vector<16x4xf32> -> vector<16x4xf32>
      %35 = arith.addf %30, %34 : vector<16x4xf32>
      %36 = vector.extract_strided_slice %10 {offsets = [2, 0], sizes = [16, 4], strides = [1, 1]} : vector<18x4xbf16> to vector<16x4xbf16>
      %c2_28 = arith.constant 2 : index
      %c0_29 = arith.constant 0 : index
      %c0_30 = arith.constant 0 : index
      %37 = vector.load %arg4[%c2_28, %c0_29, %c0_30] : memref<9x4x4xbf16, #tpu.memory_space<vmem>>, vector<1x4x4xbf16>
      %38 = vector.shape_cast %37 : vector<1x4x4xbf16> to vector<4x4xbf16>
      %cst_31 = arith.constant dense<0.000000e+00> : vector<16x4xf32>
      %39 = tpu.matmul %36, %38, %cst_31 {dimension_numbers = #tpu.dot_dimension_numbers<[1], [0], [0], [1], [0, 0, 1, 1], [], []>} : vector<16x4xbf16>, vector<4x4xbf16>, vector<16x4xf32> -> vector<16x4xf32>
      %40 = arith.addf %35, %39 : vector<16x4xf32>
      %c1_i32_32 = arith.constant 1 : i32
      %41 = arith.addi %arg7, %c1_i32_32 : i32
      %c0_33 = arith.constant 0 : index
      %42 = arith.index_cast %41 : i32 to index
      %c0_34 = arith.constant 0 : index
      %c0_35 = arith.constant 0 : index
      %43 = vector.load %arg1[%c0_33, %42, %c0_34, %c0_35] : memref<1x18x18x4xbf16, #tpu.memory_space<vmem>>, vector<1x1x18x4xbf16>
      %44 = vector.shape_cast %43 : vector<1x1x18x4xbf16> to vector<18x4xbf16>
      %c1_i32_36 = arith.constant 1 : i32
      %45 = arith.addi %arg7, %c1_i32_36 : i32
      %c0_37 = arith.constant 0 : index
      %46 = arith.index_cast %45 : i32 to index
      %c0_38 = arith.constant 0 : index
      %c0_39 = arith.constant 0 : index
      %47 = vector.load %arg2[%c0_37, %46, %c0_38, %c0_39] : memref<1x18x18x4xbf16, #tpu.memory_space<vmem>>, vector<1x1x18x4xbf16>
      %48 = vector.shape_cast %47 : vector<1x1x18x4xbf16> to vector<18x4xbf16>
      %49 = vector.extract_strided_slice %44 {offsets = [0, 0], sizes = [16, 4], strides = [1, 1]} : vector<18x4xbf16> to vector<16x4xbf16>
      %c3 = arith.constant 3 : index
      %c0_40 = arith.constant 0 : index
      %c0_41 = arith.constant 0 : index
      %50 = vector.load %arg3[%c3, %c0_40, %c0_41] : memref<9x4x4xbf16, #tpu.memory_space<vmem>>, vector<1x4x4xbf16>
      %51 = vector.shape_cast %50 : vector<1x4x4xbf16> to vector<4x4xbf16>
      %cst_42 = arith.constant dense<0.000000e+00> : vector<16x4xf32>
      %52 = tpu.matmul %49, %51, %cst_42 {dimension_numbers = #tpu.dot_dimension_numbers<[1], [0], [0], [1], [0, 0, 1, 1], [], []>} : vector<16x4xbf16>, vector<4x4xbf16>, vector<16x4xf32> -> vector<16x4xf32>
      %53 = arith.addf %40, %52 : vector<16x4xf32>
      %54 = vector.extract_strided_slice %48 {offsets = [0, 0], sizes = [16, 4], strides = [1, 1]} : vector<18x4xbf16> to vector<16x4xbf16>
      %c3_43 = arith.constant 3 : index
      %c0_44 = arith.constant 0 : index
      %c0_45 = arith.constant 0 : index
      %55 = vector.load %arg4[%c3_43, %c0_44, %c0_45] : memref<9x4x4xbf16, #tpu.memory_space<vmem>>, vector<1x4x4xbf16>
      %56 = vector.shape_cast %55 : vector<1x4x4xbf16> to vector<4x4xbf16>
      %cst_46 = arith.constant dense<0.000000e+00> : vector<16x4xf32>
      %57 = tpu.matmul %54, %56, %cst_46 {dimension_numbers = #tpu.dot_dimension_numbers<[1], [0], [0], [1], [0, 0, 1, 1], [], []>} : vector<16x4xbf16>, vector<4x4xbf16>, vector<16x4xf32> -> vector<16x4xf32>
      %58 = arith.addf %53, %57 : vector<16x4xf32>
      %59 = vector.extract_strided_slice %44 {offsets = [1, 0], sizes = [16, 4], strides = [1, 1]} : vector<18x4xbf16> to vector<16x4xbf16>
      %c4 = arith.constant 4 : index
      %c0_47 = arith.constant 0 : index
      %c0_48 = arith.constant 0 : index
      %60 = vector.load %arg3[%c4, %c0_47, %c0_48] : memref<9x4x4xbf16, #tpu.memory_space<vmem>>, vector<1x4x4xbf16>
      %61 = vector.shape_cast %60 : vector<1x4x4xbf16> to vector<4x4xbf16>
      %cst_49 = arith.constant dense<0.000000e+00> : vector<16x4xf32>
      %62 = tpu.matmul %59, %61, %cst_49 {dimension_numbers = #tpu.dot_dimension_numbers<[1], [0], [0], [1], [0, 0, 1, 1], [], []>} : vector<16x4xbf16>, vector<4x4xbf16>, vector<16x4xf32> -> vector<16x4xf32>
      %63 = arith.addf %58, %62 : vector<16x4xf32>
      %64 = vector.extract_strided_slice %48 {offsets = [1, 0], sizes = [16, 4], strides = [1, 1]} : vector<18x4xbf16> to vector<16x4xbf16>
      %c4_50 = arith.constant 4 : index
      %c0_51 = arith.constant 0 : index
      %c0_52 = arith.constant 0 : index
      %65 = vector.load %arg4[%c4_50, %c0_51, %c0_52] : memref<9x4x4xbf16, #tpu.memory_space<vmem>>, vector<1x4x4xbf16>
      %66 = vector.shape_cast %65 : vector<1x4x4xbf16> to vector<4x4xbf16>
      %cst_53 = arith.constant dense<0.000000e+00> : vector<16x4xf32>
      %67 = tpu.matmul %64, %66, %cst_53 {dimension_numbers = #tpu.dot_dimension_numbers<[1], [0], [0], [1], [0, 0, 1, 1], [], []>} : vector<16x4xbf16>, vector<4x4xbf16>, vector<16x4xf32> -> vector<16x4xf32>
      %68 = arith.addf %63, %67 : vector<16x4xf32>
      %69 = vector.extract_strided_slice %44 {offsets = [2, 0], sizes = [16, 4], strides = [1, 1]} : vector<18x4xbf16> to vector<16x4xbf16>
      %c5 = arith.constant 5 : index
      %c0_54 = arith.constant 0 : index
      %c0_55 = arith.constant 0 : index
      %70 = vector.load %arg3[%c5, %c0_54, %c0_55] : memref<9x4x4xbf16, #tpu.memory_space<vmem>>, vector<1x4x4xbf16>
      %71 = vector.shape_cast %70 : vector<1x4x4xbf16> to vector<4x4xbf16>
      %cst_56 = arith.constant dense<0.000000e+00> : vector<16x4xf32>
      %72 = tpu.matmul %69, %71, %cst_56 {dimension_numbers = #tpu.dot_dimension_numbers<[1], [0], [0], [1], [0, 0, 1, 1], [], []>} : vector<16x4xbf16>, vector<4x4xbf16>, vector<16x4xf32> -> vector<16x4xf32>
      %73 = arith.addf %68, %72 : vector<16x4xf32>
      %74 = vector.extract_strided_slice %48 {offsets = [2, 0], sizes = [16, 4], strides = [1, 1]} : vector<18x4xbf16> to vector<16x4xbf16>
      %c5_57 = arith.constant 5 : index
      %c0_58 = arith.constant 0 : index
      %c0_59 = arith.constant 0 : index
      %75 = vector.load %arg4[%c5_57, %c0_58, %c0_59] : memref<9x4x4xbf16, #tpu.memory_space<vmem>>, vector<1x4x4xbf16>
      %76 = vector.shape_cast %75 : vector<1x4x4xbf16> to vector<4x4xbf16>
      %cst_60 = arith.constant dense<0.000000e+00> : vector<16x4xf32>
      %77 = tpu.matmul %74, %76, %cst_60 {dimension_numbers = #tpu.dot_dimension_numbers<[1], [0], [0], [1], [0, 0, 1, 1], [], []>} : vector<16x4xbf16>, vector<4x4xbf16>, vector<16x4xf32> -> vector<16x4xf32>
      %78 = arith.addf %73, %77 : vector<16x4xf32>
      %c2_i32 = arith.constant 2 : i32
      %79 = arith.addi %arg7, %c2_i32 : i32
      %c0_61 = arith.constant 0 : index
      %80 = arith.index_cast %79 : i32 to index
      %c0_62 = arith.constant 0 : index
      %c0_63 = arith.constant 0 : index
      %81 = vector.load %arg1[%c0_61, %80, %c0_62, %c0_63] : memref<1x18x18x4xbf16, #tpu.memory_space<vmem>>, vector<1x1x18x4xbf16>
      %82 = vector.shape_cast %81 : vector<1x1x18x4xbf16> to vector<18x4xbf16>
      %c2_i32_64 = arith.constant 2 : i32
      %83 = arith.addi %arg7, %c2_i32_64 : i32
      %c0_65 = arith.constant 0 : index
      %84 = arith.index_cast %83 : i32 to index
      %c0_66 = arith.constant 0 : index
      %c0_67 = arith.constant 0 : index
      %85 = vector.load %arg2[%c0_65, %84, %c0_66, %c0_67] : memref<1x18x18x4xbf16, #tpu.memory_space<vmem>>, vector<1x1x18x4xbf16>
      %86 = vector.shape_cast %85 : vector<1x1x18x4xbf16> to vector<18x4xbf16>
      %87 = vector.extract_strided_slice %82 {offsets = [0, 0], sizes = [16, 4], strides = [1, 1]} : vector<18x4xbf16> to vector<16x4xbf16>
      %c6 = arith.constant 6 : index
      %c0_68 = arith.constant 0 : index
      %c0_69 = arith.constant 0 : index
      %88 = vector.load %arg3[%c6, %c0_68, %c0_69] : memref<9x4x4xbf16, #tpu.memory_space<vmem>>, vector<1x4x4xbf16>
      %89 = vector.shape_cast %88 : vector<1x4x4xbf16> to vector<4x4xbf16>
      %cst_70 = arith.constant dense<0.000000e+00> : vector<16x4xf32>
      %90 = tpu.matmul %87, %89, %cst_70 {dimension_numbers = #tpu.dot_dimension_numbers<[1], [0], [0], [1], [0, 0, 1, 1], [], []>} : vector<16x4xbf16>, vector<4x4xbf16>, vector<16x4xf32> -> vector<16x4xf32>
      %91 = arith.addf %78, %90 : vector<16x4xf32>
      %92 = vector.extract_strided_slice %86 {offsets = [0, 0], sizes = [16, 4], strides = [1, 1]} : vector<18x4xbf16> to vector<16x4xbf16>
      %c6_71 = arith.constant 6 : index
      %c0_72 = arith.constant 0 : index
      %c0_73 = arith.constant 0 : index
      %93 = vector.load %arg4[%c6_71, %c0_72, %c0_73] : memref<9x4x4xbf16, #tpu.memory_space<vmem>>, vector<1x4x4xbf16>
      %94 = vector.shape_cast %93 : vector<1x4x4xbf16> to vector<4x4xbf16>
      %cst_74 = arith.constant dense<0.000000e+00> : vector<16x4xf32>
      %95 = tpu.matmul %92, %94, %cst_74 {dimension_numbers = #tpu.dot_dimension_numbers<[1], [0], [0], [1], [0, 0, 1, 1], [], []>} : vector<16x4xbf16>, vector<4x4xbf16>, vector<16x4xf32> -> vector<16x4xf32>
      %96 = arith.addf %91, %95 : vector<16x4xf32>
      %97 = vector.extract_strided_slice %82 {offsets = [1, 0], sizes = [16, 4], strides = [1, 1]} : vector<18x4xbf16> to vector<16x4xbf16>
      %c7 = arith.constant 7 : index
      %c0_75 = arith.constant 0 : index
      %c0_76 = arith.constant 0 : index
      %98 = vector.load %arg3[%c7, %c0_75, %c0_76] : memref<9x4x4xbf16, #tpu.memory_space<vmem>>, vector<1x4x4xbf16>
      %99 = vector.shape_cast %98 : vector<1x4x4xbf16> to vector<4x4xbf16>
      %cst_77 = arith.constant dense<0.000000e+00> : vector<16x4xf32>
      %100 = tpu.matmul %97, %99, %cst_77 {dimension_numbers = #tpu.dot_dimension_numbers<[1], [0], [0], [1], [0, 0, 1, 1], [], []>} : vector<16x4xbf16>, vector<4x4xbf16>, vector<16x4xf32> -> vector<16x4xf32>
      %101 = arith.addf %96, %100 : vector<16x4xf32>
      %102 = vector.extract_strided_slice %86 {offsets = [1, 0], sizes = [16, 4], strides = [1, 1]} : vector<18x4xbf16> to vector<16x4xbf16>
      %c7_78 = arith.constant 7 : index
      %c0_79 = arith.constant 0 : index
      %c0_80 = arith.constant 0 : index
      %103 = vector.load %arg4[%c7_78, %c0_79, %c0_80] : memref<9x4x4xbf16, #tpu.memory_space<vmem>>, vector<1x4x4xbf16>
      %104 = vector.shape_cast %103 : vector<1x4x4xbf16> to vector<4x4xbf16>
      %cst_81 = arith.constant dense<0.000000e+00> : vector<16x4xf32>
      %105 = tpu.matmul %102, %104, %cst_81 {dimension_numbers = #tpu.dot_dimension_numbers<[1], [0], [0], [1], [0, 0, 1, 1], [], []>} : vector<16x4xbf16>, vector<4x4xbf16>, vector<16x4xf32> -> vector<16x4xf32>
      %106 = arith.addf %101, %105 : vector<16x4xf32>
      %107 = vector.extract_strided_slice %82 {offsets = [2, 0], sizes = [16, 4], strides = [1, 1]} : vector<18x4xbf16> to vector<16x4xbf16>
      %c8 = arith.constant 8 : index
      %c0_82 = arith.constant 0 : index
      %c0_83 = arith.constant 0 : index
      %108 = vector.load %arg3[%c8, %c0_82, %c0_83] : memref<9x4x4xbf16, #tpu.memory_space<vmem>>, vector<1x4x4xbf16>
      %109 = vector.shape_cast %108 : vector<1x4x4xbf16> to vector<4x4xbf16>
      %cst_84 = arith.constant dense<0.000000e+00> : vector<16x4xf32>
      %110 = tpu.matmul %107, %109, %cst_84 {dimension_numbers = #tpu.dot_dimension_numbers<[1], [0], [0], [1], [0, 0, 1, 1], [], []>} : vector<16x4xbf16>, vector<4x4xbf16>, vector<16x4xf32> -> vector<16x4xf32>
      %111 = arith.addf %106, %110 : vector<16x4xf32>
      %112 = vector.extract_strided_slice %86 {offsets = [2, 0], sizes = [16, 4], strides = [1, 1]} : vector<18x4xbf16> to vector<16x4xbf16>
      %c8_85 = arith.constant 8 : index
      %c0_86 = arith.constant 0 : index
      %c0_87 = arith.constant 0 : index
      %113 = vector.load %arg4[%c8_85, %c0_86, %c0_87] : memref<9x4x4xbf16, #tpu.memory_space<vmem>>, vector<1x4x4xbf16>
      %114 = vector.shape_cast %113 : vector<1x4x4xbf16> to vector<4x4xbf16>
      %cst_88 = arith.constant dense<0.000000e+00> : vector<16x4xf32>
      %115 = tpu.matmul %112, %114, %cst_88 {dimension_numbers = #tpu.dot_dimension_numbers<[1], [0], [0], [1], [0, 0, 1, 1], [], []>} : vector<16x4xbf16>, vector<4x4xbf16>, vector<16x4xf32> -> vector<16x4xf32>
      %116 = arith.addf %111, %115 : vector<16x4xf32>
      %117 = vector.broadcast %0 : vector<1x4xf32> to vector<16x4xf32>
      %118 = arith.addf %116, %117 : vector<16x4xf32>
      %119 = arith.truncf %118 : vector<16x4xf32> to vector<16x4xbf16>
      %c0_89 = arith.constant 0 : index
      %120 = arith.index_cast %arg7 : i32 to index
      %c0_90 = arith.constant 0 : index
      %c0_91 = arith.constant 0 : index
      %121 = vector.load %arg6[%c0_89, %120, %c0_90, %c0_91] : memref<1x16x16x4xbf16, #tpu.memory_space<vmem>>, vector<1x1x16x4xbf16>
      %122 = vector.shape_cast %121 : vector<1x1x16x4xbf16> to vector<16x4xbf16>
      %123 = vector.shape_cast %119 : vector<16x4xbf16> to vector<1x1x16x4xbf16>
      tpu.vector_store %arg6[%c0_89, %120, %c0_90, %c0_91], %123 {strides = array<i32>} : memref<1x16x16x4xbf16, #tpu.memory_space<vmem>>, vector<1x1x16x4xbf16>,
    }
    %c16_i32_1 = arith.constant 16 : i32
    return
  }
  func.func @transform_0(%arg0: i32) -> (i32, i32, i32, i32) {
    %c0_i32 = arith.constant 0 : i32
    %c0_i32_0 = arith.constant 0 : i32
    %c0_i32_1 = arith.constant 0 : i32
    %c0_i32_2 = arith.constant 0 : i32
    return %arg0, %c0_i32, %c0_i32_0, %c0_i32_1 : i32, i32, i32, i32
  }
  func.func @transform_1(%arg0: i32) -> (i32, i32, i32, i32) {
    %c0_i32 = arith.constant 0 : i32
    %c0_i32_0 = arith.constant 0 : i32
    %c0_i32_1 = arith.constant 0 : i32
    %c0_i32_2 = arith.constant 0 : i32
    return %arg0, %c0_i32, %c0_i32_0, %c0_i32_1 : i32, i32, i32, i32
  }
  func.func @transform_2(%arg0: i32) -> (i32, i32, i32) {
    %c0_i32 = arith.constant 0 : i32
    %c0_i32_0 = arith.constant 0 : i32
    %c0_i32_1 = arith.constant 0 : i32
    %c0_i32_2 = arith.constant 0 : i32
    return %c0_i32, %c0_i32_0, %c0_i32_1 : i32, i32, i32
  }
  func.func @transform_3(%arg0: i32) -> (i32, i32, i32) {
    %c0_i32 = arith.constant 0 : i32
    %c0_i32_0 = arith.constant 0 : i32
    %c0_i32_1 = arith.constant 0 : i32
    %c0_i32_2 = arith.constant 0 : i32
    return %c0_i32, %c0_i32_0, %c0_i32_1 : i32, i32, i32
  }
  func.func @transform_4(%arg0: i32) -> (i32, i32) {
    %c0_i32 = arith.constant 0 : i32
    %c0_i32_0 = arith.constant 0 : i32
    %c0_i32_1 = arith.constant 0 : i32
    return %c0_i32, %c0_i32_0 : i32, i32
  }
  func.func @transform_5(%arg0: i32) -> (i32, i32, i32, i32) {
    %c0_i32 = arith.constant 0 : i32
    %c0_i32_0 = arith.constant 0 : i32
    %c0_i32_1 = arith.constant 0 : i32
    %c0_i32_2 = arith.constant 0 : i32
    return %arg0, %c0_i32, %c0_i32_0, %c0_i32_1 : i32, i32, i32, i32
  }
}

module attributes {stable_mosaic.version = 11 : i64} {
  func.func @_matmul_bias_kernel(%arg0: i32, %arg1: memref<512x4xbf16, #tpu.memory_space<vmem>>, %arg2: memref<4x48xbf16, #tpu.memory_space<vmem>>, %arg3: memref<1x48xf32, #tpu.memory_space<vmem>>, %arg4: memref<512x48xf32, #tpu.memory_space<vmem>>) attributes {dimension_semantics = [#tpu.dimension_semantics<parallel>], iteration_bounds = array<i64: 1>, scalar_prefetch = 0 : i64, scratch_operands = 0 : i64, tpu.core_type = #tpu.core_type<tc>, window_params = [{transform_indices = @transform_0, window_bounds = array<i64: 512, 4>}, {pipeline_mode = #tpu.pipeline_mode<synchronous>, transform_indices = @transform_1, window_bounds = array<i64: 4, 48>}, {pipeline_mode = #tpu.pipeline_mode<synchronous>, transform_indices = @transform_2, window_bounds = array<i64: 1, 48>}, {transform_indices = @transform_3, window_bounds = array<i64: 512, 48>}]} {
    %c0 = arith.constant 0 : index
    %c0_0 = arith.constant 0 : index
    %0 = vector.load %arg1[%c0, %c0_0] : memref<512x4xbf16, #tpu.memory_space<vmem>>, vector<512x4xbf16>
    %c0_1 = arith.constant 0 : index
    %c0_2 = arith.constant 0 : index
    %1 = vector.load %arg2[%c0_1, %c0_2] : memref<4x48xbf16, #tpu.memory_space<vmem>>, vector<4x48xbf16>
    %cst = arith.constant dense<0.000000e+00> : vector<512x48xf32>
    %2 = tpu.matmul %0, %1, %cst {dimension_numbers = #tpu.dot_dimension_numbers<[1], [0], [0], [1], [0, 0, 1, 1], [], []>} : vector<512x4xbf16>, vector<4x48xbf16>, vector<512x48xf32> -> vector<512x48xf32>
    %c0_3 = arith.constant 0 : index
    %c0_4 = arith.constant 0 : index
    %3 = vector.load %arg3[%c0_3, %c0_4] : memref<1x48xf32, #tpu.memory_space<vmem>>, vector<1x48xf32>
    %4 = vector.broadcast %3 : vector<1x48xf32> to vector<512x48xf32>
    %5 = arith.addf %2, %4 : vector<512x48xf32>
    %6 = math.tanh %5 : vector<512x48xf32>
    %c0_5 = arith.constant 0 : index
    %c0_6 = arith.constant 0 : index
    %7 = vector.load %arg4[%c0_5, %c0_6] : memref<512x48xf32, #tpu.memory_space<vmem>>, vector<512x48xf32>
    tpu.vector_store %arg4[%c0_5, %c0_6], %6 {strides = array<i32>} : memref<512x48xf32, #tpu.memory_space<vmem>>, vector<512x48xf32>,
    return
  }
  func.func @transform_0(%arg0: i32) -> (i32, i32) {
    %c0_i32 = arith.constant 0 : i32
    %c0_i32_0 = arith.constant 0 : i32
    return %arg0, %c0_i32 : i32, i32
  }
  func.func @transform_1(%arg0: i32) -> (i32, i32) {
    %c0_i32 = arith.constant 0 : i32
    %c0_i32_0 = arith.constant 0 : i32
    %c0_i32_1 = arith.constant 0 : i32
    return %c0_i32, %c0_i32_0 : i32, i32
  }
  func.func @transform_2(%arg0: i32) -> (i32, i32) {
    %c0_i32 = arith.constant 0 : i32
    %c0_i32_0 = arith.constant 0 : i32
    %c0_i32_1 = arith.constant 0 : i32
    return %c0_i32, %c0_i32_0 : i32, i32
  }
  func.func @transform_3(%arg0: i32) -> (i32, i32) {
    %c0_i32 = arith.constant 0 : i32
    %c0_i32_0 = arith.constant 0 : i32
    return %arg0, %c0_i32 : i32, i32
  }
}

</mosaic_0001>

<bundles_post_ra>
// kernel: tile.19
= control target key start
LH: loop header
LB: loop body
LE: loop exit
PB: predicated region body
PF: predicated region fallthrough
CT: control target
= control target key end

     0   :  { %vm7_vm0 = vcmask 130048   ;;  %s37_s8 = smov 16   ;;  %s38_s9 = smov 32   ;;  %vm13_vm1 = vcmask 523648   ;;  %vm19_vm2 = vcmask 392448   ;;  %vm25_vm3 = vcmask 261248   ;;  %s55_s0 = inlined_call_operand.vmem [shape: f32[4,16], index: 0, kind: input, shape index: {}]   ;;  %s56_s1 = inlined_call_operand.vmem [shape: f32[1,64], index: 1, kind: output, shape index: {}]  }
   0x1   :  { %v4_v0 = vld [vmem:[%s55_s0] sm:$0xf]  ;;  %s36_s0 = smov 48  }
   0x2   :  { %5 = vst [vmem:[#allocation1] sm:$0xf] %v4_v0 }
   0x9   :  { %v10_v1 = vld [vmem:[#allocation1 + $0x3] sm:$0x1]   ;;  %v22_v2 = vld [vmem:[#allocation1 + $0x1] sm:$0x1]   ;;  %v6_v3 = vld [vmem:[#allocation1] sm:$0x1]  }
   0xa   :  { %11 = vrot.lane.b32.xlu0 %v10_v1, %s36_s0  ;;  %23 = vrot.lane.b32.xlu1 %v22_v2, %s37_s8  ;;  %v16_v4 = vld [vmem:[#allocation1 + $0x2] sm:$0x1]   ;;  %8 = vst.msk [vmem:[#allocation0] sm:$0x1] %vm7_vm0, %v6_v3  }
   0xe   :  { %17 = vrot.lane.b32.xlu0 %v16_v4, %s38_s9 }
  0x7c   :  { %v12_v5 = vpop.permute.xlu0 %11   ;;  %v24_v6 = vpop.permute.xlu1 %23  }
  0x7d   :  { %14 = vst.msk [vmem:[#allocation0] sm:$0x1] %vm13_vm1, %v12_v5  }
  0x80   :  { %v18_v7 = vpop.permute.xlu0 %17  }
  0x81   :  { %20 = vst.msk [vmem:[#allocation0] sm:$0x1] %vm19_vm2, %v18_v7  }
  0x82   :  { %26 = vst.msk [vmem:[#allocation0] sm:$0x1] %vm25_vm3, %v24_v6  }
  0x89   :  { %v30_v8 = vld [vmem:[#allocation0] sm:$0x1] }
  0x8a   :  { %32 = vst [vmem:[%s56_s1] sm:$0x1] %v30_v8 }

// kernel: tile.24
= control target key start
LH: loop header
LB: loop body
LE: loop exit
PB: predicated region body
PF: predicated region fallthrough
CT: control target
= control target key end

     0   :  { %vm7_vm0 = vcmask 64512   ;;  %s37_s8 = smov 8   ;;  %s38_s9 = smov 16   ;;  %vm13_vm1 = vcmask 261312   ;;  %vm19_vm2 = vcmask 195712   ;;  %vm25_vm3 = vcmask 130112   ;;  %s55_s0 = inlined_call_operand.vmem [shape: f32[4,8], index: 0, kind: input, shape index: {}]   ;;  %s56_s1 = inlined_call_operand.vmem [shape: f32[1,32], index: 1, kind: output, shape index: {}]  }
   0x1   :  { %v4_v0 = vld [vmem:[%s55_s0] sm:$0xf]  ;;  %s36_s0 = smov 24  }
   0x2   :  { %5 = vst [vmem:[#allocation1] sm:$0xf] %v4_v0 }
   0x9   :  { %v10_v1 = vld [vmem:[#allocation1 + $0x3] sm:$0x1]   ;;  %v22_v2 = vld [vmem:[#allocation1 + $0x1] sm:$0x1]   ;;  %v6_v3 = vld [vmem:[#allocation1] sm:$0x1]  }
   0xa   :  { %11 = vrot.lane.b32.xlu0 %v10_v1, %s36_s0  ;;  %23 = vrot.lane.b32.xlu1 %v22_v2, %s37_s8  ;;  %v16_v4 = vld [vmem:[#allocation1 + $0x2] sm:$0x1]   ;;  %8 = vst.msk [vmem:[#allocation0] sm:$0x1] %vm7_vm0, %v6_v3  }
   0xe   :  { %17 = vrot.lane.b32.xlu0 %v16_v4, %s38_s9 }
  0x7c   :  { %v12_v5 = vpop.permute.xlu0 %11   ;;  %v24_v6 = vpop.permute.xlu1 %23  }
  0x7d   :  { %14 = vst.msk [vmem:[#allocation0] sm:$0x1] %vm13_vm1, %v12_v5  }
  0x80   :  { %v18_v7 = vpop.permute.xlu0 %17  }
  0x81   :  { %20 = vst.msk [vmem:[#allocation0] sm:$0x1] %vm19_vm2, %v18_v7  }
  0x82   :  { %26 = vst.msk [vmem:[#allocation0] sm:$0x1] %vm25_vm3, %v24_v6  }
  0x89   :  { %v30_v8 = vld [vmem:[#allocation0] sm:$0x1] }
  0x8a   :  { %32 = vst [vmem:[%s56_s1] sm:$0x1] %v30_v8 }

// kernel: tile.23
= control target key start
LH: loop header
LB: loop body
LE: loop exit
PB: predicated region body
PF: predicated region fallthrough
CT: control target
= control target key end

     0   :  { %2 = vsyncpa [#allocation1], 0  ;;  %s44_s6 = smov [#allocation0]   ;;  %s70_s0 = inlined_call_operand.hbm [shape: f32[8], index: 0, kind: input, shape index: {}]   ;;  %s71_s1 = inlined_call_operand.vmem [shape: f32[4,8], index: 1, kind: output, shape index: {}]  }
   0x1   :  { %s9_s7 = sshll.u32 %s44_s6, 4  ;;  %s20_s10 = scalar_lea.hbm %s70_s0, 16  ;;  %s10_s7 = int_to_ptr.vmem [resolvable:$true] %s9_s7 }
   0x2   :  { %p21_p0 = scmp.ne.s32.totalorder %s70_s0, %s20_s10  ;;  %p24_p1 = scmp.lt.u32.totalorder %s20_s10, %s70_s0 }
   0x4   :  { %p26_p2 = pnand %p24_p1, %p21_p0 }
   0x6   :  { %29 = shalt.err (!%p26_p2)
}
   0x7   :  { %s30_s15 = scalar_lea.vmem %s10_s7, 16  ;;  %s34_s16 = scalar_lea.vmem %s10_s7, 32 }
   0x8   :  { %p31_p3 = scmp.ne.s32.totalorder %s10_s7, %s30_s15  ;;  %p35_p4 = scmp.lt.s32.totalorder %s10_s7, %s10_s7 }
   0x9   :  { %p36_p5 = scmp.lt.s32.totalorder %s34_s16, %s30_s15 }
   0xb   :  { %p37_p6 = por %p36_p5, %p35_p4 }
   0xd   :  { %p38_p7 = pnand %p37_p6, %p31_p3 }
   0xf   :  { %41 = shalt.err (!%p38_p7)
}
  0x10   :  { %12 = dma.hbm_to_vmem [thread:$0]  %s70_s0, 16, %s10_s7, [#allocation1]  }
  0x11   :  { %42 = dma.done.wait [#allocation1], 16  }
  0x12   :  { %43 = vsyncadd [#allocation1], 4294967280  ;;  %v16_v0 = vld [vmem:[#allocation0] ss:$0 sm:$0xff] }
  0x13   :  { %17 = vst [vmem:[%s71_s1] sm:$0xf] %v16_v0 }
  0x14   :  { %18 = vsyncpa [#allocation1], 1 }

// kernel: tile.18
= control target key start
LH: loop header
LB: loop body
LE: loop exit
PB: predicated region body
PF: predicated region fallthrough
CT: control target
= control target key end

     0   :  { %2 = vsyncpa [#allocation1], 0  ;;  %s44_s6 = smov [#allocation0]   ;;  %s70_s0 = inlined_call_operand.hbm [shape: f32[16], index: 0, kind: input, shape index: {}]   ;;  %s71_s1 = inlined_call_operand.vmem [shape: f32[4,16], index: 1, kind: output, shape index: {}]  }
   0x1   :  { %s9_s7 = sshll.u32 %s44_s6, 4  ;;  %s20_s10 = scalar_lea.hbm %s70_s0, 16  ;;  %s10_s7 = int_to_ptr.vmem [resolvable:$true] %s9_s7 }
   0x2   :  { %p21_p0 = scmp.ne.s32.totalorder %s70_s0, %s20_s10  ;;  %p24_p1 = scmp.lt.u32.totalorder %s20_s10, %s70_s0 }
   0x4   :  { %p26_p2 = pnand %p24_p1, %p21_p0 }
   0x6   :  { %29 = shalt.err (!%p26_p2)
}
   0x7   :  { %s30_s15 = scalar_lea.vmem %s10_s7, 16  ;;  %s34_s16 = scalar_lea.vmem %s10_s7, 32 }
   0x8   :  { %p31_p3 = scmp.ne.s32.totalorder %s10_s7, %s30_s15  ;;  %p35_p4 = scmp.lt.s32.totalorder %s10_s7, %s10_s7 }
   0x9   :  { %p36_p5 = scmp.lt.s32.totalorder %s34_s16, %s30_s15 }
   0xb   :  { %p37_p6 = por %p36_p5, %p35_p4 }
   0xd   :  { %p38_p7 = pnand %p37_p6, %p31_p3 }
   0xf   :  { %41 = shalt.err (!%p38_p7)
}
  0x10   :  { %12 = dma.hbm_to_vmem [thread:$0]  %s70_s0, 16, %s10_s7, [#allocation1]  }
  0x11   :  { %42 = dma.done.wait [#allocation1], 16  }
  0x12   :  { %43 = vsyncadd [#allocation1], 4294967280  ;;  %v16_v0 = vld [vmem:[#allocation0] ss:$0 sm:$0xff] }
  0x13   :  { %17 = vst [vmem:[%s71_s1] sm:$0xf] %v16_v0 }
  0x14   :  { %18 = vsyncpa [#allocation1], 1 }

// kernel: tile.29
= control target key start
LH: loop header
LB: loop body
LE: loop exit
PB: predicated region body
PF: predicated region fallthrough
CT: control target
= control target key end

     0   :  { %vm7_vm0 = vcmask 31744   ;;  %s37_s8 = smov 4   ;;  %s38_s9 = smov 8   ;;  %vm13_vm1 = vcmask 130144   ;;  %vm19_vm2 = vcmask 97344   ;;  %vm25_vm3 = vcmask 64544   ;;  %s55_s0 = inlined_call_operand.vmem [shape: f32[4,4], index: 0, kind: input, shape index: {}]   ;;  %s56_s1 = inlined_call_operand.vmem [shape: f32[1,16], index: 1, kind: output, shape index: {}]  }
   0x1   :  { %v4_v0 = vld [vmem:[%s55_s0] sm:$0xf]  ;;  %s36_s0 = smov 12  }
   0x2   :  { %5 = vst [vmem:[#allocation1] sm:$0xf] %v4_v0 }
   0x9   :  { %v10_v1 = vld [vmem:[#allocation1 + $0x3] sm:$0x1]   ;;  %v22_v2 = vld [vmem:[#allocation1 + $0x1] sm:$0x1]   ;;  %v6_v3 = vld [vmem:[#allocation1] sm:$0x1]  }
   0xa   :  { %11 = vrot.lane.b32.xlu0 %v10_v1, %s36_s0  ;;  %23 = vrot.lane.b32.xlu1 %v22_v2, %s37_s8  ;;  %v16_v4 = vld [vmem:[#allocation1 + $0x2] sm:$0x1]   ;;  %8 = vst.msk [vmem:[#allocation0] sm:$0x1] %vm7_vm0, %v6_v3  }
   0xe   :  { %17 = vrot.lane.b32.xlu0 %v16_v4, %s38_s9 }
  0x7c   :  { %v12_v5 = vpop.permute.xlu0 %11   ;;  %v24_v6 = vpop.permute.xlu1 %23  }
  0x7d   :  { %14 = vst.msk [vmem:[#allocation0] sm:$0x1] %vm13_vm1, %v12_v5  }
  0x80   :  { %v18_v7 = vpop.permute.xlu0 %17  }
  0x81   :  { %20 = vst.msk [vmem:[#allocation0] sm:$0x1] %vm19_vm2, %v18_v7  }
  0x82   :  { %26 = vst.msk [vmem:[#allocation0] sm:$0x1] %vm25_vm3, %v24_v6  }
  0x89   :  { %v30_v8 = vld [vmem:[#allocation0] sm:$0x1] }
  0x8a   :  { %32 = vst [vmem:[%s56_s1] sm:$0x1] %v30_v8 }

// kernel: tile.28
= control target key start
LH: loop header
LB: loop body
LE: loop exit
PB: predicated region body
PF: predicated region fallthrough
CT: control target
= control target key end

     0   :  { %2 = vsyncpa [#allocation1], 0  ;;  %s44_s6 = smov [#allocation0]   ;;  %s70_s0 = inlined_call_operand.hbm [shape: f32[4], index: 0, kind: input, shape index: {}]   ;;  %s71_s1 = inlined_call_operand.vmem [shape: f32[4,4], index: 1, kind: output, shape index: {}]  }
   0x1   :  { %s9_s7 = sshll.u32 %s44_s6, 4  ;;  %s20_s10 = scalar_lea.hbm %s70_s0, 16  ;;  %s10_s7 = int_to_ptr.vmem [resolvable:$true] %s9_s7 }
   0x2   :  { %p21_p0 = scmp.ne.s32.totalorder %s70_s0, %s20_s10  ;;  %p24_p1 = scmp.lt.u32.totalorder %s20_s10, %s70_s0 }
   0x4   :  { %p26_p2 = pnand %p24_p1, %p21_p0 }
   0x6   :  { %29 = shalt.err (!%p26_p2)
}
   0x7   :  { %s30_s15 = scalar_lea.vmem %s10_s7, 16  ;;  %s34_s16 = scalar_lea.vmem %s10_s7, 32 }
   0x8   :  { %p31_p3 = scmp.ne.s32.totalorder %s10_s7, %s30_s15  ;;  %p35_p4 = scmp.lt.s32.totalorder %s10_s7, %s10_s7 }
   0x9   :  { %p36_p5 = scmp.lt.s32.totalorder %s34_s16, %s30_s15 }
   0xb   :  { %p37_p6 = por %p36_p5, %p35_p4 }
   0xd   :  { %p38_p7 = pnand %p37_p6, %p31_p3 }
   0xf   :  { %41 = shalt.err (!%p38_p7)
}
  0x10   :  { %12 = dma.hbm_to_vmem [thread:$0]  %s70_s0, 16, %s10_s7, [#allocation1]  }
  0x11   :  { %42 = dma.done.wait [#allocation1], 16  }
  0x12   :  { %43 = vsyncadd [#allocation1], 4294967280  ;;  %v16_v0 = vld [vmem:[#allocation0] ss:$0 sm:$0xff] }
  0x13   :  { %17 = vst [vmem:[%s71_s1] sm:$0xf] %v16_v0 }
  0x14   :  { %18 = vsyncpa [#allocation1], 1 }

// kernel: decoder_forward.7
= control target key start
LH: loop header
LB: loop body
LE: loop exit
PB: predicated region body
PF: predicated region fallthrough
CT: control target
= control target key end

     0   :  { %v109_v0 = vmov 0.0   ;;  %vm110_vm0 = vmmov 0   ;;  %vm39_vm1 = vcmask 261120   ;;  %vm84_vm2 = vcmask 519168   ;;  %s146_s1 = inlined_call_operand.vmem [shape: bf16[32,64], index: 1, kind: input, shape index: {}]   ;;  %s147_s0 = inlined_call_operand.vmem [shape: bf16[8,32], index: 0, kind: input, shape index: {}]   ;;  %s148_s2 = inlined_call_operand.vmem [shape: f32[1,64], index: 2, kind: input, shape index: {}]   ;;  %s149_s3 = inlined_call_operand.vmem [shape: bf16[8,64], index: 3, kind: output, shape index: {}]  }
   0x1   :  { %97 = vmatprep.subr.bf16.mxu0 %v109_v0  ;;  %v107_v1 = vld [vmem:[%s146_s1] sm:$0xff]   ;;  %101 = vmatprep.mubr.msk.bf16.mxu0 %vm110_vm0, %v109_v0  ;;  %v108_v2 = vld [vmem:[%s146_s1 + $0x8] sm:$0xff]  }
   0x2   :  { %98 = vmatpush3.bf16.msra.mxu0 %v107_v1  ;;  %v15_v3 = vld [vmem:[%s147_s0] sm:$0xf] }
   0x3   :  { %99 = vmatprep.subr.bf16.mxu0 %v109_v0  ;;  %v90_v4 = vld [vmem:[%s148_s2] ss:$0 sm:$0xff] }
   0x6   :  { %100 = vmatpush3.bf16.msra.mxu0 %v108_v2 }
   0x9   :  { %102 = vmatmul.mubr.msk.bf16.vlgmr.msra.gmra.mrb[0].mxu0 %vm39_vm1, %v15_v3 }
  0xdc   :  { %v77_v5 = vpop.f32.mrb[0].mxu0 }
  0xdd   :  { %v78_v6 = vadd.f32 %v90_v4, %v77_v5  ;;  %v103_v7 = vpop.f32.mrb[1].mxu0 }
  0xde   :  { %v80_v8 = vpop.f32.mrb[2].mxu0 }
  0xdf   :  { %v83_v9 = vpack.c.bf16 %v78_v6, %v78_v6  ;;  %v104_v10 = vpop.f32.mrb[3].mxu0 }
  0xe1   :  { %85 = vst.msk [vmem:[%s149_s3] sm:$0xf] %vm84_vm2, %v83_v9 }

// kernel: decoder_forward.9
= control target key start
LH: loop header
LB: loop body
LE: loop exit
PB: predicated region body
PF: predicated region fallthrough
CT: control target
= control target key end

     0   :  { %vm44_vm0 = vcmask 130048   ;;  %vm116_vm1 = vcmask 257024   ;;  %s195_s1 = inlined_call_operand.vmem [shape: bf16[16,32], index: 1, kind: input, shape index: {}]   ;;  %s196_s0 = inlined_call_operand.vmem [shape: bf16[32,16], index: 0, kind: input, shape index: {}]   ;;  %s197_s2 = inlined_call_operand.vmem [shape: f32[1,32], index: 2, kind: input, shape index: {}]   ;;  %s198_s3 = inlined_call_operand.vmem [shape: bf16[32,32], index: 3, kind: output, shape index: {}]  }
   0x1   :  { %v148_v0 = vld [vmem:[%s195_s1] sm:$0xff]   ;;  %v150_v2 = vld [vmem:[%s196_s0 + $0x8] sm:$0xff]  }
   0x2   :  { %v149_v1 = vld [vmem:[%s196_s0] sm:$0xff]   ;;  %142 = vmatprep.subr.bf16.mxu0 %v148_v0 }
   0x3   :  { %143 = vmatpush3.bf16.msra.mxu0 %v148_v0  ;;  %144 = vmatprep.mubr.msk.bf16.mxu0 %vm44_vm0, %v149_v1  ;;  %v125_v3 = vld [vmem:[%s197_s2] ss:$0 sm:$0xff] }
   0x6   :  { %145 = vmatmul.mubr.msk.bf16.vlgmr.msra.gmra.mrb[0].mxu0 %vm44_vm0, %v150_v2 }
  0xd9   :  { %v146_v4 = vpop.f32.mrb[0].mxu0 }
  0xda   :  { %v94_v5 = vadd.f32 %v146_v4, %v125_v3  ;;  %v85_v6 = vpop.f32.mrb[1].mxu0 }
  0xdb   :  { %v86_v7 = vadd.f32 %v125_v3, %v85_v6  ;;  %v147_v8 = vpop.f32.mrb[2].mxu0 }
  0xdc   :  { %v137_v9 = vpack.c.bf16 %v94_v5, %v94_v5  ;;  %v97_v10 = vadd.f32 %v147_v8, %v125_v3  ;;  %v88_v11 = vpop.f32.mrb[3].mxu0 }
  0xdd   :  { %v135_v12 = vpack.c.bf16 %v86_v7, %v86_v7  ;;  %v89_v13 = vadd.f32 %v125_v3, %v88_v11 }
  0xde   :  { %119 = vst.msk [vmem:[%s198_s3 + $0x8] sm:$0xf] %vm116_vm1, %v137_v9  ;;  %v138_v14 = vpack.c.bf16 %v97_v10, %v97_v10 }
  0xdf   :  { %117 = vst.msk [vmem:[%s198_s3] sm:$0xf] %vm116_vm1, %v135_v12  ;;  %v136_v15 = vpack.c.bf16 %v89_v13, %v89_v13 }
  0xe0   :  { %120 = vst.msk [vmem:[%s198_s3 + $0xc] sm:$0xf] %vm116_vm1, %v138_v14 }
  0xe1   :  { %118 = vst.msk [vmem:[%s198_s3 + $0x4] sm:$0xf] %vm116_vm1, %v136_v15 }

// kernel: decoder_forward.11
= control target key start
LH: loop header
LB: loop body
LE: loop exit
PB: predicated region body
PF: predicated region fallthrough
CT: control target
= control target key end

     0   :  { %vm104_vm0 = vcmask 1043456   ;;  %vm79_vm1 = vcmask 64512   ;;  %vm269_vm2 = vcmask 125952   ;;  %s500_s1 = inlined_call_operand.vmem [shape: bf16[8,16], index: 1, kind: input, shape index: {}]   ;;  %s501_s0 = inlined_call_operand.vmem [shape: bf16[128,8], index: 0, kind: input, shape index: {}]   ;;  %s502_s2 = inlined_call_operand.vmem [shape: f32[1,16], index: 2, kind: input, shape index: {}]   ;;  %s503_s3 = inlined_call_operand.vmem [shape: bf16[128,16], index: 3, kind: output, shape index: {}]  }
   0x1   :  { %v31_v0 = vld [vmem:[%s500_s1] sm:$0xf]  ;;  %v372_v4 = vld [vmem:[%s501_s0 + $0x8] sm:$0xff]   ;;  %v374_v6 = vld [vmem:[%s501_s0 + $0x10] sm:$0xff]  }
   0x2   :  { %368 = vmatprep.subr.msk.bf16.mxu0 %vm104_vm0, %v31_v0  ;;  %369 = vmatprep.subr.msk.bf16.mxu1 %vm104_vm0, %v31_v0  ;;  %v106_v1 = vsel %vm104_vm0, %v31_v0, 0  ;;  %v370_v2 = vld [vmem:[%s501_s0] sm:$0xff]   ;;  %v373_v5 = vld [vmem:[%s501_s0 + $0x28] sm:$0xff]   ;;  %v375_v7 = vld [vmem:[%s501_s0 + $0x30] sm:$0xff]  }
   0x3   :  { %349 = vmatpush3.bf16.msra.mxu0 %v106_v1  ;;  %367 = vmatpush3.bf16.msra.mxu1 %v106_v1  ;;  %v371_v3 = vld [vmem:[%s501_s0 + $0x20] sm:$0xff]   ;;  %v376_v8 = vld [vmem:[%s501_s0 + $0x18] sm:$0xff]  }
   0x4   :  { %350 = vmatprep.mubr.msk.bf16.mxu0 %vm79_vm1, %v370_v2  ;;  %358 = vmatprep.mubr.msk.bf16.mxu1 %vm79_vm1, %v371_v3  ;;  %v377_v9 = vld [vmem:[%s501_s0 + $0x38] sm:$0xff]   ;;  %v290_v10 = vld [vmem:[%s502_s2] ss:$0 sm:$0xff] }
   0x6   :  { %351 = vmatmul.mubr.msk.bf16.vlgmr.msra.gmra.mrb[0].mxu0 %vm79_vm1, %v372_v4  ;;  %359 = vmatmul.mubr.msk.bf16.vlgmr.msra.gmra.mrb[0].mxu1 %vm79_vm1, %v373_v5 }
   0x7   :  { %354 = vmatprep.mubr.msk.bf16.mxu0 %vm79_vm1, %v374_v6  ;;  %362 = vmatprep.mubr.msk.bf16.mxu1 %vm79_vm1, %v375_v7 }
   0xe   :  { %355 = vmatmul.mubr.msk.bf16.gmra.mrb[4].mxu0 %vm79_vm1, %v376_v8  ;;  %363 = vmatmul.mubr.msk.bf16.gmra.mrb[4].mxu1 %vm79_vm1, %v377_v9 }
  0xd9   :  { %v352_v11 = vpop.f32.mrb[0].mxu0  ;;  %v360_v13 = vpop.f32.mrb[0].mxu1 }
  0xda   :  { %v151_v12 = vadd.f32 %v352_v11, %v290_v10  ;;  %v142_v14 = vpop.f32.mrb[1].mxu0  ;;  %v183_v15 = vadd.f32 %v360_v13, %v290_v10  ;;  %v174_v17 = vpop.f32.mrb[1].mxu1 }
  0xdb   :  { %v143_v16 = vadd.f32 %v290_v10, %v142_v14  ;;  %v353_v18 = vpop.f32.mrb[2].mxu0  ;;  %v175_v20 = vadd.f32 %v290_v10, %v174_v17  ;;  %v361_v22 = vpop.f32.mrb[2].mxu1 }
  0xdc   :  { %v325_v19 = vpack.c.bf16 %v151_v12, %v151_v12  ;;  %v154_v21 = vadd.f32 %v353_v18, %v290_v10  ;;  %v145_v23 = vpop.f32.mrb[3].mxu0  ;;  %v333_v24 = vpack.c.bf16 %v183_v15, %v183_v15  ;;  %v186_v26 = vadd.f32 %v361_v22, %v290_v10  ;;  %v177_v28 = vpop.f32.mrb[3].mxu1 }
  0xdd   :  { %v323_v25 = vpack.c.bf16 %v143_v16, %v143_v16  ;;  %v146_v27 = vadd.f32 %v290_v10, %v145_v23  ;;  %v331_v29 = vpack.c.bf16 %v175_v20, %v175_v20  ;;  %v178_v31 = vadd.f32 %v290_v10, %v177_v28 }
  0xde   :  { %272 = vst.msk [vmem:[%s503_s3 + $0x8] sm:$0xf] %vm269_vm2, %v325_v19  ;;  %v326_v30 = vpack.c.bf16 %v154_v21, %v154_v21  ;;  %280 = vst.msk [vmem:[%s503_s3 + $0x28] sm:$0xf] %vm269_vm2, %v333_v24  ;;  %v334_v32 = vpack.c.bf16 %v186_v26, %v186_v26 }
  0xdf   :  { %270 = vst.msk [vmem:[%s503_s3] sm:$0xf] %vm269_vm2, %v323_v25  ;;  %v324_v33 = vpack.c.bf16 %v146_v27, %v146_v27  ;;  %278 = vst.msk [vmem:[%s503_s3 + $0x20] sm:$0xf] %vm269_vm2, %v331_v29  ;;  %v332_v34 = vpack.c.bf16 %v178_v31, %v178_v31 }
  0xe0   :  { %273 = vst.msk [vmem:[%s503_s3 + $0xc] sm:$0xf] %vm269_vm2, %v326_v30  ;;  %281 = vst.msk [vmem:[%s503_s3 + $0x2c] sm:$0xf] %vm269_vm2, %v334_v32 }
  0xe1   :  { %271 = vst.msk [vmem:[%s503_s3 + $0x4] sm:$0xf] %vm269_vm2, %v324_v33  ;;  %v356_v35 = vpop.f32.mrb[4].mxu0  ;;  %279 = vst.msk [vmem:[%s503_s3 + $0x24] sm:$0xf] %vm269_vm2, %v332_v34  ;;  %v364_v37 = vpop.f32.mrb[4].mxu1 }
  0xe2   :  { %v167_v36 = vadd.f32 %v356_v35, %v290_v10  ;;  %v158_v38 = vpop.f32.mrb[5].mxu0  ;;  %v199_v39 = vadd.f32 %v364_v37, %v290_v10  ;;  %v190_v41 = vpop.f32.mrb[5].mxu1 }
  0xe3   :  { %v159_v40 = vadd.f32 %v290_v10, %v158_v38  ;;  %v357_v42 = vpop.f32.mrb[6].mxu0  ;;  %v191_v44 = vadd.f32 %v290_v10, %v190_v41  ;;  %v365_v46 = vpop.f32.mrb[6].mxu1 }
  0xe4   :  { %v329_v43 = vpack.c.bf16 %v167_v36, %v167_v36  ;;  %v170_v45 = vadd.f32 %v357_v42, %v290_v10  ;;  %v161_v47 = vpop.f32.mrb[7].mxu0  ;;  %v337_v48 = vpack.c.bf16 %v199_v39, %v199_v39  ;;  %v202_v50 = vadd.f32 %v365_v46, %v290_v10  ;;  %v193_v52 = vpop.f32.mrb[7].mxu1 }
  0xe5   :  { %v327_v49 = vpack.c.bf16 %v159_v40, %v159_v40  ;;  %v162_v51 = vadd.f32 %v290_v10, %v161_v47  ;;  %v335_v53 = vpack.c.bf16 %v191_v44, %v191_v44  ;;  %v194_v55 = vadd.f32 %v290_v10, %v193_v52 }
  0xe6   :  { %276 = vst.msk [vmem:[%s503_s3 + $0x18] sm:$0xf] %vm269_vm2, %v329_v43  ;;  %v330_v54 = vpack.c.bf16 %v170_v45, %v170_v45  ;;  %284 = vst.msk [vmem:[%s503_s3 + $0x38] sm:$0xf] %vm269_vm2, %v337_v48  ;;  %v338_v56 = vpack.c.bf16 %v202_v50, %v202_v50 }
  0xe7   :  { %274 = vst.msk [vmem:[%s503_s3 + $0x10] sm:$0xf] %vm269_vm2, %v327_v49  ;;  %v328_v57 = vpack.c.bf16 %v162_v51, %v162_v51  ;;  %282 = vst.msk [vmem:[%s503_s3 + $0x30] sm:$0xf] %vm269_vm2, %v335_v53  ;;  %v336_v58 = vpack.c.bf16 %v194_v55, %v194_v55 }
  0xe8   :  { %277 = vst.msk [vmem:[%s503_s3 + $0x1c] sm:$0xf] %vm269_vm2, %v330_v54  ;;  %285 = vst.msk [vmem:[%s503_s3 + $0x3c] sm:$0xf] %vm269_vm2, %v338_v56 }
  0xe9   :  { %275 = vst.msk [vmem:[%s503_s3 + $0x14] sm:$0xf] %vm269_vm2, %v328_v57  ;;  %283 = vst.msk [vmem:[%s503_s3 + $0x34] sm:$0xf] %vm269_vm2, %v336_v58 }

// kernel: decoder_forward.8
= control target key start
LH: loop header
LB: loop body
LE: loop exit
PB: predicated region body
PF: predicated region fallthrough
CT: control target
= control target key end

     0   :  { %10 = vsyncpa [#allocation3], 0  ;;  %s1796_s18 = smov 0   ;;  %s2013_s0 = inlined_call_operand.vmem [shape: bf16[2,6,6,16], index: 0, kind: input, shape index: {}]   ;;  %s2014_s1 = inlined_call_operand.vmem [shape: bf16[2,6,6,16], index: 1, kind: input, shape index: {}]   ;;  %s2015_s2 = inlined_call_operand.vmem [shape: bf16[9,16,16], index: 2, kind: input, shape index: {}]   ;;  %s2016_s3 = inlined_call_operand.vmem [shape: bf16[9,16,16], index: 3, kind: input, shape index: {}]   ;;  %s2017_s4 = inlined_call_operand.hbm [shape: f32[1,16], index: 4, kind: input, shape index: {}]   ;;  %s2018_s5 = inlined_call_operand.vmem [shape: bf16[2,4,4,16], index: 5, kind: output, shape index: {}]  }
   0x1 LB: > { %s1802_s19 = sadd.s32 4294967295, %s1757_s18   ;;  %p1419_p0 = scmp.ge.s32.totalorder %s1757_s18, 1  ;;  %s1757_s18 = sphi %s1796_s18, %s16_s18  }
   0x2   : > { %p162_p1 = scmp.lt.s32.totalorder %s1757_s18, 3  ;;  %p2019_p3 = scmp.eq.s32.totalorder %s1802_s19, 0 }
   0x3   : > { %s1763_s21 = smov [#allocation2]   ;;  %s1715_s26 = scalar_lea.hbm %s2017_s4, 16 }
   0x4   : > { %p1806_p2 = pnand %p1419_p0, %p162_p1  ;;  %s181_s22 = sshll.u32 %s1763_s21, 4  ;;  %s182_s22 = int_to_ptr.vmem [resolvable:$true] %s181_s22 }
   0x5   : > { %p1716_p6 = scmp.ne.s32.totalorder %s2017_s4, %s1715_s26  ;;  %p1722_p10 = scmp.lt.u32.totalorder %s1715_s26, %s2017_s4 }
   0x6   : > { %s2021_s20 = scalar_select %p1806_p2, 1, 0 }
   0x7   : > { %p1666_p4 = pneg %p1806_p2 }
   0x9   : > { %p1815_p5 = pnand %p2019_p3, %p1666_p4 }
   0xb   : > { %p1717_p7 = pneg %p1815_p5 }
   0xd   : > { %p1718_p8 = pnand %p1717_p7, %p1716_p6 }
   0xf   : > { %p1719_p9 = pneg %p1718_p8 }
  0x11   : > { %p1724_p11 = pnand %p1722_p10, %p1719_p9 }
  0x13   : > { %1727 = shalt.err (!%p1724_p11)
}
  0x14   : > { %s1728_s6 = scalar_lea.vmem %s182_s22, 16  ;;  %s1735_s7 = scalar_lea.vmem %s182_s22, 32 }
  0x15   : > { %p1729_p12 = scmp.ne.s32.totalorder %s182_s22, %s1728_s6  ;;  %p1736_p1 = scmp.lt.s32.totalorder %s182_s22, %s182_s22 }
  0x16   : > { %p1737_p4 = scmp.lt.s32.totalorder %s1735_s7, %s1728_s6 }
  0x17   : > { %p1731_p13 = pnand %p1729_p12, %p1717_p7 }
  0x18   : > { %p1738_p3 = por %p1737_p4, %p1736_p1 }
  0x19   : > { %p1732_p0 = pneg %p1731_p13 }
  0x1b   : > { %p1739_p2 = pnand %p1738_p3, %p1732_p0 }
  0x1d   : > { %1742 = shalt.err (!%p1739_p2)
}
  0x1e   : > { %1669 = dma.hbm_to_vmem [thread:$0]  (!%p1815_p5), %s2017_s4, 16, %s182_s22, [#allocation3]  }
  0x1f   : > { %p2023_p6 = scmp.ne.s32.totalorder %s2021_s20, 0 }
  0x20   : > { %p2024_p8 = scmp.eq.s32.totalorder (!%p2023_p6), %s1802_s19, 0 }
  0x21   : > { %210 = sbr.rel (%p2023_p6) target bundleno = 337 (0x151), region = 40 }
  0x28   : > { %1752 = dma.done.wait (%p2024_p8), [#allocation3], 16   ;;  %p2025_p7 = pmov %p2024_p8 }
  0x29   : > { %p243_p9 = scmp.lt.s32.totalorder %s1802_s19, 1  ;;  %v1858_v0 = vld [vmem:[#allocation2] ss:$0 sm:$0xff]  ;;  %s1860_s23 = smov 0  }
  0x2a   : > { %1754 = vsyncadd (%p2025_p7), [#allocation3], 4294967280 }
  0x2b   : > { %s2027_s19 = smov (!%p243_p9, %s1802_s19), 1 }
  0x2c   : > { %s1661_s10 = smul.u32 24, %s2027_s19  ;;  %s1516_s11 = sshll.u32 %s2027_s19, 3 }
  0x2d   : > { %s1846_s14 = scalar_lea.vmem %s2018_s5, %s1516_s11 }
  0x2e   : > { %s1851_s17 = scalar_lea.vmem %s2013_s0, %s1661_s10  ;;  %s1856_s22 = scalar_lea.vmem %s2014_s1, %s1661_s10 }
  0x2f LB: >> { %v1691_v1 = vld [vmem:[%s2016_s3] sm:$0xff]   ;;  %v1764_v2 = vmov 0.0   ;;  %vm1765_vm0 = vmmov 0   ;;  %s1428_s27 = sshll.u32 %s1761_s23, 2  ;;  %vm282_vm1 = vcmask 130048   ;;  %v1695_v4 = vld [vmem:[%s2015_s2 + $0x8] sm:$0xff]   ;;  %s1761_s23 = sphi %s1860_s23, %s265_s23  }
  0x30   : >> { %1553 = vmatprep.subr.bf16.mxu0 %v1764_v2  ;;  %1559 = vmatprep.subr.bf16.mxu1 %v1764_v2  ;;  %v1692_v3 = vld [vmem:[%s2015_s2] sm:$0xff]   ;;  %s1879_s28 = scalar_lea.vmem %s1856_s22, %s1428_s27  ;;  %s1882_s29 = scalar_lea.vmem %s1851_s17, %s1428_s27  ;;  %v1696_v7 = vld [vmem:[%s2016_s3 + $0x8] sm:$0xff]   ;;  %v1697_v16 = vld [vmem:[%s2015_s2 + $0x10] sm:$0xff]   ;;  %vm1313_vm2 = vcmask 123904  }
  0x31   : >> { %1554 = vmatpush3.bf16.msra.mxu0 %v1691_v1  ;;  %1555 = vmatprep.mubr.msk.bf16.mxu0 %vm1765_vm0, %v1764_v2  ;;  %v271_v5 = vld [vmem:[%s1879_s28] sm:$0x7]  ;;  %v1698_v17 = vld [vmem:[%s2016_s3 + $0x10] sm:$0xff]   ;;  %v1699_v22 = vld [vmem:[%s2015_s2 + $0x18] sm:$0xff]   ;;  %s1513_s21 = sshll.u32 %s1761_s23, 1  ;;  %s265_s23 = sadd.s32 1, %s1761_s23  }
  0x32   : >> { %1560 = vmatpush3.bf16.msra.mxu1 %v1692_v3  ;;  %1561 = vmatprep.mubr.msk.bf16.mxu1 %vm1765_vm0, %v1764_v2  ;;  %v268_v6 = vld [vmem:[%s1882_s29] sm:$0x7]  ;;  %v1441_v8 = vcombine.low %v271_v5, %v271_v5  ;;  %v1700_v23 = vld [vmem:[%s2016_s3 + $0x18] sm:$0xff]   ;;  %v1453_v24 = vld [vmem:[%s1882_s29 + $0x4] sm:$0x7]  ;;  %s1312_s19 = scalar_lea.vmem %s1846_s14, %s1513_s21  ;;  %p262_p2 = scmp.ge.s32.totalorder %s265_s23, 4  }
  0x33   : >> { %1565 = vmatprep.subr.bf16.mxu0 %v1764_v2  ;;  %1571 = vmatprep.subr.bf16.mxu1 %v1764_v2  ;;  %v1436_v9 = vcombine.low %v268_v6, %v268_v6  ;;  %v1455_v25 = vld [vmem:[%s1879_s28 + $0x4] sm:$0x7]  ;;  %v1466_v26 = vcombine.low %v1453_v24, %v1453_v24  ;;  %v1705_v38 = vld [vmem:[%s2015_s2 + $0x28] sm:$0xff]   ;;  %v1707_v42 = vld [vmem:[%s2015_s2 + $0x30] sm:$0xff]  }
  0x34   : >> { %1556 = vmatmul.mubr.msk.bf16.vlgmr.msra.gmra.mrb[0].mxu0 %vm282_vm1, %v271_v5  ;;  %v445_v10 = vshrl.u32 %v1441_v8, 16  ;;  %v447_v11 = vshll.u32 %v1441_v8, 16  ;;  %v558_v20 = vrot.slane %v1441_v8, 1  ;;  %v1471_v27 = vcombine.low %v1455_v25, %v1455_v25  ;;  %v1703_v30 = vld [vmem:[%s2015_s2 + $0x20] sm:$0xff]   ;;  %v1706_v39 = vld [vmem:[%s2016_s3 + $0x28] sm:$0xff]   ;;  %v1708_v43 = vld [vmem:[%s2016_s3 + $0x30] sm:$0xff]  }
  0x35   : >> { %1562 = vmatmul.mubr.msk.bf16.vlgmr.msra.gmra.mrb[0].mxu1 %vm282_vm1, %v268_v6  ;;  %1566 = vmatpush3.bf16.msra.mxu0 %v1695_v4  ;;  %v382_v12 = vshrl.u32 %v1436_v9, 16  ;;  %v384_v13 = vshll.u32 %v1436_v9, 16  ;;  %v504_v21 = vrot.slane %v1436_v9, 1  ;;  %v731_v28 = vshll.u32 %v1466_v26, 16  ;;  %v1704_v31 = vld [vmem:[%s2016_s3 + $0x20] sm:$0xff]   ;;  %v1711_v50 = vld [vmem:[%s2015_s2 + $0x38] sm:$0xff]  }
  0x36   : >> { %1572 = vmatpush3.bf16.msra.mxu1 %v1696_v7  ;;  %1567 = vmatprep.mubr.msk.bf16.mxu0 %vm1765_vm0, %v1764_v2  ;;  %v449_v14 = vrot.slane %v447_v11, 1  ;;  %v794_v29 = vshll.u32 %v1471_v27, 16  ;;  %v729_v32 = vshrl.u32 %v1466_v26, 16  ;;  %v792_v34 = vshrl.u32 %v1471_v27, 16  ;;  %v1483_v44 = vld [vmem:[%s1882_s29 + $0x8] sm:$0x7] }
  0x37   : >> { %1573 = vmatprep.mubr.msk.bf16.mxu1 %vm1765_vm0, %v1764_v2  ;;  %1577 = vmatprep.subr.bf16.mxu0 %v1764_v2  ;;  %v386_v15 = vrot.slane %v384_v13, 1  ;;  %v733_v33 = vrot.slane %v731_v28, 1  ;;  %v851_v40 = vrot.slane %v1466_v26, 1  ;;  %v905_v41 = vrot.slane %v1471_v27, 1  ;;  %v1485_v45 = vld [vmem:[%s1879_s28 + $0x8] sm:$0x7] }
  0x38   : >> { %1583 = vmatprep.subr.bf16.mxu1 %v1764_v2  ;;  %v450_v18 = vor.u32 %v449_v14, %v445_v10  ;;  %v796_v35 = vrot.slane %v794_v29, 1  ;;  %v1496_v46 = vcombine.low %v1483_v44, %v1483_v44  ;;  %v1501_v47 = vcombine.low %v1485_v45, %v1485_v45  ;;  %v1712_v51 = vld [vmem:[%s2016_s3 + $0x38] sm:$0xff]   ;;  %v1713_v58 = vld [vmem:[%s2015_s2 + $0x40] sm:$0xff]  }
  0x39   : >> { %v387_v19 = vor.u32 %v386_v15, %v382_v12  ;;  %v734_v36 = vor.u32 %v733_v33, %v729_v32  ;;  %v1714_v59 = vld [vmem:[%s2016_s3 + $0x40] sm:$0xff]  }
  0x3a   : >> { %v797_v37 = vor.u32 %v796_v35, %v792_v34  ;;  %v1078_v48 = vshll.u32 %v1496_v46, 16  ;;  %v1141_v49 = vshll.u32 %v1501_v47, 16  ;;  %v1076_v52 = vshrl.u32 %v1496_v46, 16 }
  0x3b   : >> { %v1139_v54 = vshrl.u32 %v1501_v47, 16  ;;  %v1198_v60 = vrot.slane %v1496_v46, 1  ;;  %v1252_v61 = vrot.slane %v1501_v47, 1 }
  0x3c   : >> { %1568 = vmatmul.mubr.msk.bf16.vlgmr.msra.gmra.mrb[4].mxu0 %vm282_vm1, %v387_v19  ;;  %v1080_v53 = vrot.slane %v1078_v48, 1  ;;  %v1143_v55 = vrot.slane %v1141_v49, 1 }
  0x3d   : >> { %1574 = vmatmul.mubr.msk.bf16.vlgmr.msra.gmra.mrb[4].mxu1 %vm282_vm1, %v450_v18  ;;  %1578 = vmatpush3.bf16.msra.mxu0 %v1697_v16 }
  0x3e   : >> { %1584 = vmatpush3.bf16.msra.mxu1 %v1698_v17  ;;  %1579 = vmatprep.mubr.msk.bf16.mxu0 %vm1765_vm0, %v1764_v2  ;;  %v1081_v56 = vor.u32 %v1080_v53, %v1076_v52  ;;  %v1144_v57 = vor.u32 %v1143_v55, %v1139_v54 }
  0x3f   : >> { %1585 = vmatprep.mubr.msk.bf16.mxu1 %vm1765_vm0, %v1764_v2  ;;  %1589 = vmatprep.subr.bf16.mxu0 %v1764_v2 }
  0x40   : >> { %1595 = vmatprep.subr.bf16.mxu1 %v1764_v2 }
  0x44   : >> { %1580 = vmatmul.mubr.msk.bf16.vlgmr.msra.gmra.mrb[8].mxu0 %vm282_vm1, %v504_v21 }
  0x45   : >> { %1586 = vmatmul.mubr.msk.bf16.vlgmr.msra.gmra.mrb[8].mxu1 %vm282_vm1, %v558_v20  ;;  %1590 = vmatpush3.bf16.msra.mxu0 %v1699_v22 }
  0x46   : >> { %1596 = vmatpush3.bf16.msra.mxu1 %v1700_v23  ;;  %1591 = vmatprep.mubr.msk.bf16.mxu0 %vm1765_vm0, %v1764_v2 }
  0x47   : >> { %1597 = vmatprep.mubr.msk.bf16.mxu1 %vm1765_vm0, %v1764_v2  ;;  %1601 = vmatprep.subr.bf16.mxu0 %v1764_v2 }
  0x48   : >> { %1607 = vmatprep.subr.bf16.mxu1 %v1764_v2 }
  0x4c   : >> { %1592 = vmatmul.mubr.msk.bf16.vlgmr.msra.gmra.mrb[12].mxu0 %vm282_vm1, %v1453_v24 }
  0x4d   : >> { %1598 = vmatmul.mubr.msk.bf16.vlgmr.msra.gmra.mrb[12].mxu1 %vm282_vm1, %v1455_v25  ;;  %1602 = vmatpush3.bf16.msra.mxu0 %v1703_v30 }
  0x4e   : >> { %1608 = vmatpush3.bf16.msra.mxu1 %v1704_v31  ;;  %1603 = vmatprep.mubr.msk.bf16.mxu0 %vm1765_vm0, %v1764_v2 }
  0x4f   : >> { %1609 = vmatprep.mubr.msk.bf16.mxu1 %vm1765_vm0, %v1764_v2  ;;  %1613 = vmatprep.subr.bf16.mxu0 %v1764_v2 }
  0x50   : >> { %1619 = vmatprep.subr.bf16.mxu1 %v1764_v2 }
  0x54   : >> { %1604 = vmatmul.mubr.msk.bf16.vlgmr.msra.gmra.mrb[16].mxu0 %vm282_vm1, %v734_v36 }
  0x55   : >> { %1610 = vmatmul.mubr.msk.bf16.vlgmr.msra.gmra.mrb[16].mxu1 %vm282_vm1, %v797_v37  ;;  %1614 = vmatpush3.bf16.msra.mxu0 %v1705_v38 }
  0x56   : >> { %1620 = vmatpush3.bf16.msra.mxu1 %v1706_v39  ;;  %1615 = vmatprep.mubr.msk.bf16.mxu0 %vm1765_vm0, %v1764_v2 }
  0x57   : >> { %1621 = vmatprep.mubr.msk.bf16.mxu1 %vm1765_vm0, %v1764_v2  ;;  %1625 = vmatprep.subr.bf16.mxu0 %v1764_v2 }
  0x58   : >> { %1631 = vmatprep.subr.bf16.mxu1 %v1764_v2 }
  0x5c   : >> { %1616 = vmatmul.mubr.msk.bf16.vlgmr.msra.gmra.mrb[20].mxu0 %vm282_vm1, %v851_v40 }
  0x5d   : >> { %1622 = vmatmul.mubr.msk.bf16.vlgmr.msra.gmra.mrb[20].mxu1 %vm282_vm1, %v905_v41  ;;  %1626 = vmatpush3.bf16.msra.mxu0 %v1707_v42 }
  0x5e   : >> { %1632 = vmatpush3.bf16.msra.mxu1 %v1708_v43  ;;  %1627 = vmatprep.mubr.msk.bf16.mxu0 %vm1765_vm0, %v1764_v2 }
  0x5f   : >> { %1633 = vmatprep.mubr.msk.bf16.mxu1 %vm1765_vm0, %v1764_v2  ;;  %1637 = vmatprep.subr.bf16.mxu0 %v1764_v2 }
  0x60   : >> { %1643 = vmatprep.subr.bf16.mxu1 %v1764_v2 }
  0x64   : >> { %1628 = vmatmul.mubr.msk.bf16.vlgmr.msra.gmra.mrb[24].mxu0 %vm282_vm1, %v1483_v44 }
  0x65   : >> { %1634 = vmatmul.mubr.msk.bf16.vlgmr.msra.gmra.mrb[24].mxu1 %vm282_vm1, %v1485_v45  ;;  %1638 = vmatpush3.bf16.msra.mxu0 %v1711_v50 }
  0x66   : >> { %1644 = vmatpush3.bf16.msra.mxu1 %v1712_v51  ;;  %1639 = vmatprep.mubr.msk.bf16.mxu0 %vm1765_vm0, %v1764_v2 }
  0x67   : >> { %1645 = vmatprep.mubr.msk.bf16.mxu1 %vm1765_vm0, %v1764_v2  ;;  %1649 = vmatprep.subr.bf16.mxu0 %v1764_v2 }
  0x68   : >> { %1655 = vmatprep.subr.bf16.mxu1 %v1764_v2 }
  0x6c   : >> { %1640 = vmatmul.mubr.msk.bf16.vlgmr.msra.gmra.mrb[28].mxu0 %vm282_vm1, %v1081_v56 }
  0x6d   : >> { %1646 = vmatmul.mubr.msk.bf16.vlgmr.msra.gmra.mrb[28].mxu1 %vm282_vm1, %v1144_v57  ;;  %1650 = vmatpush3.bf16.msra.mxu0 %v1713_v58 }
  0x6e   : >> { %1656 = vmatpush3.bf16.msra.mxu1 %v1714_v59  ;;  %1651 = vmatprep.mubr.msk.bf16.mxu0 %vm1765_vm0, %v1764_v2 }
  0x6f   : >> { %1657 = vmatprep.mubr.msk.bf16.mxu1 %vm1765_vm0, %v1764_v2 }
  0x74   : >> { %1652 = vmatmul.mubr.msk.bf16.vlgmr.msra.gmra.mrb[32].mxu0 %vm282_vm1, %v1198_v60 }
  0x75   : >> { %1658 = vmatmul.mubr.msk.bf16.vlgmr.msra.gmra.mrb[32].mxu1 %vm282_vm1, %v1252_v61 }
 0x107   : >> { %v320_v62 = vpop.f32.mrb[0].mxu0 }
 0x108   : >> { %v369_v63 = vpop.f32.mrb[0].mxu1  ;;  %v1557_v1 = vpop.f32.mrb[1].mxu0 }
 0x109   : >> { %v370_v3 = vadd.f32 %v369_v63, %v320_v62  ;;  %v1563_v4 = vpop.f32.mrb[1].mxu1  ;;  %v323_v5 = vpop.f32.mrb[2].mxu0 }
 0x10a   : >> { %v372_v6 = vpop.f32.mrb[2].mxu1  ;;  %v1558_v7 = vpop.f32.mrb[3].mxu0 }
 0x10b   : >> { %v1564_v8 = vpop.f32.mrb[3].mxu1 }
 0x10f   : >> { %v431_v9 = vpop.f32.mrb[4].mxu0 }
 0x110   : >> { %v494_v10 = vpop.f32.mrb[4].mxu1  ;;  %v437_v11 = vadd.f32 %v431_v9, %v370_v3  ;;  %v1569_v12 = vpop.f32.mrb[5].mxu0 }
 0x111   : >> { %v1575_v2 = vpop.f32.mrb[5].mxu1  ;;  %v434_v13 = vpop.f32.mrb[6].mxu0 }
 0x112   : >> { %v497_v14 = vpop.f32.mrb[6].mxu1  ;;  %v500_v15 = vadd.f32 %v494_v10, %v437_v11  ;;  %v1570_v16 = vpop.f32.mrb[7].mxu0 }
 0x113   : >> { %v1576_v17 = vpop.f32.mrb[7].mxu1 }
 0x117   : >> { %v548_v18 = vpop.f32.mrb[8].mxu0 }
 0x118   : >> { %v602_v19 = vpop.f32.mrb[8].mxu1  ;;  %v554_v20 = vadd.f32 %v548_v18, %v500_v15  ;;  %v1581_v21 = vpop.f32.mrb[9].mxu0 }
 0x119   : >> { %v1587_v22 = vpop.f32.mrb[9].mxu1  ;;  %v551_v23 = vpop.f32.mrb[10].mxu0 }
 0x11a   : >> { %v605_v24 = vpop.f32.mrb[10].mxu1  ;;  %v608_v25 = vadd.f32 %v602_v19, %v554_v20  ;;  %v1582_v26 = vpop.f32.mrb[11].mxu0 }
 0x11b   : >> { %v1588_v27 = vpop.f32.mrb[11].mxu1 }
 0x11f   : >> { %v662_v28 = vpop.f32.mrb[12].mxu0 }
 0x120   : >> { %v715_v29 = vpop.f32.mrb[12].mxu1  ;;  %v668_v30 = vadd.f32 %v662_v28, %v608_v25  ;;  %v1593_v31 = vpop.f32.mrb[13].mxu0 }
 0x121   : >> { %v1599_v32 = vpop.f32.mrb[13].mxu1  ;;  %v665_v33 = vpop.f32.mrb[14].mxu0 }
 0x122   : >> { %v718_v34 = vpop.f32.mrb[14].mxu1  ;;  %v721_v35 = vadd.f32 %v715_v29, %v668_v30  ;;  %v1594_v36 = vpop.f32.mrb[15].mxu0 }
 0x123   : >> { %v1600_v37 = vpop.f32.mrb[15].mxu1 }
 0x127   : >> { %v778_v38 = vpop.f32.mrb[16].mxu0 }
 0x128   : >> { %v841_v39 = vpop.f32.mrb[16].mxu1  ;;  %v784_v40 = vadd.f32 %v778_v38, %v721_v35  ;;  %v1605_v41 = vpop.f32.mrb[17].mxu0 }
 0x129   : >> { %v1611_v42 = vpop.f32.mrb[17].mxu1  ;;  %v781_v43 = vpop.f32.mrb[18].mxu0 }
 0x12a   : >> { %v844_v44 = vpop.f32.mrb[18].mxu1  ;;  %v847_v45 = vadd.f32 %v841_v39, %v784_v40  ;;  %v1606_v46 = vpop.f32.mrb[19].mxu0 }
 0x12b   : >> { %v1612_v47 = vpop.f32.mrb[19].mxu1 }
 0x12f   : >> { %v895_v48 = vpop.f32.mrb[20].mxu0 }
 0x130   : >> { %v949_v49 = vpop.f32.mrb[20].mxu1  ;;  %v901_v50 = vadd.f32 %v895_v48, %v847_v45  ;;  %v1617_v51 = vpop.f32.mrb[21].mxu0 }
 0x131   : >> { %v1623_v52 = vpop.f32.mrb[21].mxu1  ;;  %v898_v53 = vpop.f32.mrb[22].mxu0 }
 0x132   : >> { %v952_v54 = vpop.f32.mrb[22].mxu1  ;;  %v955_v55 = vadd.f32 %v949_v49, %v901_v50  ;;  %v1618_v56 = vpop.f32.mrb[23].mxu0 }
 0x133   : >> { %v1624_v57 = vpop.f32.mrb[23].mxu1 }
 0x137   : >> { %v1009_v58 = vpop.f32.mrb[24].mxu0 }
 0x138   : >> { %v1062_v59 = vpop.f32.mrb[24].mxu1  ;;  %v1015_v60 = vadd.f32 %v1009_v58, %v955_v55  ;;  %v1629_v61 = vpop.f32.mrb[25].mxu0 }
 0x139   : >> { %v1635_v62 = vpop.f32.mrb[25].mxu1  ;;  %v1012_v63 = vpop.f32.mrb[26].mxu0 }
 0x13a   : >> { %v1065_v1 = vpop.f32.mrb[26].mxu1  ;;  %v1068_v3 = vadd.f32 %v1062_v59, %v1015_v60  ;;  %v1630_v4 = vpop.f32.mrb[27].mxu0 }
 0x13b   : >> { %v1636_v5 = vpop.f32.mrb[27].mxu1 }
 0x13f   : >> { %v1125_v6 = vpop.f32.mrb[28].mxu0 }
 0x140   : >> { %v1188_v7 = vpop.f32.mrb[28].mxu1  ;;  %v1131_v8 = vadd.f32 %v1125_v6, %v1068_v3  ;;  %v1641_v9 = vpop.f32.mrb[29].mxu0 }
 0x141   : >> { %v1647_v10 = vpop.f32.mrb[29].mxu1  ;;  %v1128_v11 = vpop.f32.mrb[30].mxu0 }
 0x142   : >> { %v1191_v12 = vpop.f32.mrb[30].mxu1  ;;  %v1194_v2 = vadd.f32 %v1188_v7, %v1131_v8  ;;  %v1642_v13 = vpop.f32.mrb[31].mxu0 }
 0x143   : >> { %v1648_v14 = vpop.f32.mrb[31].mxu1 }
 0x147   : >> { %v1242_v15 = vpop.f32.mrb[32].mxu0 }
 0x148   : >> { %v1296_v16 = vpop.f32.mrb[32].mxu1  ;;  %v1248_v17 = vadd.f32 %v1242_v15, %v1194_v2  ;;  %v1653_v18 = vpop.f32.mrb[33].mxu0 }
 0x149   : >> { %v1659_v19 = vpop.f32.mrb[33].mxu1  ;;  %v1245_v20 = vpop.f32.mrb[34].mxu0 }
 0x14a   : >> { %v1299_v21 = vpop.f32.mrb[34].mxu1  ;;  %v1302_v22 = vadd.f32 %v1296_v16, %v1248_v17  ;;  %v1654_v23 = vpop.f32.mrb[35].mxu0  ;;  %264 = sbr.rel (!%p262_p2) target bundleno = 47 (0x2f), region = 108 }
 0x14b   : >> { %v1660_v24 = vpop.f32.mrb[35].mxu1 }
 0x14c   : >> { %v1309_v25 = vadd.f32 %v1858_v0, %v1302_v22 }
 0x14e   : >> { %v1310_v26 = vpack.c.bf16 %v1309_v25, %v1309_v25 }
 0x150   : >> { %1314 = vst.msk [vmem:[%s1312_s19] sm:$0x3] %vm1313_vm2, %v1310_v26 }
 0x151 PF: > { %s16_s18 = sadd.s32 1, %s1757_s18  }
 0x152   : > { %p13_p3 = scmp.ge.s32.totalorder %s16_s18, 4  }
 0x154   :  { %15 = sbr.rel (!%p13_p3) target bundleno = 1 (0x1), region = 119 }
 0x15b   :  { %1336 = vsyncpa [#allocation3], 1 }
 0x15c   :  { %1338 = vsyncpa [#allocation3 + $0x1], 1 }

// kernel: decoder_forward.10
= control target key start
LH: loop header
LB: loop body
LE: loop exit
PB: predicated region body
PF: predicated region fallthrough
CT: control target
= control target key end

     0   :  { %10 = vsyncpa [#allocation3], 0  ;;  %s1701_s18 = smov 0   ;;  %s1942_s0 = inlined_call_operand.vmem [shape: bf16[2,10,10,8], index: 0, kind: input, shape index: {}]   ;;  %s1943_s1 = inlined_call_operand.vmem [shape: bf16[2,10,10,8], index: 1, kind: input, shape index: {}]   ;;  %s1944_s2 = inlined_call_operand.vmem [shape: bf16[9,8,8], index: 2, kind: input, shape index: {}]   ;;  %s1945_s3 = inlined_call_operand.vmem [shape: bf16[9,8,8], index: 3, kind: input, shape index: {}]   ;;  %s1946_s4 = inlined_call_operand.hbm [shape: f32[1,8], index: 4, kind: input, shape index: {}]   ;;  %s1947_s5 = inlined_call_operand.vmem [shape: bf16[2,8,8,8], index: 5, kind: output, shape index: {}]  }
   0x1 LB: > { %s1707_s19 = sadd.s32 4294967295, %s1662_s18   ;;  %p1369_p0 = scmp.ge.s32.totalorder %s1662_s18, 1  ;;  %s1662_s18 = sphi %s1701_s18, %s16_s18  }
   0x2   : > { %p162_p1 = scmp.lt.s32.totalorder %s1662_s18, 3  ;;  %p1948_p3 = scmp.eq.s32.totalorder %s1707_s19, 0 }
   0x3   : > { %s1668_s21 = smov [#allocation2]   ;;  %s1620_s26 = scalar_lea.hbm %s1946_s4, 16 }
   0x4   : > { %p1711_p2 = pnand %p1369_p0, %p162_p1  ;;  %s181_s22 = sshll.u32 %s1668_s21, 4  ;;  %s182_s22 = int_to_ptr.vmem [resolvable:$true] %s181_s22 }
   0x5   : > { %p1621_p6 = scmp.ne.s32.totalorder %s1946_s4, %s1620_s26  ;;  %p1627_p10 = scmp.lt.u32.totalorder %s1620_s26, %s1946_s4 }
   0x6   : > { %s1950_s20 = scalar_select %p1711_p2, 1, 0 }
   0x7   : > { %p1589_p4 = pneg %p1711_p2 }
   0x9   : > { %p1720_p5 = pnand %p1948_p3, %p1589_p4 }
   0xb   : > { %p1622_p7 = pneg %p1720_p5 }
   0xd   : > { %p1623_p8 = pnand %p1622_p7, %p1621_p6 }
   0xf   : > { %p1624_p9 = pneg %p1623_p8 }
  0x11   : > { %p1629_p11 = pnand %p1627_p10, %p1624_p9 }
  0x13   : > { %1632 = shalt.err (!%p1629_p11)
}
  0x14   : > { %s1633_s6 = scalar_lea.vmem %s182_s22, 16  ;;  %s1640_s7 = scalar_lea.vmem %s182_s22, 32 }
  0x15   : > { %p1634_p12 = scmp.ne.s32.totalorder %s182_s22, %s1633_s6  ;;  %p1641_p1 = scmp.lt.s32.totalorder %s182_s22, %s182_s22 }
  0x16   : > { %p1642_p4 = scmp.lt.s32.totalorder %s1640_s7, %s1633_s6 }
  0x17   : > { %p1636_p13 = pnand %p1634_p12, %p1622_p7 }
  0x18   : > { %p1643_p3 = por %p1642_p4, %p1641_p1 }
  0x19   : > { %p1637_p0 = pneg %p1636_p13 }
  0x1b   : > { %p1644_p2 = pnand %p1643_p3, %p1637_p0 }
  0x1d   : > { %1647 = shalt.err (!%p1644_p2)
}
  0x1e   : > { %1592 = dma.hbm_to_vmem [thread:$0]  (!%p1720_p5), %s1946_s4, 16, %s182_s22, [#allocation3]  }
  0x1f   : > { %p1952_p6 = scmp.ne.s32.totalorder %s1950_s20, 0 }
  0x20   : > { %p1953_p8 = scmp.eq.s32.totalorder (!%p1952_p6), %s1707_s19, 0 }
  0x21   : > { %210 = sbr.rel (%p1952_p6) target bundleno = 337 (0x151), region = 40 }
  0x28   : > { %1657 = dma.done.wait (%p1953_p8), [#allocation3], 16   ;;  %p1954_p7 = pmov %p1953_p8 }
  0x29   : > { %p243_p9 = scmp.lt.s32.totalorder %s1707_s19, 1  ;;  %v1763_v0 = vld [vmem:[#allocation2] ss:$0 sm:$0xff]  ;;  %s1765_s23 = smov 0  }
  0x2a   : > { %1659 = vsyncadd (%p1954_p7), [#allocation3], 4294967280 }
  0x2b   : > { %s1956_s19 = smov (!%p243_p9, %s1707_s19), 1 }
  0x2c   : > { %s1584_s10 = smul.u32 80, %s1956_s19  ;;  %s1437_s11 = sshll.u32 %s1956_s19, 5 }
  0x2d   : > { %s1751_s14 = scalar_lea.vmem %s1947_s5, %s1437_s11 }
  0x2e   : > { %s1756_s17 = scalar_lea.vmem %s1942_s0, %s1584_s10  ;;  %s1761_s22 = scalar_lea.vmem %s1943_s1, %s1584_s10 }
  0x2f LB: >> { %v276_v1 = vld [vmem:[%s1945_s3] sm:$0xf]  ;;  %vm281_vm0 = vcmask 1043456   ;;  %v1669_v3 = vmov 0.0   ;;  %v1383_v6 = vld [vmem:[%s1944_s2 + $0x4] sm:$0xf]  ;;  %s1666_s23 = sphi %s1765_s23, %s265_s23  }
  0x30   : >> { %v275_v2 = vld [vmem:[%s1944_s2] sm:$0xf]  ;;  %1476 = vmatprep.subr.bf16.mxu0 %v1669_v3  ;;  %1482 = vmatprep.subr.bf16.mxu1 %v1669_v3  ;;  %v283_v4 = vsel %vm281_vm0, %v276_v1, 0  ;;  %s1438_s29 = sshll.u32 %s1666_s23, 3  ;;  %vm277_vm1 = vcmask 64512   ;;  %vm1670_vm2 = vmmov 0  }
  0x31   : >> { %v329_v5 = vsel %vm281_vm0, %v275_v2, 0  ;;  %1477 = vmatpush3.bf16.msra.mxu0 %v283_v4  ;;  %v1386_v7 = vld [vmem:[%s1945_s3 + $0x4] sm:$0xf]  ;;  %1478 = vmatprep.mubr.msk.bf16.mxu0 %vm1670_vm2, %v1669_v3  ;;  %s1792_s7 = scalar_lea.vmem %s1761_s22, %s1438_s29  ;;  %s1795_s8 = scalar_lea.vmem %s1756_s17, %s1438_s29  ;;  %v389_v8 = vsel %vm281_vm0, %v1383_v6, 0  ;;  %v1391_v20 = vld [vmem:[%s1945_s3 + $0x8] sm:$0xf] }
  0x32   : >> { %1483 = vmatpush3.bf16.msra.mxu1 %v329_v5  ;;  %1484 = vmatprep.mubr.msk.bf16.mxu1 %vm1670_vm2, %v1669_v3  ;;  %v450_v9 = vsel %vm281_vm0, %v1386_v7, 0  ;;  %v273_v10 = vld [vmem:[%s1792_s7] sm:$0xf]  ;;  %v274_v11 = vld [vmem:[%s1792_s7 + $0x4] sm:$0x1]  ;;  %v550_v25 = vsel %vm281_vm0, %v1391_v20, 0 }
  0x33   : >> { %v269_v12 = vld [vmem:[%s1795_s8] sm:$0xf]  ;;  %1488 = vmatprep.subr.bf16.mxu0 %v1669_v3  ;;  %1494 = vmatprep.subr.bf16.mxu1 %v1669_v3  ;;  %v1387_v13 = vcombine.low %v273_v10, %v274_v11  ;;  %v270_v14 = vld [vmem:[%s1795_s8 + $0x4] sm:$0x1]  ;;  %v1389_v22 = vld [vmem:[%s1944_s2 + $0x8] sm:$0xf] }
  0x34   : >> { %1479 = vmatmul.mubr.msk.bf16.vlgmr.msra.gmra.mrb[0].mxu0 %vm277_vm1, %v273_v10  ;;  %v1384_v15 = vcombine.low %v269_v12, %v270_v14  ;;  %v500_v27 = vsel %vm281_vm0, %v1389_v22, 0  ;;  %v1401_v28 = vld [vmem:[%s1945_s3 + $0xc] sm:$0xf]  ;;  %v1397_v32 = vld [vmem:[%s1792_s7 + $0x8] sm:$0xf]  ;;  %s1434_s21 = sshll.u32 %s1666_s23, 2 }
  0x35   : >> { %1485 = vmatmul.mubr.msk.bf16.vlgmr.msra.gmra.mrb[0].mxu1 %vm277_vm1, %v269_v12  ;;  %1489 = vmatpush3.bf16.msra.mxu0 %v389_v8  ;;  %v440_v16 = vshrl.u32 %v1387_v13, 16  ;;  %v442_v17 = vshll.u32 %v1387_v13, 16  ;;  %v545_v29 = vrot.slane %v1387_v13, 1  ;;  %v1399_v30 = vld [vmem:[%s1944_s2 + $0xc] sm:$0xf]  ;;  %v658_v34 = vsel %vm281_vm0, %v1401_v28, 0  ;;  %s1262_s19 = scalar_lea.vmem %s1751_s14, %s1434_s21 }
  0x36   : >> { %1495 = vmatpush3.bf16.msra.mxu1 %v450_v9  ;;  %1490 = vmatprep.mubr.msk.bf16.mxu0 %vm1670_vm2, %v1669_v3  ;;  %v379_v18 = vshrl.u32 %v1384_v15, 16  ;;  %v381_v19 = vshll.u32 %v1384_v15, 16  ;;  %v495_v31 = vrot.slane %v1384_v15, 1  ;;  %v1398_v33 = vld [vmem:[%s1792_s7 + $0xc] sm:$0x1]  ;;  %v609_v37 = vsel %vm281_vm0, %v1399_v30, 0 }
  0x37   : >> { %1496 = vmatprep.mubr.msk.bf16.mxu1 %vm1670_vm2, %v1669_v3  ;;  %1500 = vmatprep.subr.bf16.mxu0 %v1669_v3  ;;  %v444_v21 = vrot.slane %v442_v17, 1  ;;  %v1394_v35 = vld [vmem:[%s1795_s8 + $0x8] sm:$0xf]  ;;  %v1395_v36 = vld [vmem:[%s1795_s8 + $0xc] sm:$0x1]  ;;  %v1407_v38 = vcombine.low %v1397_v32, %v1398_v33  ;;  %vm1263_vm3 = vcmask 60416  }
  0x38   : >> { %1506 = vmatprep.subr.bf16.mxu1 %v1669_v3  ;;  %v383_v23 = vrot.slane %v381_v19, 1  ;;  %v1404_v39 = vcombine.low %v1394_v35, %v1395_v36  ;;  %v1406_v40 = vld [vmem:[%s1945_s3 + $0x10] sm:$0xf]  ;;  %v1411_v50 = vld [vmem:[%s1945_s3 + $0x14] sm:$0xf]  ;;  %s265_s23 = sadd.s32 1, %s1666_s23  }
  0x39   : >> { %v445_v24 = vor.u32 %v444_v21, %v440_v16  ;;  %v772_v41 = vshll.u32 %v1407_v38, 16  ;;  %v1403_v42 = vld [vmem:[%s1944_s2 + $0x10] sm:$0xf]  ;;  %v780_v44 = vsel %vm281_vm0, %v1406_v40, 0  ;;  %v770_v46 = vshrl.u32 %v1407_v38, 16  ;;  %p262_p2 = scmp.ge.s32.totalorder %s265_s23, 8  }
  0x3a   : >> { %v384_v26 = vor.u32 %v383_v23, %v379_v18  ;;  %v711_v43 = vshll.u32 %v1404_v39, 16  ;;  %v719_v45 = vsel %vm281_vm0, %v1403_v42, 0  ;;  %v709_v48 = vshrl.u32 %v1404_v39, 16  ;;  %v1409_v52 = vld [vmem:[%s1944_s2 + $0x14] sm:$0xf] }
  0x3b   : >> { %v774_v47 = vrot.slane %v772_v41, 1  ;;  %v880_v54 = vsel %vm281_vm0, %v1411_v50, 0  ;;  %v830_v55 = vsel %vm281_vm0, %v1409_v52, 0  ;;  %v1421_v56 = vld [vmem:[%s1945_s3 + $0x18] sm:$0xf]  ;;  %v875_v57 = vrot.slane %v1407_v38, 1 }
  0x3c   : >> { %1491 = vmatmul.mubr.msk.bf16.vlgmr.msra.gmra.mrb[4].mxu0 %vm277_vm1, %v384_v26  ;;  %v713_v49 = vrot.slane %v711_v43, 1  ;;  %v1419_v58 = vld [vmem:[%s1944_s2 + $0x18] sm:$0xf]  ;;  %v825_v59 = vrot.slane %v1404_v39, 1  ;;  %v1417_v60 = vld [vmem:[%s1792_s7 + $0x10] sm:$0xf] }
  0x3d   : >> { %1497 = vmatmul.mubr.msk.bf16.vlgmr.msra.gmra.mrb[4].mxu1 %vm277_vm1, %v445_v24  ;;  %1501 = vmatpush3.bf16.msra.mxu0 %v500_v27  ;;  %v775_v51 = vor.u32 %v774_v47, %v770_v46  ;;  %v1418_v61 = vld [vmem:[%s1792_s7 + $0x14] sm:$0x1]  ;;  %v988_v62 = vsel %vm281_vm0, %v1421_v56, 0  ;;  %v1414_v63 = vld [vmem:[%s1795_s8 + $0x10] sm:$0xf]  ;;  %v939_v2 = vsel %vm281_vm0, %v1419_v58, 0 }
  0x3e   : >> { %1507 = vmatpush3.bf16.msra.mxu1 %v550_v25  ;;  %1502 = vmatprep.mubr.msk.bf16.mxu0 %vm1670_vm2, %v1669_v3  ;;  %v714_v53 = vor.u32 %v713_v49, %v709_v48  ;;  %v1415_v1 = vld [vmem:[%s1795_s8 + $0x14] sm:$0x1]  ;;  %v1427_v4 = vcombine.low %v1417_v60, %v1418_v61  ;;  %v1426_v6 = vld [vmem:[%s1945_s3 + $0x1c] sm:$0xf]  ;;  %v1431_v16 = vld [vmem:[%s1945_s3 + $0x20] sm:$0xf] }
  0x3f   : >> { %1508 = vmatprep.mubr.msk.bf16.mxu1 %vm1670_vm2, %v1669_v3  ;;  %1512 = vmatprep.subr.bf16.mxu0 %v1669_v3  ;;  %v1424_v5 = vcombine.low %v1414_v63, %v1415_v1  ;;  %v1423_v8 = vld [vmem:[%s1944_s2 + $0x1c] sm:$0xf]  ;;  %v1110_v10 = vsel %vm281_vm0, %v1426_v6, 0  ;;  %v1429_v18 = vld [vmem:[%s1944_s2 + $0x20] sm:$0xf]  ;;  %v1210_v20 = vsel %vm281_vm0, %v1431_v16, 0 }
  0x40   : >> { %1518 = vmatprep.subr.bf16.mxu1 %v1669_v3  ;;  %v1102_v7 = vshll.u32 %v1427_v4, 16  ;;  %v1049_v11 = vsel %vm281_vm0, %v1423_v8, 0  ;;  %v1100_v12 = vshrl.u32 %v1427_v4, 16  ;;  %v1160_v21 = vsel %vm281_vm0, %v1429_v18, 0 }
  0x41   : >> { %v1041_v9 = vshll.u32 %v1424_v5, 16  ;;  %v1039_v14 = vshrl.u32 %v1424_v5, 16  ;;  %v1205_v22 = vrot.slane %v1427_v4, 1  ;;  %v1155_v23 = vrot.slane %v1424_v5, 1 }
  0x42   : >> { %v1104_v13 = vrot.slane %v1102_v7, 1 }
  0x43   : >> { %v1043_v15 = vrot.slane %v1041_v9, 1 }
  0x44   : >> { %1503 = vmatmul.mubr.msk.bf16.vlgmr.msra.gmra.mrb[8].mxu0 %vm277_vm1, %v495_v31  ;;  %v1105_v17 = vor.u32 %v1104_v13, %v1100_v12 }
  0x45   : >> { %1509 = vmatmul.mubr.msk.bf16.vlgmr.msra.gmra.mrb[8].mxu1 %vm277_vm1, %v545_v29  ;;  %1513 = vmatpush3.bf16.msra.mxu0 %v609_v37  ;;  %v1044_v19 = vor.u32 %v1043_v15, %v1039_v14 }
  0x46   : >> { %1519 = vmatpush3.bf16.msra.mxu1 %v658_v34  ;;  %1514 = vmatprep.mubr.msk.bf16.mxu0 %vm1670_vm2, %v1669_v3 }
  0x47   : >> { %1520 = vmatprep.mubr.msk.bf16.mxu1 %vm1670_vm2, %v1669_v3  ;;  %1524 = vmatprep.subr.bf16.mxu0 %v1669_v3 }
  0x48   : >> { %1530 = vmatprep.subr.bf16.mxu1 %v1669_v3 }
  0x4c   : >> { %1515 = vmatmul.mubr.msk.bf16.vlgmr.msra.gmra.mrb[12].mxu0 %vm277_vm1, %v1394_v35 }
  0x4d   : >> { %1521 = vmatmul.mubr.msk.bf16.vlgmr.msra.gmra.mrb[12].mxu1 %vm277_vm1, %v1397_v32  ;;  %1525 = vmatpush3.bf16.msra.mxu0 %v719_v45 }
  0x4e   : >> { %1531 = vmatpush3.bf16.msra.mxu1 %v780_v44  ;;  %1526 = vmatprep.mubr.msk.bf16.mxu0 %vm1670_vm2, %v1669_v3 }
  0x4f   : >> { %1532 = vmatprep.mubr.msk.bf16.mxu1 %vm1670_vm2, %v1669_v3  ;;  %1536 = vmatprep.subr.bf16.mxu0 %v1669_v3 }
  0x50   : >> { %1542 = vmatprep.subr.bf16.mxu1 %v1669_v3 }
  0x54   : >> { %1527 = vmatmul.mubr.msk.bf16.vlgmr.msra.gmra.mrb[16].mxu0 %vm277_vm1, %v714_v53 }
  0x55   : >> { %1533 = vmatmul.mubr.msk.bf16.vlgmr.msra.gmra.mrb[16].mxu1 %vm277_vm1, %v775_v51  ;;  %1537 = vmatpush3.bf16.msra.mxu0 %v830_v55 }
  0x56   : >> { %1543 = vmatpush3.bf16.msra.mxu1 %v880_v54  ;;  %1538 = vmatprep.mubr.msk.bf16.mxu0 %vm1670_vm2, %v1669_v3 }
  0x57   : >> { %1544 = vmatprep.mubr.msk.bf16.mxu1 %vm1670_vm2, %v1669_v3  ;;  %1548 = vmatprep.subr.bf16.mxu0 %v1669_v3 }
  0x58   : >> { %1554 = vmatprep.subr.bf16.mxu1 %v1669_v3 }
  0x5c   : >> { %1539 = vmatmul.mubr.msk.bf16.vlgmr.msra.gmra.mrb[20].mxu0 %vm277_vm1, %v825_v59 }
  0x5d   : >> { %1545 = vmatmul.mubr.msk.bf16.vlgmr.msra.gmra.mrb[20].mxu1 %vm277_vm1, %v875_v57  ;;  %1549 = vmatpush3.bf16.msra.mxu0 %v939_v2 }
  0x5e   : >> { %1555 = vmatpush3.bf16.msra.mxu1 %v988_v62  ;;  %1550 = vmatprep.mubr.msk.bf16.mxu0 %vm1670_vm2, %v1669_v3 }
  0x5f   : >> { %1556 = vmatprep.mubr.msk.bf16.mxu1 %vm1670_vm2, %v1669_v3  ;;  %1560 = vmatprep.subr.bf16.mxu0 %v1669_v3 }
  0x60   : >> { %1566 = vmatprep.subr.bf16.mxu1 %v1669_v3 }
  0x64   : >> { %1551 = vmatmul.mubr.msk.bf16.vlgmr.msra.gmra.mrb[24].mxu0 %vm277_vm1, %v1414_v63 }
  0x65   : >> { %1557 = vmatmul.mubr.msk.bf16.vlgmr.msra.gmra.mrb[24].mxu1 %vm277_vm1, %v1417_v60  ;;  %1561 = vmatpush3.bf16.msra.mxu0 %v1049_v11 }
  0x66   : >> { %1567 = vmatpush3.bf16.msra.mxu1 %v1110_v10  ;;  %1562 = vmatprep.mubr.msk.bf16.mxu0 %vm1670_vm2, %v1669_v3 }
  0x67   : >> { %1568 = vmatprep.mubr.msk.bf16.mxu1 %vm1670_vm2, %v1669_v3  ;;  %1572 = vmatprep.subr.bf16.mxu0 %v1669_v3 }
  0x68   : >> { %1578 = vmatprep.subr.bf16.mxu1 %v1669_v3 }
  0x6c   : >> { %1563 = vmatmul.mubr.msk.bf16.vlgmr.msra.gmra.mrb[28].mxu0 %vm277_vm1, %v1044_v19 }
  0x6d   : >> { %1569 = vmatmul.mubr.msk.bf16.vlgmr.msra.gmra.mrb[28].mxu1 %vm277_vm1, %v1105_v17  ;;  %1573 = vmatpush3.bf16.msra.mxu0 %v1160_v21 }
  0x6e   : >> { %1579 = vmatpush3.bf16.msra.mxu1 %v1210_v20  ;;  %1574 = vmatprep.mubr.msk.bf16.mxu0 %vm1670_vm2, %v1669_v3 }
  0x6f   : >> { %1580 = vmatprep.mubr.msk.bf16.mxu1 %vm1670_vm2, %v1669_v3 }
  0x74   : >> { %1575 = vmatmul.mubr.msk.bf16.vlgmr.msra.gmra.mrb[32].mxu0 %vm277_vm1, %v1155_v23 }
  0x75   : >> { %1581 = vmatmul.mubr.msk.bf16.vlgmr.msra.gmra.mrb[32].mxu1 %vm277_vm1, %v1205_v22 }
 0x107   : >> { %v319_v24 = vpop.f32.mrb[0].mxu0 }
 0x108   : >> { %v365_v25 = vpop.f32.mrb[0].mxu1  ;;  %v1480_v27 = vpop.f32.mrb[1].mxu0 }
 0x109   : >> { %v366_v26 = vadd.f32 %v365_v25, %v319_v24  ;;  %v1486_v28 = vpop.f32.mrb[1].mxu1  ;;  %v322_v29 = vpop.f32.mrb[2].mxu0 }
 0x10a   : >> { %v368_v30 = vpop.f32.mrb[2].mxu1  ;;  %v1481_v31 = vpop.f32.mrb[3].mxu0 }
 0x10b   : >> { %v1487_v32 = vpop.f32.mrb[3].mxu1 }
 0x10f   : >> { %v425_v34 = vpop.f32.mrb[4].mxu0 }
 0x110   : >> { %v486_v33 = vpop.f32.mrb[4].mxu1  ;;  %v431_v36 = vadd.f32 %v425_v34, %v366_v26  ;;  %v1492_v3 = vpop.f32.mrb[5].mxu0 }
 0x111   : >> { %v1498_v35 = vpop.f32.mrb[5].mxu1  ;;  %v428_v38 = vpop.f32.mrb[6].mxu0 }
 0x112   : >> { %v489_v37 = vpop.f32.mrb[6].mxu1  ;;  %v492_v40 = vadd.f32 %v486_v33, %v431_v36  ;;  %v1493_v41 = vpop.f32.mrb[7].mxu0 }
 0x113   : >> { %v1499_v39 = vpop.f32.mrb[7].mxu1 }
 0x117   : >> { %v536_v43 = vpop.f32.mrb[8].mxu0 }
 0x118   : >> { %v586_v42 = vpop.f32.mrb[8].mxu1  ;;  %v542_v45 = vadd.f32 %v536_v43, %v492_v40  ;;  %v1504_v46 = vpop.f32.mrb[9].mxu0 }
 0x119   : >> { %v1510_v44 = vpop.f32.mrb[9].mxu1  ;;  %v539_v48 = vpop.f32.mrb[10].mxu0 }
 0x11a   : >> { %v589_v47 = vpop.f32.mrb[10].mxu1  ;;  %v592_v50 = vadd.f32 %v586_v42, %v542_v45  ;;  %v1505_v51 = vpop.f32.mrb[11].mxu0 }
 0x11b   : >> { %v1511_v49 = vpop.f32.mrb[11].mxu1 }
 0x11f   : >> { %v645_v53 = vpop.f32.mrb[12].mxu0 }
 0x120   : >> { %v694_v52 = vpop.f32.mrb[12].mxu1  ;;  %v651_v55 = vadd.f32 %v645_v53, %v592_v50  ;;  %v1516_v56 = vpop.f32.mrb[13].mxu0 }
 0x121   : >> { %v1522_v54 = vpop.f32.mrb[13].mxu1  ;;  %v648_v58 = vpop.f32.mrb[14].mxu0 }
 0x122   : >> { %v697_v57 = vpop.f32.mrb[14].mxu1  ;;  %v700_v60 = vadd.f32 %v694_v52, %v651_v55  ;;  %v1517_v61 = vpop.f32.mrb[15].mxu0 }
 0x123   : >> { %v1523_v59 = vpop.f32.mrb[15].mxu1 }
 0x127   : >> { %v755_v63 = vpop.f32.mrb[16].mxu0 }
 0x128   : >> { %v816_v62 = vpop.f32.mrb[16].mxu1  ;;  %v761_v2 = vadd.f32 %v755_v63, %v700_v60  ;;  %v1528_v4 = vpop.f32.mrb[17].mxu0 }
 0x129   : >> { %v1534_v1 = vpop.f32.mrb[17].mxu1  ;;  %v758_v6 = vpop.f32.mrb[18].mxu0 }
 0x12a   : >> { %v819_v5 = vpop.f32.mrb[18].mxu1  ;;  %v822_v8 = vadd.f32 %v816_v62, %v761_v2  ;;  %v1529_v9 = vpop.f32.mrb[19].mxu0 }
 0x12b   : >> { %v1535_v7 = vpop.f32.mrb[19].mxu1 }
 0x12f   : >> { %v866_v11 = vpop.f32.mrb[20].mxu0 }
 0x130   : >> { %v916_v10 = vpop.f32.mrb[20].mxu1  ;;  %v872_v13 = vadd.f32 %v866_v11, %v822_v8  ;;  %v1540_v14 = vpop.f32.mrb[21].mxu0 }
 0x131   : >> { %v1546_v12 = vpop.f32.mrb[21].mxu1  ;;  %v869_v16 = vpop.f32.mrb[22].mxu0 }
 0x132   : >> { %v919_v15 = vpop.f32.mrb[22].mxu1  ;;  %v922_v18 = vadd.f32 %v916_v10, %v872_v13  ;;  %v1541_v19 = vpop.f32.mrb[23].mxu0 }
 0x133   : >> { %v1547_v17 = vpop.f32.mrb[23].mxu1 }
 0x137   : >> { %v975_v21 = vpop.f32.mrb[24].mxu0 }
 0x138   : >> { %v1024_v20 = vpop.f32.mrb[24].mxu1  ;;  %v981_v23 = vadd.f32 %v975_v21, %v922_v18  ;;  %v1552_v24 = vpop.f32.mrb[25].mxu0 }
 0x139   : >> { %v1558_v22 = vpop.f32.mrb[25].mxu1  ;;  %v978_v26 = vpop.f32.mrb[26].mxu0 }
 0x13a   : >> { %v1027_v25 = vpop.f32.mrb[26].mxu1  ;;  %v1030_v28 = vadd.f32 %v1024_v20, %v981_v23  ;;  %v1553_v29 = vpop.f32.mrb[27].mxu0 }
 0x13b   : >> { %v1559_v27 = vpop.f32.mrb[27].mxu1 }
 0x13f   : >> { %v1085_v31 = vpop.f32.mrb[28].mxu0 }
 0x140   : >> { %v1146_v30 = vpop.f32.mrb[28].mxu1  ;;  %v1091_v33 = vadd.f32 %v1085_v31, %v1030_v28  ;;  %v1564_v34 = vpop.f32.mrb[29].mxu0 }
 0x141   : >> { %v1570_v32 = vpop.f32.mrb[29].mxu1  ;;  %v1088_v36 = vpop.f32.mrb[30].mxu0 }
 0x142   : >> { %v1149_v35 = vpop.f32.mrb[30].mxu1  ;;  %v1152_v37 = vadd.f32 %v1146_v30, %v1091_v33  ;;  %v1565_v38 = vpop.f32.mrb[31].mxu0 }
 0x143   : >> { %v1571_v3 = vpop.f32.mrb[31].mxu1 }
 0x147   : >> { %v1196_v40 = vpop.f32.mrb[32].mxu0 }
 0x148   : >> { %v1246_v39 = vpop.f32.mrb[32].mxu1  ;;  %v1202_v42 = vadd.f32 %v1196_v40, %v1152_v37  ;;  %v1576_v43 = vpop.f32.mrb[33].mxu0 }
 0x149   : >> { %v1582_v41 = vpop.f32.mrb[33].mxu1  ;;  %v1199_v45 = vpop.f32.mrb[34].mxu0 }
 0x14a   : >> { %v1249_v44 = vpop.f32.mrb[34].mxu1  ;;  %v1252_v47 = vadd.f32 %v1246_v39, %v1202_v42  ;;  %v1577_v48 = vpop.f32.mrb[35].mxu0  ;;  %264 = sbr.rel (!%p262_p2) target bundleno = 47 (0x2f), region = 108 }
 0x14b   : >> { %v1583_v46 = vpop.f32.mrb[35].mxu1 }
 0x14c   : >> { %v1259_v49 = vadd.f32 %v1763_v0, %v1252_v47 }
 0x14e   : >> { %v1260_v50 = vpack.c.bf16 %v1259_v49, %v1259_v49 }
 0x150   : >> { %1264 = vst.msk [vmem:[%s1262_s19] sm:$0xf] %vm1263_vm3, %v1260_v50 }
 0x151 PF: > { %s16_s18 = sadd.s32 1, %s1662_s18  }
 0x152   : > { %p13_p3 = scmp.ge.s32.totalorder %s16_s18, 4  }
 0x154   :  { %15 = sbr.rel (!%p13_p3) target bundleno = 1 (0x1), region = 119 }
 0x15b   :  { %1286 = vsyncpa [#allocation3], 1 }
 0x15c   :  { %1288 = vsyncpa [#allocation3 + $0x1], 1 }

// kernel: decoder_forward.13
= control target key start
LH: loop header
LB: loop body
LE: loop exit
PB: predicated region body
PF: predicated region fallthrough
CT: control target
= control target key end

     0   :  { %vm344_vm0 = vcmask 1041408   ;;  %vm247_vm1 = vcmask 31744   ;;  %vm701_vm2 = vcmask 392192   ;;  %s1574_s1 = inlined_call_operand.vmem [shape: bf16[4,48], index: 1, kind: input, shape index: {}]   ;;  %s1575_s0 = inlined_call_operand.vmem [shape: bf16[512,4], index: 0, kind: input, shape index: {}]   ;;  %s1576_s2 = inlined_call_operand.vmem [shape: f32[1,48], index: 2, kind: input, shape index: {}]   ;;  %s1577_s3 = inlined_call_operand.vmem [shape: f32[512,48], index: 3, kind: output, shape index: {}]  }
   0x1   :  { %v79_v0 = vld [vmem:[%s1574_s1] sm:$0x3]  ;;  %v940_v4 = vld [vmem:[%s1575_s0 + $0x8] sm:$0xff]   ;;  %v942_v6 = vld [vmem:[%s1575_s0 + $0x10] sm:$0xff]  }
   0x2   :  { %936 = vmatprep.subr.msk.bf16.mxu0 %vm344_vm0, %v79_v0  ;;  %937 = vmatprep.subr.msk.bf16.mxu1 %vm344_vm0, %v79_v0  ;;  %v346_v1 = vsel %vm344_vm0, %v79_v0, 0  ;;  %v938_v2 = vld [vmem:[%s1575_s0] sm:$0xff]   ;;  %v941_v5 = vld [vmem:[%s1575_s0 + $0x88] sm:$0xff]   ;;  %v943_v7 = vld [vmem:[%s1575_s0 + $0x90] sm:$0xff]  }
   0x3   :  { %869 = vmatpush3.bf16.msra.mxu0 %v346_v1  ;;  %935 = vmatpush3.bf16.msra.mxu1 %v346_v1  ;;  %v939_v3 = vld [vmem:[%s1575_s0 + $0x80] sm:$0xff]   ;;  %v944_v8 = vld [vmem:[%s1575_s0 + $0x18] sm:$0xff]   ;;  %v948_v12 = vld [vmem:[%s1575_s0 + $0x28] sm:$0xff]  }
   0x4   :  { %870 = vmatprep.mubr.msk.bf16.mxu0 %vm247_vm1, %v938_v2  ;;  %902 = vmatprep.mubr.msk.bf16.mxu1 %vm247_vm1, %v939_v3  ;;  %v945_v9 = vld [vmem:[%s1575_s0 + $0x98] sm:$0xff]   ;;  %v946_v10 = vld [vmem:[%s1575_s0 + $0x20] sm:$0xff]   ;;  %v949_v13 = vld [vmem:[%s1575_s0 + $0xa8] sm:$0xff]  }
   0x5   :  { %v947_v11 = vld [vmem:[%s1575_s0 + $0xa0] sm:$0xff]   ;;  %v950_v14 = vld [vmem:[%s1575_s0 + $0x30] sm:$0xff]   ;;  %v952_v16 = vld [vmem:[%s1575_s0 + $0x38] sm:$0xff]  }
   0x6   :  { %871 = vmatmul.mubr.msk.bf16.vlgmr.msra.gmra.mrb[0].mxu0 %vm247_vm1, %v940_v4  ;;  %903 = vmatmul.mubr.msk.bf16.vlgmr.msra.gmra.mrb[0].mxu1 %vm247_vm1, %v941_v5  ;;  %v951_v15 = vld [vmem:[%s1575_s0 + $0xb0] sm:$0xff]   ;;  %v953_v17 = vld [vmem:[%s1575_s0 + $0xb8] sm:$0xff]   ;;  %v954_v18 = vld [vmem:[%s1575_s0 + $0x40] sm:$0xff]  }
   0x7   :  { %874 = vmatprep.mubr.msk.bf16.mxu0 %vm247_vm1, %v942_v6  ;;  %906 = vmatprep.mubr.msk.bf16.mxu1 %vm247_vm1, %v943_v7  ;;  %v955_v19 = vld [vmem:[%s1575_s0 + $0xc0] sm:$0xff]   ;;  %v956_v20 = vld [vmem:[%s1575_s0 + $0x48] sm:$0xff]   ;;  %v958_v22 = vld [vmem:[%s1575_s0 + $0x50] sm:$0xff]  }
   0x8   :  { %v957_v21 = vld [vmem:[%s1575_s0 + $0xc8] sm:$0xff]   ;;  %v959_v23 = vld [vmem:[%s1575_s0 + $0xd0] sm:$0xff]   ;;  %v960_v24 = vld [vmem:[%s1575_s0 + $0x58] sm:$0xff]  }
   0x9   :  { %v961_v25 = vld [vmem:[%s1575_s0 + $0xd8] sm:$0xff]   ;;  %v962_v26 = vld [vmem:[%s1575_s0 + $0x60] sm:$0xff]   ;;  %v964_v28 = vld [vmem:[%s1575_s0 + $0x68] sm:$0xff]  }
   0xa   :  { %v963_v27 = vld [vmem:[%s1575_s0 + $0xe0] sm:$0xff]   ;;  %v965_v29 = vld [vmem:[%s1575_s0 + $0xe8] sm:$0xff]   ;;  %v966_v30 = vld [vmem:[%s1575_s0 + $0x70] sm:$0xff]  }
   0xb   :  { %v967_v31 = vld [vmem:[%s1575_s0 + $0xf0] sm:$0xff]   ;;  %v968_v32 = vld [vmem:[%s1575_s0 + $0x78] sm:$0xff]   ;;  %v1252_v34 = vld [vmem:[%s1576_s2] ss:$0 sm:$0xff] }
   0xc   :  { %v969_v33 = vld [vmem:[%s1575_s0 + $0xf8] sm:$0xff]  }
   0xe   :  { %875 = vmatmul.mubr.msk.bf16.gmra.mrb[4].mxu0 %vm247_vm1, %v944_v8  ;;  %907 = vmatmul.mubr.msk.bf16.gmra.mrb[4].mxu1 %vm247_vm1, %v945_v9 }
   0xf   :  { %878 = vmatprep.mubr.msk.bf16.mxu0 %vm247_vm1, %v946_v10  ;;  %910 = vmatprep.mubr.msk.bf16.mxu1 %vm247_vm1, %v947_v11 }
  0x16   :  { %879 = vmatmul.mubr.msk.bf16.gmra.mrb[8].mxu0 %vm247_vm1, %v948_v12  ;;  %911 = vmatmul.mubr.msk.bf16.gmra.mrb[8].mxu1 %vm247_vm1, %v949_v13 }
  0x17   :  { %882 = vmatprep.mubr.msk.bf16.mxu0 %vm247_vm1, %v950_v14  ;;  %914 = vmatprep.mubr.msk.bf16.mxu1 %vm247_vm1, %v951_v15 }
  0x1e   :  { %883 = vmatmul.mubr.msk.bf16.gmra.mrb[12].mxu0 %vm247_vm1, %v952_v16  ;;  %915 = vmatmul.mubr.msk.bf16.gmra.mrb[12].mxu1 %vm247_vm1, %v953_v17 }
  0x1f   :  { %886 = vmatprep.mubr.msk.bf16.mxu0 %vm247_vm1, %v954_v18  ;;  %918 = vmatprep.mubr.msk.bf16.mxu1 %vm247_vm1, %v955_v19 }
  0x26   :  { %887 = vmatmul.mubr.msk.bf16.gmra.mrb[16].mxu0 %vm247_vm1, %v956_v20  ;;  %919 = vmatmul.mubr.msk.bf16.gmra.mrb[16].mxu1 %vm247_vm1, %v957_v21 }
  0x27   :  { %890 = vmatprep.mubr.msk.bf16.mxu0 %vm247_vm1, %v958_v22  ;;  %922 = vmatprep.mubr.msk.bf16.mxu1 %vm247_vm1, %v959_v23 }
  0x2e   :  { %891 = vmatmul.mubr.msk.bf16.gmra.mrb[20].mxu0 %vm247_vm1, %v960_v24  ;;  %923 = vmatmul.mubr.msk.bf16.gmra.mrb[20].mxu1 %vm247_vm1, %v961_v25 }
  0x2f   :  { %894 = vmatprep.mubr.msk.bf16.mxu0 %vm247_vm1, %v962_v26  ;;  %926 = vmatprep.mubr.msk.bf16.mxu1 %vm247_vm1, %v963_v27 }
  0x36   :  { %895 = vmatmul.mubr.msk.bf16.gmra.mrb[24].mxu0 %vm247_vm1, %v964_v28  ;;  %927 = vmatmul.mubr.msk.bf16.gmra.mrb[24].mxu1 %vm247_vm1, %v965_v29 }
  0x37   :  { %898 = vmatprep.mubr.msk.bf16.mxu0 %vm247_vm1, %v966_v30  ;;  %930 = vmatprep.mubr.msk.bf16.mxu1 %vm247_vm1, %v967_v31 }
  0x3e   :  { %899 = vmatmul.mubr.msk.bf16.gmra.mrb[28].mxu0 %vm247_vm1, %v968_v32  ;;  %931 = vmatmul.mubr.msk.bf16.gmra.mrb[28].mxu1 %vm247_vm1, %v969_v33 }
  0xd9   :  { %v872_v35 = vpop.f32.mrb[0].mxu0  ;;  %v904_v37 = vpop.f32.mrb[0].mxu1 }
  0xda   :  { %v391_v36 = vadd.f32 %v872_v35, %v1252_v34  ;;  %v382_v38 = vpop.f32.mrb[1].mxu0  ;;  %v519_v39 = vadd.f32 %v904_v37, %v1252_v34  ;;  %v510_v41 = vpop.f32.mrb[1].mxu1 }
  0xdb   :  { %v383_v40 = vadd.f32 %v1252_v34, %v382_v38  ;;  %v873_v42 = vpop.f32.mrb[2].mxu0  ;;  %v511_v43 = vadd.f32 %v1252_v34, %v510_v41  ;;  %v905_v45 = vpop.f32.mrb[2].mxu1 }
  0xdc   :  { %970 = vtanh.f32 %v391_v36  ;;  %v394_v44 = vadd.f32 %v873_v42, %v1252_v34  ;;  %v385_v46 = vpop.f32.mrb[3].mxu0  ;;  %v522_v47 = vadd.f32 %v905_v45, %v1252_v34  ;;  %v513_v48 = vpop.f32.mrb[3].mxu1 }
  0xdd   :  { %972 = vtanh.f32 %v519_v39  ;;  %v386_v49 = vadd.f32 %v1252_v34, %v385_v46  ;;  %v514_v50 = vadd.f32 %v1252_v34, %v513_v48 }
  0xde   :  { %974 = vtanh.f32 %v383_v40 }
  0xdf   :  { %976 = vtanh.f32 %v511_v43 }
  0xe0   :  { %978 = vtanh.f32 %v394_v44 }
  0xe1   :  { %980 = vtanh.f32 %v522_v47  ;;  %v876_v51 = vpop.f32.mrb[4].mxu0  ;;  %v908_v53 = vpop.f32.mrb[4].mxu1 }
  0xe2   :  { %982 = vtanh.f32 %v386_v49  ;;  %v407_v52 = vadd.f32 %v876_v51, %v1252_v34  ;;  %v398_v54 = vpop.f32.mrb[5].mxu0  ;;  %v535_v55 = vadd.f32 %v908_v53, %v1252_v34  ;;  %v526_v57 = vpop.f32.mrb[5].mxu1 }
  0xe3   :  { %984 = vtanh.f32 %v514_v50  ;;  %v399_v56 = vadd.f32 %v1252_v34, %v398_v54  ;;  %v877_v58 = vpop.f32.mrb[6].mxu0  ;;  %v527_v59 = vadd.f32 %v1252_v34, %v526_v57  ;;  %v909_v61 = vpop.f32.mrb[6].mxu1 }
  0xe4   :  { %986 = vtanh.f32 %v407_v52  ;;  %v410_v60 = vadd.f32 %v877_v58, %v1252_v34  ;;  %v401_v62 = vpop.f32.mrb[7].mxu0  ;;  %v538_v63 = vadd.f32 %v909_v61, %v1252_v34  ;;  %v529_v0 = vpop.f32.mrb[7].mxu1 }
  0xe5   :  { %988 = vtanh.f32 %v535_v55  ;;  %v402_v2 = vadd.f32 %v1252_v34, %v401_v62  ;;  %v530_v4 = vadd.f32 %v1252_v34, %v529_v0 }
  0xe6   :  { %v971_v1 = vpop.eup %970  ;;  %990 = vtanh.f32 %v399_v56 }
  0xe7   :  { %v973_v3 = vpop.eup %972  ;;  %704 = vst.msk [vmem:[%s1577_s3 + $0x10] sm:$0xff] %vm701_vm2, %v971_v1  ;;  %992 = vtanh.f32 %v527_v59 }
  0xe8   :  { %v975_v5 = vpop.eup %974  ;;  %736 = vst.msk [vmem:[%s1577_s3 + $0x110] sm:$0xff] %vm701_vm2, %v973_v3  ;;  %994 = vtanh.f32 %v410_v60 }
  0xe9   :  { %v977_v6 = vpop.eup %976  ;;  %702 = vst.msk [vmem:[%s1577_s3] sm:$0xff] %vm701_vm2, %v975_v5  ;;  %996 = vtanh.f32 %v538_v63  ;;  %v880_v7 = vpop.f32.mrb[8].mxu0 }
  0xea   :  { %v979_v8 = vpop.eup %978  ;;  %734 = vst.msk [vmem:[%s1577_s3 + $0x100] sm:$0xff] %vm701_vm2, %v977_v6  ;;  %998 = vtanh.f32 %v402_v2  ;;  %v423_v9 = vadd.f32 %v880_v7, %v1252_v34  ;;  %v912_v10 = vpop.f32.mrb[8].mxu1 }
  0xeb   :  { %v414_v11 = vpop.f32.mrb[9].mxu0  ;;  %v981_v12 = vpop.eup %980  ;;  %705 = vst.msk [vmem:[%s1577_s3 + $0x18] sm:$0xff] %vm701_vm2, %v979_v8  ;;  %1000 = vtanh.f32 %v530_v4  ;;  %v551_v13 = vadd.f32 %v912_v10, %v1252_v34 }
  0xec   :  { %v415_v14 = vadd.f32 %v1252_v34, %v414_v11  ;;  %v542_v15 = vpop.f32.mrb[9].mxu1  ;;  %v881_v16 = vpop.f32.mrb[10].mxu0  ;;  %737 = vst.msk [vmem:[%s1577_s3 + $0x118] sm:$0xff] %vm701_vm2, %v981_v12  ;;  %1002 = vtanh.f32 %v423_v9 }
  0xed   :  { %v983_v17 = vpop.eup %982  ;;  %v543_v18 = vadd.f32 %v1252_v34, %v542_v15  ;;  %v426_v19 = vadd.f32 %v881_v16, %v1252_v34  ;;  %v913_v20 = vpop.f32.mrb[10].mxu1  ;;  %1004 = vtanh.f32 %v551_v13 }
  0xee   :  { %v417_v21 = vpop.f32.mrb[11].mxu0  ;;  %v985_v22 = vpop.eup %984  ;;  %703 = vst.msk [vmem:[%s1577_s3 + $0x8] sm:$0xff] %vm701_vm2, %v983_v17  ;;  %v554_v23 = vadd.f32 %v913_v20, %v1252_v34  ;;  %1006 = vtanh.f32 %v415_v14 }
  0xef   :  { %v545_v24 = vpop.f32.mrb[11].mxu1  ;;  %v987_v25 = vpop.eup %986  ;;  %735 = vst.msk [vmem:[%s1577_s3 + $0x108] sm:$0xff] %vm701_vm2, %v985_v22  ;;  %v418_v26 = vadd.f32 %v1252_v34, %v417_v21  ;;  %1008 = vtanh.f32 %v543_v18 }
  0xf0   :  { %v989_v27 = vpop.eup %988  ;;  %708 = vst.msk [vmem:[%s1577_s3 + $0x30] sm:$0xff] %vm701_vm2, %v987_v25  ;;  %v546_v28 = vadd.f32 %v1252_v34, %v545_v24  ;;  %1010 = vtanh.f32 %v426_v19 }
  0xf1   :  { %v991_v29 = vpop.eup %990  ;;  %740 = vst.msk [vmem:[%s1577_s3 + $0x130] sm:$0xff] %vm701_vm2, %v989_v27  ;;  %1012 = vtanh.f32 %v554_v23  ;;  %v884_v31 = vpop.f32.mrb[12].mxu0 }
  0xf2   :  { %v993_v30 = vpop.eup %992  ;;  %706 = vst.msk [vmem:[%s1577_s3 + $0x20] sm:$0xff] %vm701_vm2, %v991_v29  ;;  %1014 = vtanh.f32 %v418_v26  ;;  %v439_v33 = vadd.f32 %v884_v31, %v1252_v34  ;;  %v916_v35 = vpop.f32.mrb[12].mxu1 }
  0xf3   :  { %v995_v32 = vpop.eup %994  ;;  %738 = vst.msk [vmem:[%s1577_s3 + $0x120] sm:$0xff] %vm701_vm2, %v993_v30  ;;  %v430_v36 = vpop.f32.mrb[13].mxu0  ;;  %1016 = vtanh.f32 %v546_v28  ;;  %v567_v38 = vadd.f32 %v916_v35, %v1252_v34 }
  0xf4   :  { %v997_v37 = vpop.eup %996  ;;  %709 = vst.msk [vmem:[%s1577_s3 + $0x38] sm:$0xff] %vm701_vm2, %v995_v32  ;;  %v431_v39 = vadd.f32 %v1252_v34, %v430_v36  ;;  %v558_v40 = vpop.f32.mrb[13].mxu1  ;;  %1018 = vtanh.f32 %v439_v33 }
  0xf5   :  { %v885_v41 = vpop.f32.mrb[14].mxu0  ;;  %v999_v42 = vpop.eup %998  ;;  %741 = vst.msk [vmem:[%s1577_s3 + $0x138] sm:$0xff] %vm701_vm2, %v997_v37  ;;  %v559_v43 = vadd.f32 %v1252_v34, %v558_v40  ;;  %1020 = vtanh.f32 %v567_v38 }
  0xf6   :  { %v442_v44 = vadd.f32 %v885_v41, %v1252_v34  ;;  %v917_v45 = vpop.f32.mrb[14].mxu1  ;;  %v433_v46 = vpop.f32.mrb[15].mxu0  ;;  %707 = vst.msk [vmem:[%s1577_s3 + $0x28] sm:$0xff] %vm701_vm2, %v999_v42  ;;  %1022 = vtanh.f32 %v431_v39 }
  0xf7   :  { %v1001_v47 = vpop.eup %1000  ;;  %v570_v48 = vadd.f32 %v917_v45, %v1252_v34  ;;  %v561_v49 = vpop.f32.mrb[15].mxu1  ;;  %v434_v51 = vadd.f32 %v1252_v34, %v433_v46  ;;  %1024 = vtanh.f32 %v559_v43 }
  0xf8   :  { %v1003_v50 = vpop.eup %1002  ;;  %739 = vst.msk [vmem:[%s1577_s3 + $0x128] sm:$0xff] %vm701_vm2, %v1001_v47  ;;  %v562_v53 = vadd.f32 %v1252_v34, %v561_v49  ;;  %1026 = vtanh.f32 %v442_v44 }
  0xf9   :  { %v1005_v52 = vpop.eup %1004  ;;  %712 = vst.msk [vmem:[%s1577_s3 + $0x50] sm:$0xff] %vm701_vm2, %v1003_v50  ;;  %1028 = vtanh.f32 %v570_v48  ;;  %v888_v56 = vpop.f32.mrb[16].mxu0 }
  0xfa   :  { %v1007_v54 = vpop.eup %1006  ;;  %744 = vst.msk [vmem:[%s1577_s3 + $0x150] sm:$0xff] %vm701_vm2, %v1005_v52  ;;  %1030 = vtanh.f32 %v434_v51  ;;  %v455_v58 = vadd.f32 %v888_v56, %v1252_v34  ;;  %v920_v59 = vpop.f32.mrb[16].mxu1 }
  0xfb   :  { %v1009_v55 = vpop.eup %1008  ;;  %710 = vst.msk [vmem:[%s1577_s3 + $0x40] sm:$0xff] %vm701_vm2, %v1007_v54  ;;  %v446_v60 = vpop.f32.mrb[17].mxu0  ;;  %1032 = vtanh.f32 %v562_v53  ;;  %v583_v62 = vadd.f32 %v920_v59, %v1252_v34 }
  0xfc   :  { %v1011_v57 = vpop.eup %1010  ;;  %742 = vst.msk [vmem:[%s1577_s3 + $0x140] sm:$0xff] %vm701_vm2, %v1009_v55  ;;  %v447_v63 = vadd.f32 %v1252_v34, %v446_v60  ;;  %v574_v0 = vpop.f32.mrb[17].mxu1  ;;  %1034 = vtanh.f32 %v455_v58 }
  0xfd   :  { %v1013_v61 = vpop.eup %1012  ;;  %713 = vst.msk [vmem:[%s1577_s3 + $0x58] sm:$0xff] %vm701_vm2, %v1011_v57  ;;  %v889_v1 = vpop.f32.mrb[18].mxu0  ;;  %v575_v3 = vadd.f32 %v1252_v34, %v574_v0  ;;  %1036 = vtanh.f32 %v583_v62 }
  0xfe   :  { %v1015_v2 = vpop.eup %1014  ;;  %745 = vst.msk [vmem:[%s1577_s3 + $0x158] sm:$0xff] %vm701_vm2, %v1013_v61  ;;  %v458_v4 = vadd.f32 %v889_v1, %v1252_v34  ;;  %v921_v5 = vpop.f32.mrb[18].mxu1  ;;  %1038 = vtanh.f32 %v447_v63 }
  0xff   :  { %v449_v6 = vpop.f32.mrb[19].mxu0  ;;  %v1017_v7 = vpop.eup %1016  ;;  %711 = vst.msk [vmem:[%s1577_s3 + $0x48] sm:$0xff] %vm701_vm2, %v1015_v2  ;;  %v586_v8 = vadd.f32 %v921_v5, %v1252_v34  ;;  %1040 = vtanh.f32 %v575_v3 }
 0x100   :  { %v577_v9 = vpop.f32.mrb[19].mxu1  ;;  %v1019_v10 = vpop.eup %1018  ;;  %743 = vst.msk [vmem:[%s1577_s3 + $0x148] sm:$0xff] %vm701_vm2, %v1017_v7  ;;  %v450_v11 = vadd.f32 %v1252_v34, %v449_v6  ;;  %1042 = vtanh.f32 %v458_v4 }
 0x101   :  { %v1021_v12 = vpop.eup %1020  ;;  %716 = vst.msk [vmem:[%s1577_s3 + $0x70] sm:$0xff] %vm701_vm2, %v1019_v10  ;;  %v578_v13 = vadd.f32 %v1252_v34, %v577_v9  ;;  %1044 = vtanh.f32 %v586_v8  ;;  %v892_v16 = vpop.f32.mrb[20].mxu0 }
 0x102   :  { %v1023_v14 = vpop.eup %1022  ;;  %748 = vst.msk [vmem:[%s1577_s3 + $0x170] sm:$0xff] %vm701_vm2, %v1021_v12  ;;  %1046 = vtanh.f32 %v450_v11  ;;  %v471_v18 = vadd.f32 %v892_v16, %v1252_v34  ;;  %v924_v19 = vpop.f32.mrb[20].mxu1 }
 0x103   :  { %v1025_v15 = vpop.eup %1024  ;;  %714 = vst.msk [vmem:[%s1577_s3 + $0x60] sm:$0xff] %vm701_vm2, %v1023_v14  ;;  %v462_v20 = vpop.f32.mrb[21].mxu0  ;;  %1048 = vtanh.f32 %v578_v13  ;;  %v599_v22 = vadd.f32 %v924_v19, %v1252_v34 }
 0x104   :  { %v1027_v17 = vpop.eup %1026  ;;  %746 = vst.msk [vmem:[%s1577_s3 + $0x160] sm:$0xff] %vm701_vm2, %v1025_v15  ;;  %v463_v23 = vadd.f32 %v1252_v34, %v462_v20  ;;  %v590_v24 = vpop.f32.mrb[21].mxu1  ;;  %1050 = vtanh.f32 %v471_v18 }
 0x105   :  { %v1029_v21 = vpop.eup %1028  ;;  %717 = vst.msk [vmem:[%s1577_s3 + $0x78] sm:$0xff] %vm701_vm2, %v1027_v17  ;;  %v893_v25 = vpop.f32.mrb[22].mxu0  ;;  %v591_v27 = vadd.f32 %v1252_v34, %v590_v24  ;;  %1052 = vtanh.f32 %v599_v22 }
 0x106   :  { %v1031_v26 = vpop.eup %1030  ;;  %749 = vst.msk [vmem:[%s1577_s3 + $0x178] sm:$0xff] %vm701_vm2, %v1029_v21  ;;  %v474_v28 = vadd.f32 %v893_v25, %v1252_v34  ;;  %v925_v29 = vpop.f32.mrb[22].mxu1  ;;  %1054 = vtanh.f32 %v463_v23 }
 0x107   :  { %v465_v30 = vpop.f32.mrb[23].mxu0  ;;  %v1033_v31 = vpop.eup %1032  ;;  %715 = vst.msk [vmem:[%s1577_s3 + $0x68] sm:$0xff] %vm701_vm2, %v1031_v26  ;;  %v602_v32 = vadd.f32 %v925_v29, %v1252_v34  ;;  %1056 = vtanh.f32 %v591_v27 }
 0x108   :  { %v593_v33 = vpop.f32.mrb[23].mxu1  ;;  %v1035_v35 = vpop.eup %1034  ;;  %747 = vst.msk [vmem:[%s1577_s3 + $0x168] sm:$0xff] %vm701_vm2, %v1033_v31  ;;  %v466_v36 = vadd.f32 %v1252_v34, %v465_v30  ;;  %1058 = vtanh.f32 %v474_v28 }
 0x109   :  { %v1037_v37 = vpop.eup %1036  ;;  %720 = vst.msk [vmem:[%s1577_s3 + $0x90] sm:$0xff] %vm701_vm2, %v1035_v35  ;;  %v594_v38 = vadd.f32 %v1252_v34, %v593_v33  ;;  %1060 = vtanh.f32 %v602_v32  ;;  %v896_v41 = vpop.f32.mrb[24].mxu0 }
 0x10a   :  { %v1039_v39 = vpop.eup %1038  ;;  %752 = vst.msk [vmem:[%s1577_s3 + $0x190] sm:$0xff] %vm701_vm2, %v1037_v37  ;;  %1062 = vtanh.f32 %v466_v36  ;;  %v487_v43 = vadd.f32 %v896_v41, %v1252_v34  ;;  %v928_v44 = vpop.f32.mrb[24].mxu1 }
 0x10b   :  { %v1041_v40 = vpop.eup %1040  ;;  %718 = vst.msk [vmem:[%s1577_s3 + $0x80] sm:$0xff] %vm701_vm2, %v1039_v39  ;;  %v478_v45 = vpop.f32.mrb[25].mxu0  ;;  %1064 = vtanh.f32 %v594_v38  ;;  %v615_v47 = vadd.f32 %v928_v44, %v1252_v34 }
 0x10c   :  { %v1043_v42 = vpop.eup %1042  ;;  %750 = vst.msk [vmem:[%s1577_s3 + $0x180] sm:$0xff] %vm701_vm2, %v1041_v40  ;;  %v479_v48 = vadd.f32 %v1252_v34, %v478_v45  ;;  %v606_v49 = vpop.f32.mrb[25].mxu1  ;;  %1066 = vtanh.f32 %v487_v43 }
 0x10d   :  { %v1045_v46 = vpop.eup %1044  ;;  %721 = vst.msk [vmem:[%s1577_s3 + $0x98] sm:$0xff] %vm701_vm2, %v1043_v42  ;;  %v897_v50 = vpop.f32.mrb[26].mxu0  ;;  %v607_v52 = vadd.f32 %v1252_v34, %v606_v49  ;;  %1068 = vtanh.f32 %v615_v47 }
 0x10e   :  { %v1047_v51 = vpop.eup %1046  ;;  %753 = vst.msk [vmem:[%s1577_s3 + $0x198] sm:$0xff] %vm701_vm2, %v1045_v46  ;;  %v490_v53 = vadd.f32 %v897_v50, %v1252_v34  ;;  %v929_v54 = vpop.f32.mrb[26].mxu1  ;;  %1070 = vtanh.f32 %v479_v48 }
 0x10f   :  { %v481_v55 = vpop.f32.mrb[27].mxu0  ;;  %v1049_v56 = vpop.eup %1048  ;;  %719 = vst.msk [vmem:[%s1577_s3 + $0x88] sm:$0xff] %vm701_vm2, %v1047_v51  ;;  %v618_v57 = vadd.f32 %v929_v54, %v1252_v34  ;;  %1072 = vtanh.f32 %v607_v52 }
 0x110   :  { %v609_v58 = vpop.f32.mrb[27].mxu1  ;;  %v1051_v59 = vpop.eup %1050  ;;  %751 = vst.msk [vmem:[%s1577_s3 + $0x188] sm:$0xff] %vm701_vm2, %v1049_v56  ;;  %v482_v60 = vadd.f32 %v1252_v34, %v481_v55  ;;  %1074 = vtanh.f32 %v490_v53 }
 0x111   :  { %v1053_v61 = vpop.eup %1052  ;;  %724 = vst.msk [vmem:[%s1577_s3 + $0xb0] sm:$0xff] %vm701_vm2, %v1051_v59  ;;  %v610_v62 = vadd.f32 %v1252_v34, %v609_v58  ;;  %1076 = vtanh.f32 %v618_v57  ;;  %v900_v1 = vpop.f32.mrb[28].mxu0 }
 0x112   :  { %v1055_v63 = vpop.eup %1054  ;;  %756 = vst.msk [vmem:[%s1577_s3 + $0x1b0] sm:$0xff] %vm701_vm2, %v1053_v61  ;;  %1078 = vtanh.f32 %v482_v60  ;;  %v503_v3 = vadd.f32 %v900_v1, %v1252_v34  ;;  %v932_v4 = vpop.f32.mrb[28].mxu1 }
 0x113   :  { %v1057_v0 = vpop.eup %1056  ;;  %722 = vst.msk [vmem:[%s1577_s3 + $0xa0] sm:$0xff] %vm701_vm2, %v1055_v63  ;;  %v494_v5 = vpop.f32.mrb[29].mxu0  ;;  %1080 = vtanh.f32 %v610_v62  ;;  %v631_v7 = vadd.f32 %v932_v4, %v1252_v34 }
 0x114   :  { %v1059_v2 = vpop.eup %1058  ;;  %754 = vst.msk [vmem:[%s1577_s3 + $0x1a0] sm:$0xff] %vm701_vm2, %v1057_v0  ;;  %v495_v8 = vadd.f32 %v1252_v34, %v494_v5  ;;  %v622_v9 = vpop.f32.mrb[29].mxu1  ;;  %1082 = vtanh.f32 %v503_v3 }
 0x115   :  { %v1061_v6 = vpop.eup %1060  ;;  %725 = vst.msk [vmem:[%s1577_s3 + $0xb8] sm:$0xff] %vm701_vm2, %v1059_v2  ;;  %v901_v10 = vpop.f32.mrb[30].mxu0  ;;  %v623_v12 = vadd.f32 %v1252_v34, %v622_v9  ;;  %1084 = vtanh.f32 %v631_v7 }
 0x116   :  { %v1063_v11 = vpop.eup %1062  ;;  %757 = vst.msk [vmem:[%s1577_s3 + $0x1b8] sm:$0xff] %vm701_vm2, %v1061_v6  ;;  %v506_v13 = vadd.f32 %v901_v10, %v1252_v34  ;;  %v933_v14 = vpop.f32.mrb[30].mxu1  ;;  %1086 = vtanh.f32 %v495_v8 }
 0x117   :  { %v497_v15 = vpop.f32.mrb[31].mxu0  ;;  %v1065_v16 = vpop.eup %1064  ;;  %723 = vst.msk [vmem:[%s1577_s3 + $0xa8] sm:$0xff] %vm701_vm2, %v1063_v11  ;;  %v634_v17 = vadd.f32 %v933_v14, %v1252_v34  ;;  %1088 = vtanh.f32 %v623_v12 }
 0x118   :  { %v625_v18 = vpop.f32.mrb[31].mxu1  ;;  %v1067_v19 = vpop.eup %1066  ;;  %755 = vst.msk [vmem:[%s1577_s3 + $0x1a8] sm:$0xff] %vm701_vm2, %v1065_v16  ;;  %v498_v20 = vadd.f32 %v1252_v34, %v497_v15  ;;  %1090 = vtanh.f32 %v506_v13 }
 0x119   :  { %v1069_v21 = vpop.eup %1068  ;;  %728 = vst.msk [vmem:[%s1577_s3 + $0xd0] sm:$0xff] %vm701_vm2, %v1067_v19  ;;  %v626_v22 = vadd.f32 %v1252_v34, %v625_v18  ;;  %1092 = vtanh.f32 %v634_v17 }
 0x11a   :  { %v1071_v23 = vpop.eup %1070  ;;  %760 = vst.msk [vmem:[%s1577_s3 + $0x1d0] sm:$0xff] %vm701_vm2, %v1069_v21  ;;  %1094 = vtanh.f32 %v498_v20 }
 0x11b   :  { %v1073_v24 = vpop.eup %1072  ;;  %726 = vst.msk [vmem:[%s1577_s3 + $0xc0] sm:$0xff] %vm701_vm2, %v1071_v23  ;;  %1096 = vtanh.f32 %v626_v22 }
 0x11c   :  { %v1075_v25 = vpop.eup %1074  ;;  %758 = vst.msk [vmem:[%s1577_s3 + $0x1c0] sm:$0xff] %vm701_vm2, %v1073_v24 }
 0x11d   :  { %v1077_v34 = vpop.eup %1076  ;;  %729 = vst.msk [vmem:[%s1577_s3 + $0xd8] sm:$0xff] %vm701_vm2, %v1075_v25 }
 0x11e   :  { %v1079_v26 = vpop.eup %1078  ;;  %761 = vst.msk [vmem:[%s1577_s3 + $0x1d8] sm:$0xff] %vm701_vm2, %v1077_v34 }
 0x11f   :  { %v1081_v27 = vpop.eup %1080  ;;  %727 = vst.msk [vmem:[%s1577_s3 + $0xc8] sm:$0xff] %vm701_vm2, %v1079_v26 }
 0x120   :  { %v1083_v28 = vpop.eup %1082  ;;  %759 = vst.msk [vmem:[%s1577_s3 + $0x1c8] sm:$0xff] %vm701_vm2, %v1081_v27 }
 0x121   :  { %v1085_v29 = vpop.eup %1084  ;;  %732 = vst.msk [vmem:[%s1577_s3 + $0xf0] sm:$0xff] %vm701_vm2, %v1083_v28 }
 0x122   :  { %v1087_v30 = vpop.eup %1086  ;;  %764 = vst.msk [vmem:[%s1577_s3 + $0x1f0] sm:$0xff] %vm701_vm2, %v1085_v29 }
 0x123   :  { %v1089_v31 = vpop.eup %1088  ;;  %730 = vst.msk [vmem:[%s1577_s3 + $0xe0] sm:$0xff] %vm701_vm2, %v1087_v30 }
 0x124   :  { %v1091_v32 = vpop.eup %1090  ;;  %762 = vst.msk [vmem:[%s1577_s3 + $0x1e0] sm:$0xff] %vm701_vm2, %v1089_v31 }
 0x125   :  { %v1093_v33 = vpop.eup %1092  ;;  %733 = vst.msk [vmem:[%s1577_s3 + $0xf8] sm:$0xff] %vm701_vm2, %v1091_v32 }
 0x126   :  { %v1095_v35 = vpop.eup %1094  ;;  %765 = vst.msk [vmem:[%s1577_s3 + $0x1f8] sm:$0xff] %vm701_vm2, %v1093_v33 }
 0x127   :  { %v1097_v36 = vpop.eup %1096  ;;  %731 = vst.msk [vmem:[%s1577_s3 + $0xe8] sm:$0xff] %vm701_vm2, %v1095_v35 }
 0x128   :  { %763 = vst.msk [vmem:[%s1577_s3 + $0x1e8] sm:$0xff] %vm701_vm2, %v1097_v36 }

// kernel: decoder_forward.12
= control target key start
LH: loop header
LB: loop body
LE: loop exit
PB: predicated region body
PF: predicated region fallthrough
CT: control target
= control target key end

     0   :  { %s1753_s18 = smov 0   ;;  %s1971_s0 = inlined_call_operand.vmem [shape: bf16[2,18,18,4], index: 0, kind: input, shape index: {}]   ;;  %s1972_s1 = inlined_call_operand.vmem [shape: bf16[2,18,18,4], index: 1, kind: input, shape index: {}]   ;;  %s1973_s2 = inlined_call_operand.vmem [shape: bf16[9,4,4], index: 2, kind: input, shape index: {}]   ;;  %s1974_s3 = inlined_call_operand.vmem [shape: bf16[9,4,4], index: 3, kind: input, shape index: {}]   ;;  %s1975_s4 = inlined_call_operand.vmem [shape: f32[1,4], index: 4, kind: input, shape index: {}]   ;;  %s1976_s5 = inlined_call_operand.vmem [shape: bf16[2,16,16,4], index: 5, kind: output, shape index: {}]  }
   0x1 LB: > { %s1448_s19 = sadd.s32 4294967295, %s1715_s18   ;;  %p1452_p0 = scmp.ge.s32.totalorder %s1715_s18, 1  ;;  %s1715_s18 = sphi %s1753_s18, %s15_s18  }
   0x2   : > { %p197_p1 = scmp.lt.s32.totalorder %s1715_s18, 3 }
   0x4   : > { %p198_p2 = pnand %p1452_p0, %p197_p1 }
   0x5   : > { %p230_p3 = scmp.lt.s32.totalorder (!%p198_p2), %s1448_s19, 1  ;;  %v1764_v0 = vld [vmem:[%s1975_s4] ss:$0 sm:$0xff] (!%p198_p2)  ;;  %s1781_s8 = smov (!%p198_p2), 0  }
   0x6   : > { %201 = sbr.rel (%p198_p2) target bundleno = 309 (0x135), region = 40 }
   0xd   : > { %s1978_s19 = smov (!%p230_p3, %s1448_s19), 1 }
   0xe   : > { %s1674_s22 = smul.u32 216, %s1978_s19  ;;  %s1524_s23 = sshll.u32 %s1978_s19, 7 }
   0xf   : > { %s1769_s26 = scalar_lea.vmem %s1976_s5, %s1524_s23 }
  0x10   : > { %s1774_s29 = scalar_lea.vmem %s1971_s0, %s1674_s22  ;;  %s1779_s7 = scalar_lea.vmem %s1972_s1, %s1674_s22 }
  0x11 LB: >> { %v265_v1 = vld [vmem:[%s1974_s3] sm:$0x3]  ;;  %vm275_vm0 = vcmask 1041408   ;;  %v1721_v3 = vmov 0.0   ;;  %s1525_s13 = smul.u32 12, %s1719_s8  ;;  %vm1722_vm1 = vmmov 0   ;;  %s1719_s8 = sphi %s1781_s8, %s252_s8  }
  0x12   : >> { %v264_v2 = vld [vmem:[%s1973_s2] sm:$0x3]  ;;  %1566 = vmatprep.subr.bf16.mxu0 %v1721_v3  ;;  %v277_v4 = vsel %vm275_vm0, %v265_v1, 0  ;;  %1572 = vmatprep.subr.bf16.mxu1 %v1721_v3  ;;  %v1463_v6 = vld [vmem:[%s1973_s2 + $0x2] sm:$0x3]  ;;  %vm271_vm2 = vcmask 31744  }
  0x13   : >> { %v329_v5 = vsel %vm275_vm0, %v264_v2, 0  ;;  %1567 = vmatpush3.bf16.msra.mxu0 %v277_v4  ;;  %1568 = vmatprep.mubr.msk.bf16.mxu0 %vm1722_vm1, %v1721_v3  ;;  %v1466_v7 = vld [vmem:[%s1974_s3 + $0x2] sm:$0x3]  ;;  %s1809_s19 = scalar_lea.vmem %s1779_s7, %s1525_s13  ;;  %s1812_s20 = scalar_lea.vmem %s1774_s29, %s1525_s13  ;;  %vm377_vm3 = vsmask.f32 7424  ;;  %v393_v9 = vsel %vm275_vm0, %v1463_v6, 0 }
  0x14   : >> { %1573 = vmatpush3.bf16.msra.mxu1 %v329_v5  ;;  %1574 = vmatprep.mubr.msk.bf16.mxu1 %vm1722_vm1, %v1721_v3  ;;  %v1693_v8 = vld [vmem:[%s1809_s19] sm:$0xff]   ;;  %v458_v11 = vsel %vm275_vm0, %v1466_v7, 0  ;;  %v1695_v12 = vld [vmem:[%s1812_s20 + $0x8] ss:$0 sps:$4 sm:$0x11]   ;;  %vm505_vm4 = vcmask 1046528  }
  0x15   : >> { %1578 = vmatprep.subr.bf16.mxu0 %v1721_v3  ;;  %1584 = vmatprep.subr.bf16.mxu1 %v1721_v3  ;;  %v1694_v10 = vld [vmem:[%s1812_s20] sm:$0xff]   ;;  %v443_v15 = vshrl.u32 %v1693_v8, 16  ;;  %v445_v16 = vshll.u32 %v1693_v8, 16  ;;  %v385_v17 = vshll.u32 %v1695_v12, 16  ;;  %v507_v33 = vrot.slane %v1695_v12, 1  ;;  %v1697_v39 = vld [vmem:[%s1812_s20 + $0xc] sm:$0xff]  }
  0x16   : >> { %1569 = vmatmul.mubr.msk.bf16.vlgmr.msra.gmra.mrb[0].mxu0 %vm271_vm2, %v1693_v8  ;;  %v378_v13 = vshrl.u32 %v1694_v10, 16  ;;  %v380_v14 = vshll.u32 %v1694_v10, 16  ;;  %v1696_v18 = vld [vmem:[%s1809_s19 + $0x8] ss:$0 sps:$4 sm:$0x11]   ;;  %v506_v32 = vrot.slane %v1694_v10, 1 }
  0x17   : >> { %1575 = vmatmul.mubr.msk.bf16.vlgmr.msra.gmra.mrb[0].mxu1 %vm271_vm2, %v1694_v10  ;;  %1579 = vmatpush3.bf16.msra.mxu0 %v393_v9  ;;  %v1469_v19 = vld [vmem:[%s1973_s2 + $0x4] sm:$0x3]  ;;  %v447_v21 = vrot.slane %v445_v16, 1  ;;  %v387_v22 = vrot.slane %v385_v17, 1  ;;  %v450_v23 = vshll.u32 %v1696_v18, 16  ;;  %v560_v34 = vrot.slane %v1693_v8, 1 }
  0x18   : >> { %1585 = vmatpush3.bf16.msra.mxu1 %v458_v11  ;;  %1580 = vmatprep.mubr.msk.bf16.mxu0 %vm1722_vm1, %v1721_v3  ;;  %v382_v20 = vrot.slane %v380_v14, 1  ;;  %v1471_v24 = vld [vmem:[%s1974_s3 + $0x4] sm:$0x3]  ;;  %v513_v28 = vsel %vm275_vm0, %v1469_v19, 0  ;;  %v561_v35 = vrot.slane %v1696_v18, 1  ;;  %v508_v38 = vsel %vm505_vm4, %v506_v32, %v507_v33  ;;  %v1698_v42 = vld [vmem:[%s1809_s19 + $0xc] sm:$0xff]  }
  0x19   : >> { %1586 = vmatprep.mubr.msk.bf16.mxu1 %vm1722_vm1, %v1721_v3  ;;  %1590 = vmatprep.subr.bf16.mxu0 %v1721_v3  ;;  %v448_v26 = vor.u32 %v447_v21, %v443_v15  ;;  %v452_v27 = vrot.slane %v450_v23, 1  ;;  %v567_v30 = vsel %vm275_vm0, %v1471_v24, 0  ;;  %v1479_v36 = vld [vmem:[%s1973_s2 + $0x6] sm:$0x3]  ;;  %v743_v45 = vshll.u32 %v1697_v39, 16  ;;  %v1702_v16 = vld [vmem:[%s1809_s19 + $0x18] sm:$0xff]  }
  0x1a   : >> { %1596 = vmatprep.subr.bf16.mxu1 %v1721_v3  ;;  %v383_v25 = vor.u32 %v382_v20, %v378_v13  ;;  %v1482_v37 = vld [vmem:[%s1974_s3 + $0x6] sm:$0x3]  ;;  %v562_v40 = vsel %vm505_vm4, %v560_v34, %v561_v35  ;;  %v635_v41 = vsel %vm275_vm0, %v1479_v36, 0  ;;  %v1699_v44 = vld [vmem:[%s1812_s20 + $0x14] ss:$0 sps:$4 sm:$0x11]  }
  0x1b   : >> { %v453_v31 = vsel %vm377_vm3, %v448_v26, %v452_v27  ;;  %v691_v43 = vsel %vm275_vm0, %v1482_v37, 0  ;;  %v1700_v46 = vld [vmem:[%s1809_s19 + $0x14] ss:$0 sps:$4 sm:$0x11]   ;;  %v808_v47 = vshll.u32 %v1698_v42, 16  ;;  %v741_v50 = vshrl.u32 %v1697_v39, 16 }
  0x1c   : >> { %v388_v29 = vsel %vm377_vm3, %v383_v25, %v387_v22  ;;  %v1485_v48 = vld [vmem:[%s1973_s2 + $0x8] sm:$0x3]  ;;  %v745_v51 = vrot.slane %v743_v45, 1  ;;  %v748_v52 = vshll.u32 %v1699_v44, 16  ;;  %v806_v54 = vshrl.u32 %v1698_v42, 16  ;;  %v1701_v13 = vld [vmem:[%s1812_s20 + $0x18] sm:$0xff]  }
  0x1d   : >> { %v1488_v49 = vld [vmem:[%s1974_s3 + $0x8] sm:$0x3]  ;;  %v756_v53 = vsel %vm275_vm0, %v1485_v48, 0  ;;  %v810_v55 = vrot.slane %v808_v47, 1  ;;  %v813_v56 = vshll.u32 %v1700_v46, 16  ;;  %v868_v6 = vrot.slane %v1697_v39, 1 }
  0x1e   : >> { %1581 = vmatmul.mubr.msk.bf16.vlgmr.msra.gmra.mrb[4].mxu0 %vm271_vm2, %v388_v29  ;;  %v821_v57 = vsel %vm275_vm0, %v1488_v49, 0  ;;  %v746_v58 = vor.u32 %v745_v51, %v741_v50  ;;  %v750_v59 = vrot.slane %v748_v52, 1  ;;  %v1491_v62 = vld [vmem:[%s1973_s2 + $0xa] sm:$0x3]  ;;  %v869_v7 = vrot.slane %v1699_v44, 1  ;;  %s1529_s6 = sshll.u32 %s1719_s8, 3 }
  0x1f   : >> { %1587 = vmatmul.mubr.msk.bf16.vlgmr.msra.gmra.mrb[4].mxu1 %vm271_vm2, %v453_v31  ;;  %1591 = vmatpush3.bf16.msra.mxu0 %v513_v28  ;;  %v811_v60 = vor.u32 %v810_v55, %v806_v54  ;;  %v815_v61 = vrot.slane %v813_v56, 1  ;;  %v1493_v63 = vld [vmem:[%s1974_s3 + $0xa] sm:$0x3]  ;;  %v875_v4 = vsel %vm275_vm0, %v1491_v62, 0  ;;  %v922_v8 = vrot.slane %v1698_v42, 1  ;;  %s1354_s9 = scalar_lea.vmem %s1769_s26, %s1529_s6  ;;  %s252_s8 = sadd.s32 1, %s1719_s8  }
  0x20   : >> { %1597 = vmatpush3.bf16.msra.mxu1 %v567_v30  ;;  %1592 = vmatprep.mubr.msk.bf16.mxu0 %vm1722_vm1, %v1721_v3  ;;  %v751_v1 = vsel %vm377_vm3, %v746_v58, %v750_v59  ;;  %v929_v5 = vsel %vm275_vm0, %v1493_v63, 0  ;;  %v923_v9 = vrot.slane %v1700_v46, 1  ;;  %v1501_v10 = vld [vmem:[%s1973_s2 + $0xc] sm:$0x3]  ;;  %v870_v12 = vsel %vm505_vm4, %v868_v6, %v869_v7  ;;  %v1507_v22 = vld [vmem:[%s1973_s2 + $0xe] sm:$0x3] }
  0x21   : >> { %1598 = vmatprep.mubr.msk.bf16.mxu1 %vm1722_vm1, %v1721_v3  ;;  %1602 = vmatprep.subr.bf16.mxu0 %v1721_v3  ;;  %v816_v2 = vsel %vm377_vm3, %v811_v60, %v815_v61  ;;  %v1504_v11 = vld [vmem:[%s1974_s3 + $0xc] sm:$0x3]  ;;  %v997_v15 = vsel %vm275_vm0, %v1501_v10, 0  ;;  %v1703_v18 = vld [vmem:[%s1812_s20 + $0x20] ss:$0 sps:$4 sm:$0x11]  }
  0x22   : >> { %1608 = vmatprep.subr.bf16.mxu1 %v1721_v3  ;;  %v924_v14 = vsel %vm505_vm4, %v922_v8, %v923_v9  ;;  %v1053_v17 = vsel %vm275_vm0, %v1504_v11, 0  ;;  %v1105_v19 = vshll.u32 %v1701_v13, 16  ;;  %v1704_v20 = vld [vmem:[%s1809_s19 + $0x20] ss:$0 sps:$4 sm:$0x11]   ;;  %v1170_v21 = vshll.u32 %v1702_v16, 16 }
  0x23   : >> { %v1510_v23 = vld [vmem:[%s1974_s3 + $0xe] sm:$0x3]  ;;  %v1103_v24 = vshrl.u32 %v1701_v13, 16  ;;  %v1110_v26 = vshll.u32 %v1703_v18, 16  ;;  %v1118_v27 = vsel %vm275_vm0, %v1507_v22, 0  ;;  %v1168_v28 = vshrl.u32 %v1702_v16, 16 }
  0x24   : >> { %v1107_v25 = vrot.slane %v1105_v19, 1  ;;  %v1172_v29 = vrot.slane %v1170_v21, 1  ;;  %v1175_v30 = vshll.u32 %v1704_v20, 16  ;;  %v1183_v31 = vsel %vm275_vm0, %v1510_v23, 0  ;;  %v1513_v36 = vld [vmem:[%s1973_s2 + $0x10] sm:$0x3] }
  0x25   : >> { %v1112_v33 = vrot.slane %v1110_v26, 1  ;;  %v1515_v37 = vld [vmem:[%s1974_s3 + $0x10] sm:$0x3]  ;;  %v1284_v44 = vrot.slane %v1702_v16, 1  ;;  %v1285_v45 = vrot.slane %v1704_v20, 1  ;;  %vm1355_vm5 = vcmask 27648  }
  0x26   : >> { %1593 = vmatmul.mubr.msk.bf16.vlgmr.msra.gmra.mrb[8].mxu0 %vm271_vm2, %v508_v38  ;;  %v1108_v32 = vor.u32 %v1107_v25, %v1103_v24  ;;  %v1173_v34 = vor.u32 %v1172_v29, %v1168_v28  ;;  %v1177_v35 = vrot.slane %v1175_v30, 1  ;;  %p249_p4 = scmp.ge.s32.totalorder %s252_s8, 16  }
  0x27   : >> { %1599 = vmatmul.mubr.msk.bf16.vlgmr.msra.gmra.mrb[8].mxu1 %vm271_vm2, %v562_v40  ;;  %1603 = vmatpush3.bf16.msra.mxu0 %v635_v41  ;;  %v1237_v40 = vsel %vm275_vm0, %v1513_v36, 0  ;;  %v1291_v41 = vsel %vm275_vm0, %v1515_v37, 0  ;;  %v1286_v47 = vsel %vm505_vm4, %v1284_v44, %v1285_v45 }
  0x28   : >> { %1609 = vmatpush3.bf16.msra.mxu1 %v691_v43  ;;  %1604 = vmatprep.mubr.msk.bf16.mxu0 %vm1722_vm1, %v1721_v3  ;;  %v1113_v38 = vsel %vm377_vm3, %v1108_v32, %v1112_v33  ;;  %v1231_v43 = vrot.slane %v1703_v18, 1 }
  0x29   : >> { %1610 = vmatprep.mubr.msk.bf16.mxu1 %vm1722_vm1, %v1721_v3  ;;  %1614 = vmatprep.subr.bf16.mxu0 %v1721_v3 }
  0x2a   : >> { %1620 = vmatprep.subr.bf16.mxu1 %v1721_v3 }
  0x2e   : >> { %1605 = vmatmul.mubr.msk.bf16.vlgmr.msra.gmra.mrb[12].mxu0 %vm271_vm2, %v1697_v39  ;;  %v1178_v39 = vsel %vm377_vm3, %v1173_v34, %v1177_v35 }
  0x2f   : >> { %1611 = vmatmul.mubr.msk.bf16.vlgmr.msra.gmra.mrb[12].mxu1 %vm271_vm2, %v1698_v42  ;;  %1615 = vmatpush3.bf16.msra.mxu0 %v756_v53  ;;  %v1230_v42 = vrot.slane %v1701_v13, 1 }
  0x30   : >> { %1621 = vmatpush3.bf16.msra.mxu1 %v821_v57  ;;  %1616 = vmatprep.mubr.msk.bf16.mxu0 %vm1722_vm1, %v1721_v3 }
  0x31   : >> { %1622 = vmatprep.mubr.msk.bf16.mxu1 %vm1722_vm1, %v1721_v3  ;;  %1626 = vmatprep.subr.bf16.mxu0 %v1721_v3  ;;  %v1232_v46 = vsel %vm505_vm4, %v1230_v42, %v1231_v43 }
  0x32   : >> { %1632 = vmatprep.subr.bf16.mxu1 %v1721_v3 }
  0x36   : >> { %1617 = vmatmul.mubr.msk.bf16.vlgmr.msra.gmra.mrb[16].mxu0 %vm271_vm2, %v751_v1 }
  0x37   : >> { %1623 = vmatmul.mubr.msk.bf16.vlgmr.msra.gmra.mrb[16].mxu1 %vm271_vm2, %v816_v2  ;;  %1627 = vmatpush3.bf16.msra.mxu0 %v875_v4 }
  0x38   : >> { %1633 = vmatpush3.bf16.msra.mxu1 %v929_v5  ;;  %1628 = vmatprep.mubr.msk.bf16.mxu0 %vm1722_vm1, %v1721_v3 }
  0x39   : >> { %1634 = vmatprep.mubr.msk.bf16.mxu1 %vm1722_vm1, %v1721_v3  ;;  %1638 = vmatprep.subr.bf16.mxu0 %v1721_v3 }
  0x3a   : >> { %1644 = vmatprep.subr.bf16.mxu1 %v1721_v3 }
  0x3e   : >> { %1629 = vmatmul.mubr.msk.bf16.vlgmr.msra.gmra.mrb[20].mxu0 %vm271_vm2, %v870_v12 }
  0x3f   : >> { %1635 = vmatmul.mubr.msk.bf16.vlgmr.msra.gmra.mrb[20].mxu1 %vm271_vm2, %v924_v14  ;;  %1639 = vmatpush3.bf16.msra.mxu0 %v997_v15 }
  0x40   : >> { %1645 = vmatpush3.bf16.msra.mxu1 %v1053_v17  ;;  %1640 = vmatprep.mubr.msk.bf16.mxu0 %vm1722_vm1, %v1721_v3 }
  0x41   : >> { %1646 = vmatprep.mubr.msk.bf16.mxu1 %vm1722_vm1, %v1721_v3  ;;  %1650 = vmatprep.subr.bf16.mxu0 %v1721_v3 }
  0x42   : >> { %1656 = vmatprep.subr.bf16.mxu1 %v1721_v3 }
  0x46   : >> { %1641 = vmatmul.mubr.msk.bf16.vlgmr.msra.gmra.mrb[24].mxu0 %vm271_vm2, %v1701_v13 }
  0x47   : >> { %1647 = vmatmul.mubr.msk.bf16.vlgmr.msra.gmra.mrb[24].mxu1 %vm271_vm2, %v1702_v16  ;;  %1651 = vmatpush3.bf16.msra.mxu0 %v1118_v27 }
  0x48   : >> { %1657 = vmatpush3.bf16.msra.mxu1 %v1183_v31  ;;  %1652 = vmatprep.mubr.msk.bf16.mxu0 %vm1722_vm1, %v1721_v3 }
  0x49   : >> { %1658 = vmatprep.mubr.msk.bf16.mxu1 %vm1722_vm1, %v1721_v3  ;;  %1662 = vmatprep.subr.bf16.mxu0 %v1721_v3 }
  0x4a   : >> { %1668 = vmatprep.subr.bf16.mxu1 %v1721_v3 }
  0x4e   : >> { %1653 = vmatmul.mubr.msk.bf16.vlgmr.msra.gmra.mrb[28].mxu0 %vm271_vm2, %v1113_v38 }
  0x4f   : >> { %1659 = vmatmul.mubr.msk.bf16.vlgmr.msra.gmra.mrb[28].mxu1 %vm271_vm2, %v1178_v39  ;;  %1663 = vmatpush3.bf16.msra.mxu0 %v1237_v40 }
  0x50   : >> { %1669 = vmatpush3.bf16.msra.mxu1 %v1291_v41  ;;  %1664 = vmatprep.mubr.msk.bf16.mxu0 %vm1722_vm1, %v1721_v3 }
  0x51   : >> { %1670 = vmatprep.mubr.msk.bf16.mxu1 %vm1722_vm1, %v1721_v3 }
  0x56   : >> { %1665 = vmatmul.mubr.msk.bf16.vlgmr.msra.gmra.mrb[32].mxu0 %vm271_vm2, %v1232_v46 }
  0x57   : >> { %1671 = vmatmul.mubr.msk.bf16.vlgmr.msra.gmra.mrb[32].mxu1 %vm271_vm2, %v1286_v47 }
  0xe9   : >> { %v313_v48 = vpop.f32.mrb[0].mxu0 }
  0xea   : >> { %v365_v49 = vpop.f32.mrb[0].mxu1  ;;  %v1570_v50 = vpop.f32.mrb[1].mxu0 }
  0xeb   : >> { %v366_v51 = vadd.f32 %v365_v49, %v313_v48  ;;  %v1576_v52 = vpop.f32.mrb[1].mxu1  ;;  %v316_v53 = vpop.f32.mrb[2].mxu0 }
  0xec   : >> { %v368_v54 = vpop.f32.mrb[2].mxu1  ;;  %v1571_v55 = vpop.f32.mrb[3].mxu0 }
  0xed   : >> { %v369_v56 = vadd.f32 %v368_v54, %v316_v53  ;;  %v1577_v57 = vpop.f32.mrb[3].mxu1 }
  0xf1   : >> { %v429_v58 = vpop.f32.mrb[4].mxu0 }
  0xf2   : >> { %v436_v3 = vadd.f32 %v429_v58, %v366_v51  ;;  %v494_v59 = vpop.f32.mrb[4].mxu1  ;;  %v1582_v60 = vpop.f32.mrb[5].mxu0 }
  0xf3   : >> { %v1588_v61 = vpop.f32.mrb[5].mxu1  ;;  %v432_v62 = vpop.f32.mrb[6].mxu0 }
  0xf4   : >> { %v501_v63 = vadd.f32 %v494_v59, %v436_v3  ;;  %v437_v1 = vadd.f32 %v432_v62, %v369_v56  ;;  %v497_v2 = vpop.f32.mrb[6].mxu1  ;;  %v1583_v4 = vpop.f32.mrb[7].mxu0 }
  0xf5   : >> { %v1589_v5 = vpop.f32.mrb[7].mxu1 }
  0xf6   : >> { %v502_v6 = vadd.f32 %v497_v2, %v437_v1 }
  0xf9   : >> { %v549_v7 = vpop.f32.mrb[8].mxu0 }
  0xfa   : >> { %v556_v8 = vadd.f32 %v549_v7, %v501_v63  ;;  %v603_v9 = vpop.f32.mrb[8].mxu1  ;;  %v1594_v10 = vpop.f32.mrb[9].mxu0 }
  0xfb   : >> { %v1600_v11 = vpop.f32.mrb[9].mxu1  ;;  %v552_v12 = vpop.f32.mrb[10].mxu0 }
  0xfc   : >> { %v610_v13 = vadd.f32 %v603_v9, %v556_v8  ;;  %v557_v14 = vadd.f32 %v552_v12, %v502_v6  ;;  %v606_v15 = vpop.f32.mrb[10].mxu1  ;;  %v1595_v16 = vpop.f32.mrb[11].mxu0 }
  0xfd   : >> { %v1601_v17 = vpop.f32.mrb[11].mxu1 }
  0xfe   : >> { %v611_v18 = vadd.f32 %v606_v15, %v557_v14 }
 0x101   : >> { %v671_v19 = vpop.f32.mrb[12].mxu0 }
 0x102   : >> { %v678_v20 = vadd.f32 %v671_v19, %v610_v13  ;;  %v727_v21 = vpop.f32.mrb[12].mxu1  ;;  %v1606_v22 = vpop.f32.mrb[13].mxu0 }
 0x103   : >> { %v1612_v23 = vpop.f32.mrb[13].mxu1  ;;  %v674_v24 = vpop.f32.mrb[14].mxu0 }
 0x104   : >> { %v734_v25 = vadd.f32 %v727_v21, %v678_v20  ;;  %v679_v26 = vadd.f32 %v674_v24, %v611_v18  ;;  %v730_v27 = vpop.f32.mrb[14].mxu1  ;;  %v1607_v28 = vpop.f32.mrb[15].mxu0 }
 0x105   : >> { %v1613_v29 = vpop.f32.mrb[15].mxu1 }
 0x106   : >> { %v735_v30 = vadd.f32 %v730_v27, %v679_v26 }
 0x109   : >> { %v792_v31 = vpop.f32.mrb[16].mxu0 }
 0x10a   : >> { %v799_v32 = vadd.f32 %v792_v31, %v734_v25  ;;  %v857_v33 = vpop.f32.mrb[16].mxu1  ;;  %v1618_v34 = vpop.f32.mrb[17].mxu0 }
 0x10b   : >> { %v1624_v35 = vpop.f32.mrb[17].mxu1  ;;  %v795_v36 = vpop.f32.mrb[18].mxu0 }
 0x10c   : >> { %v864_v37 = vadd.f32 %v857_v33, %v799_v32  ;;  %v800_v38 = vadd.f32 %v795_v36, %v735_v30  ;;  %v860_v39 = vpop.f32.mrb[18].mxu1  ;;  %v1619_v40 = vpop.f32.mrb[19].mxu0 }
 0x10d   : >> { %v1625_v41 = vpop.f32.mrb[19].mxu1 }
 0x10e   : >> { %v865_v42 = vadd.f32 %v860_v39, %v800_v38 }
 0x111   : >> { %v911_v43 = vpop.f32.mrb[20].mxu0 }
 0x112   : >> { %v918_v44 = vadd.f32 %v911_v43, %v864_v37  ;;  %v965_v45 = vpop.f32.mrb[20].mxu1  ;;  %v1630_v46 = vpop.f32.mrb[21].mxu0 }
 0x113   : >> { %v1636_v47 = vpop.f32.mrb[21].mxu1  ;;  %v914_v48 = vpop.f32.mrb[22].mxu0 }
 0x114   : >> { %v972_v49 = vadd.f32 %v965_v45, %v918_v44  ;;  %v919_v50 = vadd.f32 %v914_v48, %v865_v42  ;;  %v968_v51 = vpop.f32.mrb[22].mxu1  ;;  %v1631_v52 = vpop.f32.mrb[23].mxu0 }
 0x115   : >> { %v1637_v53 = vpop.f32.mrb[23].mxu1 }
 0x116   : >> { %v973_v54 = vadd.f32 %v968_v51, %v919_v50 }
 0x119   : >> { %v1033_v55 = vpop.f32.mrb[24].mxu0 }
 0x11a   : >> { %v1040_v56 = vadd.f32 %v1033_v55, %v972_v49  ;;  %v1089_v57 = vpop.f32.mrb[24].mxu1  ;;  %v1642_v58 = vpop.f32.mrb[25].mxu0 }
 0x11b   : >> { %v1648_v3 = vpop.f32.mrb[25].mxu1  ;;  %v1036_v59 = vpop.f32.mrb[26].mxu0 }
 0x11c   : >> { %v1096_v60 = vadd.f32 %v1089_v57, %v1040_v56  ;;  %v1041_v61 = vadd.f32 %v1036_v59, %v973_v54  ;;  %v1092_v62 = vpop.f32.mrb[26].mxu1  ;;  %v1643_v63 = vpop.f32.mrb[27].mxu0 }
 0x11d   : >> { %v1649_v1 = vpop.f32.mrb[27].mxu1 }
 0x11e   : >> { %v1097_v2 = vadd.f32 %v1092_v62, %v1041_v61 }
 0x121   : >> { %v1154_v4 = vpop.f32.mrb[28].mxu0 }
 0x122   : >> { %v1161_v5 = vadd.f32 %v1154_v4, %v1096_v60  ;;  %v1219_v6 = vpop.f32.mrb[28].mxu1  ;;  %v1654_v7 = vpop.f32.mrb[29].mxu0 }
 0x123   : >> { %v1660_v8 = vpop.f32.mrb[29].mxu1  ;;  %v1157_v9 = vpop.f32.mrb[30].mxu0 }
 0x124   : >> { %v1226_v10 = vadd.f32 %v1219_v6, %v1161_v5  ;;  %v1162_v11 = vadd.f32 %v1157_v9, %v1097_v2  ;;  %v1222_v12 = vpop.f32.mrb[30].mxu1  ;;  %v1655_v13 = vpop.f32.mrb[31].mxu0 }
 0x125   : >> { %v1661_v14 = vpop.f32.mrb[31].mxu1 }
 0x126   : >> { %v1227_v15 = vadd.f32 %v1222_v12, %v1162_v11 }
 0x129   : >> { %v1273_v16 = vpop.f32.mrb[32].mxu0 }
 0x12a   : >> { %v1280_v17 = vadd.f32 %v1273_v16, %v1226_v10  ;;  %v1327_v18 = vpop.f32.mrb[32].mxu1  ;;  %v1666_v19 = vpop.f32.mrb[33].mxu0 }
 0x12b   : >> { %v1672_v20 = vpop.f32.mrb[33].mxu1  ;;  %v1276_v21 = vpop.f32.mrb[34].mxu0 }
 0x12c   : >> { %v1334_v22 = vadd.f32 %v1327_v18, %v1280_v17  ;;  %v1281_v23 = vadd.f32 %v1276_v21, %v1227_v15  ;;  %v1330_v24 = vpop.f32.mrb[34].mxu1  ;;  %v1667_v25 = vpop.f32.mrb[35].mxu0 }
 0x12d   : >> { %v1673_v26 = vpop.f32.mrb[35].mxu1 }
 0x12e   : >> { %v1342_v27 = vadd.f32 %v1764_v0, %v1334_v22  ;;  %v1335_v28 = vadd.f32 %v1330_v24, %v1281_v23  ;;  %251 = sbr.rel (!%p249_p4) target bundleno = 17 (0x11), region = 103 }
 0x130   : >> { %v1527_v29 = vpack.c.bf16 %v1342_v27, %v1342_v27  ;;  %v1343_v30 = vadd.f32 %v1764_v0, %v1335_v28 }
 0x132   : >> { %1356 = vst.msk [vmem:[%s1354_s9] sm:$0xf] %vm1355_vm5, %v1527_v29  ;;  %v1528_v31 = vpack.c.bf16 %v1343_v30, %v1343_v30 }
 0x134   : >> { %1357 = vst.msk [vmem:[%s1354_s9 + $0x4] sm:$0xf] %vm1355_vm5, %v1528_v31 }
 0x135 PF: > { %s15_s18 = sadd.s32 1, %s1715_s18  }
 0x136   : > { %p12_p5 = scmp.ge.s32.totalorder %s15_s18, 4  }
 0x138   :  { %14 = sbr.rel (!%p12_p5) target bundleno = 1 (0x1), region = 114 }

</bundles_post_ra>
